<compile_context>
chip_gen: v5e
topology: v5e:2x2
jax: 0.10.0
libtpu: 0.0.40
codegen_flags: <defaults>
</compile_context>

<pallas_src>
import functools

import jax
import jax.numpy as jnp
import numpy as np
from jax.experimental import pallas as pl
from jax.experimental.pallas import tpu as pltpu

LRELU_SLOPE = 0.2
BN_EPS = 1e-5
KH = KW = 4        # conv kernel size (fixed by the architecture)
NOUT = 128         # lane width of every GEMM output / packed-weight columns


def _round_up(v, m):
    return ((v + m - 1) // m) * m


# ------------------------------ static config ------------------------------ #
def _layer_config(h, w, num_in_ch, num_feat):
    """Static per-layer geometry for the 4 conv layers of PatchGANDiscriminator."""
    chans = [num_in_ch, num_feat, num_feat * 2, num_feat * 4, 1]
    strides = [2, 2, 2, 1]
    use_bn = [False, True, True, False]
    use_act = [True, True, True, False]
    cfg = []
    hin, win = h, w
    for l in range(4):
        s = strides[l]
        ho = hin // 2 if s == 2 else hin - 1          # k=4, pad=1
        wo = win // 2 if s == 2 else win - 1
        cfg.append(dict(
            stride=s, hin=hin, win=win, ho=ho, wo=wo,
            hpa=hin + 2,                              # padded-H extent of this layer's input
            wpa=max(win + 2, 4 + 7 * s),              # padded-W extent (>= strided read reach)
            cin=chans[l], cout=chans[l + 1],
            cp=_round_up(chans[l], 8),                # channel padding of this layer's input
            bn=use_bn[l], act=use_act[l]))
        hin, win = ho, wo
    return cfg


# ------------------------------ fused kernel ------------------------------- #
def _zero_halo(ref, hin, win):
    """Zero only the padding ring of a (n, hpa, wpa, cp) activation scratch."""
    n, hpa, wpa, cp = ref.shape
    dt = ref.dtype
    ref[:, pl.ds(0, 1), :, :] = jnp.zeros((n, 1, wpa, cp), dt)                  # top row
    ref[:, pl.ds(1 + hin, hpa - 1 - hin), :, :] = jnp.zeros(
        (n, hpa - 1 - hin, wpa, cp), dt)                                        # bottom rows
    ref[:, pl.ds(1, hin), pl.ds(0, 1), :] = jnp.zeros((n, hin, 1, cp), dt)      # left col
    ref[:, pl.ds(1, hin), pl.ds(1 + win, wpa - 1 - win), :] = jnp.zeros(
        (n, hin, wpa - 1 - win, cp), dt)                                        # right cols


def _fused_kernel(cfg, n, x_in_ref, w_ref, prm_ref, out_ref, *acts):
    """Whole PatchGAN forward: 4x (K-stacked conv GEMM + bias (+BN) (+LeakyReLU))."""
    # Zero only the halo of each spatially padded activation buffer; the
    # interiors are fully overwritten below.
    for l, c in enumerate(cfg):
        _zero_halo(acts[l], c["hin"], c["win"])

    # Network input -> interior of the layer-0 activation buffer (spatial
    # zero-padding therefore never exists in HBM).
    c0 = cfg[0]
    acts[0][:, pl.ds(1, c0["hin"]), pl.ds(1, c0["win"]), :] = x_in_ref[...]

    k_off = 0
    for l, c in enumerate(cfg):
        ho, wo, s, cp = c["ho"], c["wo"], c["stride"], c["cp"]
        m = n * ho * 8                        # W axis padded to 8 output columns
        kk = KH * KW * cp
        src = acts[l]

        # ---- im2col: 16 strided tap reads, K-stacked into one (m, kk) LHS ----
        taps = []
        for ki in range(KH):
            row_sl = pl.ds(ki, ho) if s == 1 else pl.ds(ki, ho, s)
            for kj in range(KW):
                col_sl = pl.ds(kj, 8) if s == 1 else pl.ds(kj, 8, s)
                blk = src[:, row_sl, col_sl, :]             # (n, ho, 8, cp) f32
                taps.append(blk.reshape(m, cp))
        patch = jnp.concatenate(taps, axis=-1).astype(jnp.bfloat16)   # (m, kk)

        # ---- conv as ONE bf16 GEMM with f32 accumulation (MXU) ----
        y = jnp.dot(patch, w_ref[pl.ds(k_off, kk), :],
                    preferred_element_type=jnp.float32)     # (m, 128) f32
        k_off += kk
        y = y + prm_ref[pl.ds(3 * l, 1), :]                 # + bias

        rmask = None
        if wo < 8 and (c["bn"] or l == len(cfg) - 1):
            colid = jax.lax.broadcasted_iota(jnp.int32, (m, 1), 0) % 8
            rmask = (colid < wo).astype(jnp.float32)        # valid output columns

        # ---- BatchNorm (training-mode batch stats), two-pass variance ----
        if c["bn"]:
            g = prm_ref[pl.ds(3 * l + 1, 1), :]
            beta = prm_ref[pl.ds(3 * l + 2, 1), :]
            inv_cnt = 1.0 / float(n * ho * wo)
            ym = y if rmask is None else y * rmask
            mean = jnp.sum(ym, axis=0, keepdims=True) * inv_cnt
            d = y - mean
            if rmask is not None:
                d = d * rmask
            var = jnp.sum(d * d, axis=0, keepdims=True) * inv_cnt
            y = (y - mean) * (g * jax.lax.rsqrt(var + BN_EPS)) + beta

        # ---- LeakyReLU(0.2) ----
        if c["act"]:
            y = jnp.maximum(y, LRELU_SLOPE * y)

        if l < len(cfg) - 1:
            # Store the valid (ho x wo x cout_padded) block into the interior of
            # the next layer's padded scratch; the halo stays exactly zero.
            # TODO(synk): for large W the store offset could be 8-sublane aligned
            # (content at column offset 8) to get unmasked vst on v5e.
            cpn = cfg[l + 1]["cp"]
            y4 = y[:, :cpn].reshape(n, ho, 8, cpn)
            acts[l + 1][:, pl.ds(1, ho), pl.ds(1, wo), :] = y4[:, :, :wo, :]
        else:
            if rmask is not None:
                y = y * rmask                               # zero padded output columns
            out_ref[...] = y


# ----------------------- one-time parameter packing ------------------------- #
def pack_params(params):
    """Pack conv weights / bias / BN params ONCE (outside the jitted forward).

    Weights: per layer the 16 (ki,kj) taps are stacked along K (tap-major,
    channel-minor) with Cin padded to a multiple of 8 and Cout padded to 128;
    the 4 layers are then concatenated into one (sum_K, 128) bf16 operand.
    """
    def pack_w(wt):
        wt = jnp.asarray(wt, jnp.float32)
        cout, cin = wt.shape[0], wt.shape[1]
        cp = _round_up(cin, 8)
        mm = jnp.transpose(wt, (2, 3, 1, 0)).reshape(KH * KW, cin, cout)
        mm = jnp.pad(mm, ((0, 0), (0, cp - cin), (0, NOUT - cout)))
        return mm.reshape(KH * KW * cp, NOUT)

    wk = jnp.concatenate([pack_w(params["w0"]), pack_w(params["w1"]),
                          pack_w(params["w2"]), pack_w(params["w3"])],
                         axis=0).astype(jnp.bfloat16)

    def row(v):
        v = jnp.asarray(v, jnp.float32)
        return jnp.pad(v, (0, NOUT - v.shape[0]))[None, :]

    one1 = jnp.ones((1,), jnp.float32)
    zero1 = jnp.zeros((1,), jnp.float32)
    prm = jnp.concatenate([
        row(params["b0"]), row(one1), row(zero1),
        row(params["b1"]), row(params["g1"]), row(params["be1"]),
        row(params["b2"]), row(params["g2"]), row(params["be2"]),
        row(params["b3"]), row(one1), row(zero1),
    ], axis=0)                                              # (12, 128) f32
    return wk, prm


# --------------------------------- wrapper --------------------------------- #
@functools.partial(jax.jit, static_argnames=("num_feat",))
def patchgan_forward(wk, prm, x_nchw, *, num_feat):
    """Forward pass. Input/output in NCHW like the PyTorch module."""
    n, cin, h, w = x_nchw.shape
    cfg = _layer_config(h, w, cin, num_feat)
    assert all(1 <= c["wo"] <= 8 and c["ho"] >= 1 for c in cfg)
    assert wk.shape == (sum(KH * KW * c["cp"] for c in cfg), NOUT)

    # Only NHWC transpose + pad channels to cp0 in the wrapper (a few KiB);
    # spatial padding is done inside the kernel in VMEM, never in HBM.
    c0 = cfg[0]
    x = jnp.transpose(x_nchw, (0, 2, 3, 1)).astype(jnp.float32)
    x = jnp.pad(x, ((0, 0), (0, 0), (0, 0), (0, c0["cp"] - cin)))

    m_out = n * cfg[-1]["ho"] * 8
    vmem = pl.BlockSpec(memory_space=pltpu.MemorySpace.VMEM)
    out = pl.pallas_call(
        functools.partial(_fused_kernel, cfg, n),
        out_shape=jax.ShapeDtypeStruct((m_out, NOUT), jnp.float32),
        in_specs=[vmem, vmem, vmem],
        out_specs=vmem,
        scratch_shapes=[pltpu.VMEM((n, c["hpa"], c["wpa"], c["cp"]), jnp.float32)
                        for c in cfg],
    )(x, wk, prm)

    ho3, wo3 = cfg[-1]["ho"], cfg[-1]["wo"]
    y = out.reshape(n, ho3, 8, NOUT)[:, :, :wo3, :1]        # real rows/cols/channel
    return jnp.transpose(y, (0, 3, 1, 2))                   # NCHW


# ------------------------- synthetic parameters ----------------------------- #
def init_params(key, num_in_ch=4, num_feat=8):
    ks = jax.random.split(key, 12)

    def w(k, cout, cin):
        return jax.random.normal(k, (cout, cin, 4, 4), jnp.float32) * 0.05

    nf = num_feat
    return {
        "w0": w(ks[0], nf, num_in_ch),   "b0": jax.random.normal(ks[1], (nf,)) * 0.01,
        "w1": w(ks[2], nf * 2, nf),      "b1": jax.random.normal(ks[3], (nf * 2,)) * 0.01,
        "g1": 1.0 + 0.1 * jax.random.normal(ks[4], (nf * 2,)),
        "be1": 0.1 * jax.random.normal(ks[5], (nf * 2,)),
        "w2": w(ks[6], nf * 4, nf * 2),  "b2": jax.random.normal(ks[7], (nf * 4,)) * 0.01,
        "g2": 1.0 + 0.1 * jax.random.normal(ks[8], (nf * 4,)),
        "be2": 0.1 * jax.random.normal(ks[9], (nf * 4,)),
        "w3": w(ks[10], 1, nf * 4),      "b3": jax.random.normal(ks[11], (1,)) * 0.01,
    }


# --------------------------- pure-JAX reference ------------------------------ #
def _ref_conv(x, w, b, stride, pad):
    y = jax.lax.conv_general_dilated(
        x, w, (stride, stride), ((pad, pad), (pad, pad)),
        dimension_numbers=("NCHW", "OIHW", "NCHW"))
    return y + b.reshape(1, -1, 1, 1)


def _ref_bn(x, g, be):
    mean = jnp.mean(x, axis=(0, 2, 3), keepdims=True)
    var = jnp.mean(jnp.square(x - mean), axis=(0, 2, 3), keepdims=True)
    return (x - mean) * jax.lax.rsqrt(var + BN_EPS) * g.reshape(1, -1, 1, 1) \
        + be.reshape(1, -1, 1, 1)


def _lrelu(x):
    return jnp.where(x >= 0, x, LRELU_SLOPE * x)


def patchgan_reference(params, x):
    x = _lrelu(_ref_conv(x, params["w0"], params["b0"], 2, 1))
    x = _lrelu(_ref_bn(_ref_conv(x, params["w1"], params["b1"], 2, 1),
                       params["g1"], params["be1"]))
    x = _lrelu(_ref_bn(_ref_conv(x, params["w2"], params["b2"], 2, 1),
                       params["g2"], params["be2"]))
    return _ref_conv(x, params["w3"], params["b3"], 1, 1)


# ----------------------------------- main ------------------------------------ #
if __name__ == "__main__":
    key = jax.random.PRNGKey(0)
    kx, kp = jax.random.split(key)
    x = jax.random.normal(kx, (2, 4, 16, 16), jnp.float32)    # NCHW input
    params = init_params(kp, num_in_ch=4, num_feat=8)

    wk, prm = pack_params(params)                             # packed once, outside jit

    out = jax.block_until_ready(patchgan_forward(wk, prm, x, num_feat=8))
    ref = jax.block_until_ready(patchgan_reference(params, x))

    assert out.shape == ref.shape == (2, 1, 1, 1)
    # bf16 MXU inputs with f32 accumulation: agreement is at the ~1e-2 absolute
    # level for these activation magnitudes (f32 reference).
    np.testing.assert_allclose(np.asarray(out), np.asarray(ref), atol=1e-2, rtol=1e-2)

    print("KERNEL_OK")
</pallas_src>

<mosaic_0001>
module attributes {stable_mosaic.version = 11 : i64} {
  func.func @_fused_kernel(%arg0: memref<2x16x16x8xf32, #tpu.memory_space<vmem>>, %arg1: memref<1024x128xbf16, #tpu.memory_space<vmem>>, %arg2: memref<12x128xf32, #tpu.memory_space<vmem>>, %arg3: memref<16x128xf32, #tpu.memory_space<vmem>>, %arg4: memref<2x18x18x8xf32, #tpu.memory_space<vmem>>, %arg5: memref<2x10x18x8xf32, #tpu.memory_space<vmem>>, %arg6: memref<2x6x18x16xf32, #tpu.memory_space<vmem>>, %arg7: memref<2x4x11x32xf32, #tpu.memory_space<vmem>>) attributes {dimension_semantics = [], scalar_prefetch = 0 : i64, scratch_operands = 4 : i64, tpu.core_type = #tpu.core_type<tc>} {
    %cst = arith.constant 0.000000e+00 : f32
    %0 = vector.broadcast %cst : f32 to vector<2x1x18x8xf32>
    %c0 = arith.constant 0 : index
    %c0_0 = arith.constant 0 : index
    %c0_1 = arith.constant 0 : index
    %c0_2 = arith.constant 0 : index
    %1 = vector.load %arg4[%c0, %c0_0, %c0_1, %c0_2] : memref<2x18x18x8xf32, #tpu.memory_space<vmem>>, vector<2x1x18x8xf32>
    tpu.vector_store %arg4[%c0, %c0_0, %c0_1, %c0_2], %0 {strides = array<i32>} : memref<2x18x18x8xf32, #tpu.memory_space<vmem>>, vector<2x1x18x8xf32>,
    %cst_3 = arith.constant 0.000000e+00 : f32
    %2 = vector.broadcast %cst_3 : f32 to vector<2x1x18x8xf32>
    %c0_4 = arith.constant 0 : index
    %c17 = arith.constant 17 : index
    %c0_5 = arith.constant 0 : index
    %c0_6 = arith.constant 0 : index
    %3 = vector.load %arg4[%c0_4, %c17, %c0_5, %c0_6] : memref<2x18x18x8xf32, #tpu.memory_space<vmem>>, vector<2x1x18x8xf32>
    tpu.vector_store %arg4[%c0_4, %c17, %c0_5, %c0_6], %2 {strides = array<i32>} : memref<2x18x18x8xf32, #tpu.memory_space<vmem>>, vector<2x1x18x8xf32>,
    %cst_7 = arith.constant 0.000000e+00 : f32
    %4 = vector.broadcast %cst_7 : f32 to vector<2x16x1x8xf32>
    %c0_8 = arith.constant 0 : index
    %c1 = arith.constant 1 : index
    %c0_9 = arith.constant 0 : index
    %c0_10 = arith.constant 0 : index
    %5 = vector.load %arg4[%c0_8, %c1, %c0_9, %c0_10] : memref<2x18x18x8xf32, #tpu.memory_space<vmem>>, vector<2x16x1x8xf32>
    tpu.vector_store %arg4[%c0_8, %c1, %c0_9, %c0_10], %4 {strides = array<i32>} : memref<2x18x18x8xf32, #tpu.memory_space<vmem>>, vector<2x16x1x8xf32>,
    %cst_11 = arith.constant 0.000000e+00 : f32
    %6 = vector.broadcast %cst_11 : f32 to vector<2x16x1x8xf32>
    %c0_12 = arith.constant 0 : index
    %c1_13 = arith.constant 1 : index
    %c17_14 = arith.constant 17 : index
    %c0_15 = arith.constant 0 : index
    %7 = vector.load %arg4[%c0_12, %c1_13, %c17_14, %c0_15] : memref<2x18x18x8xf32, #tpu.memory_space<vmem>>, vector<2x16x1x8xf32>
    tpu.vector_store %arg4[%c0_12, %c1_13, %c17_14, %c0_15], %6 {strides = array<i32>} : memref<2x18x18x8xf32, #tpu.memory_space<vmem>>, vector<2x16x1x8xf32>,
    %cst_16 = arith.constant 0.000000e+00 : f32
    %8 = vector.broadcast %cst_16 : f32 to vector<2x1x18x8xf32>
    %c0_17 = arith.constant 0 : index
    %c0_18 = arith.constant 0 : index
    %c0_19 = arith.constant 0 : index
    %c0_20 = arith.constant 0 : index
    %9 = vector.load %arg5[%c0_17, %c0_18, %c0_19, %c0_20] : memref<2x10x18x8xf32, #tpu.memory_space<vmem>>, vector<2x1x18x8xf32>
    tpu.vector_store %arg5[%c0_17, %c0_18, %c0_19, %c0_20], %8 {strides = array<i32>} : memref<2x10x18x8xf32, #tpu.memory_space<vmem>>, vector<2x1x18x8xf32>,
    %cst_21 = arith.constant 0.000000e+00 : f32
    %10 = vector.broadcast %cst_21 : f32 to vector<2x1x18x8xf32>
    %c0_22 = arith.constant 0 : index
    %c9 = arith.constant 9 : index
    %c0_23 = arith.constant 0 : index
    %c0_24 = arith.constant 0 : index
    %11 = vector.load %arg5[%c0_22, %c9, %c0_23, %c0_24] : memref<2x10x18x8xf32, #tpu.memory_space<vmem>>, vector<2x1x18x8xf32>
    tpu.vector_store %arg5[%c0_22, %c9, %c0_23, %c0_24], %10 {strides = array<i32>} : memref<2x10x18x8xf32, #tpu.memory_space<vmem>>, vector<2x1x18x8xf32>,
    %cst_25 = arith.constant 0.000000e+00 : f32
    %12 = vector.broadcast %cst_25 : f32 to vector<2x8x1x8xf32>
    %c0_26 = arith.constant 0 : index
    %c1_27 = arith.constant 1 : index
    %c0_28 = arith.constant 0 : index
    %c0_29 = arith.constant 0 : index
    %13 = vector.load %arg5[%c0_26, %c1_27, %c0_28, %c0_29] : memref<2x10x18x8xf32, #tpu.memory_space<vmem>>, vector<2x8x1x8xf32>
    tpu.vector_store %arg5[%c0_26, %c1_27, %c0_28, %c0_29], %12 {strides = array<i32>} : memref<2x10x18x8xf32, #tpu.memory_space<vmem>>, vector<2x8x1x8xf32>,
    %cst_30 = arith.constant 0.000000e+00 : f32
    %14 = vector.broadcast %cst_30 : f32 to vector<2x8x9x8xf32>
    %c0_31 = arith.constant 0 : index
    %c1_32 = arith.constant 1 : index
    %c9_33 = arith.constant 9 : index
    %c0_34 = arith.constant 0 : index
    %15 = vector.load %arg5[%c0_31, %c1_32, %c9_33, %c0_34] : memref<2x10x18x8xf32, #tpu.memory_space<vmem>>, vector<2x8x9x8xf32>
    tpu.vector_store %arg5[%c0_31, %c1_32, %c9_33, %c0_34], %14 {strides = array<i32>} : memref<2x10x18x8xf32, #tpu.memory_space<vmem>>, vector<2x8x9x8xf32>,
    %cst_35 = arith.constant 0.000000e+00 : f32
    %16 = vector.broadcast %cst_35 : f32 to vector<2x1x18x16xf32>
    %c0_36 = arith.constant 0 : index
    %c0_37 = arith.constant 0 : index
    %c0_38 = arith.constant 0 : index
    %c0_39 = arith.constant 0 : index
    %17 = vector.load %arg6[%c0_36, %c0_37, %c0_38, %c0_39] : memref<2x6x18x16xf32, #tpu.memory_space<vmem>>, vector<2x1x18x16xf32>
    tpu.vector_store %arg6[%c0_36, %c0_37, %c0_38, %c0_39], %16 {strides = array<i32>} : memref<2x6x18x16xf32, #tpu.memory_space<vmem>>, vector<2x1x18x16xf32>,
    %cst_40 = arith.constant 0.000000e+00 : f32
    %18 = vector.broadcast %cst_40 : f32 to vector<2x1x18x16xf32>
    %c0_41 = arith.constant 0 : index
    %c5 = arith.constant 5 : index
    %c0_42 = arith.constant 0 : index
    %c0_43 = arith.constant 0 : index
    %19 = vector.load %arg6[%c0_41, %c5, %c0_42, %c0_43] : memref<2x6x18x16xf32, #tpu.memory_space<vmem>>, vector<2x1x18x16xf32>
    tpu.vector_store %arg6[%c0_41, %c5, %c0_42, %c0_43], %18 {strides = array<i32>} : memref<2x6x18x16xf32, #tpu.memory_space<vmem>>, vector<2x1x18x16xf32>,
    %cst_44 = arith.constant 0.000000e+00 : f32
    %20 = vector.broadcast %cst_44 : f32 to vector<2x4x1x16xf32>
    %c0_45 = arith.constant 0 : index
    %c1_46 = arith.constant 1 : index
    %c0_47 = arith.constant 0 : index
    %c0_48 = arith.constant 0 : index
    %21 = vector.load %arg6[%c0_45, %c1_46, %c0_47, %c0_48] : memref<2x6x18x16xf32, #tpu.memory_space<vmem>>, vector<2x4x1x16xf32>
    tpu.vector_store %arg6[%c0_45, %c1_46, %c0_47, %c0_48], %20 {strides = array<i32>} : memref<2x6x18x16xf32, #tpu.memory_space<vmem>>, vector<2x4x1x16xf32>,
    %cst_49 = arith.constant 0.000000e+00 : f32
    %22 = vector.broadcast %cst_49 : f32 to vector<2x4x13x16xf32>
    %c0_50 = arith.constant 0 : index
    %c1_51 = arith.constant 1 : index
    %c5_52 = arith.constant 5 : index
    %c0_53 = arith.constant 0 : index
    %23 = vector.load %arg6[%c0_50, %c1_51, %c5_52, %c0_53] : memref<2x6x18x16xf32, #tpu.memory_space<vmem>>, vector<2x4x13x16xf32>
    tpu.vector_store %arg6[%c0_50, %c1_51, %c5_52, %c0_53], %22 {strides = array<i32>} : memref<2x6x18x16xf32, #tpu.memory_space<vmem>>, vector<2x4x13x16xf32>,
    %cst_54 = arith.constant 0.000000e+00 : f32
    %24 = vector.broadcast %cst_54 : f32 to vector<2x1x11x32xf32>
    %c0_55 = arith.constant 0 : index
    %c0_56 = arith.constant 0 : index
    %c0_57 = arith.constant 0 : index
    %c0_58 = arith.constant 0 : index
    %25 = vector.load %arg7[%c0_55, %c0_56, %c0_57, %c0_58] : memref<2x4x11x32xf32, #tpu.memory_space<vmem>>, vector<2x1x11x32xf32>
    tpu.vector_store %arg7[%c0_55, %c0_56, %c0_57, %c0_58], %24 {strides = array<i32>} : memref<2x4x11x32xf32, #tpu.memory_space<vmem>>, vector<2x1x11x32xf32>,
    %cst_59 = arith.constant 0.000000e+00 : f32
    %26 = vector.broadcast %cst_59 : f32 to vector<2x1x11x32xf32>
    %c0_60 = arith.constant 0 : index
    %c3 = arith.constant 3 : index
    %c0_61 = arith.constant 0 : index
    %c0_62 = arith.constant 0 : index
    %27 = vector.load %arg7[%c0_60, %c3, %c0_61, %c0_62] : memref<2x4x11x32xf32, #tpu.memory_space<vmem>>, vector<2x1x11x32xf32>
    tpu.vector_store %arg7[%c0_60, %c3, %c0_61, %c0_62], %26 {strides = array<i32>} : memref<2x4x11x32xf32, #tpu.memory_space<vmem>>, vector<2x1x11x32xf32>,
    %cst_63 = arith.constant 0.000000e+00 : f32
    %28 = vector.broadcast %cst_63 : f32 to vector<2x2x1x32xf32>
    %c0_64 = arith.constant 0 : index
    %c1_65 = arith.constant 1 : index
    %c0_66 = arith.constant 0 : index
    %c0_67 = arith.constant 0 : index
    %29 = vector.load %arg7[%c0_64, %c1_65, %c0_66, %c0_67] : memref<2x4x11x32xf32, #tpu.memory_space<vmem>>, vector<2x2x1x32xf32>
    tpu.vector_store %arg7[%c0_64, %c1_65, %c0_66, %c0_67], %28 {strides = array<i32>} : memref<2x4x11x32xf32, #tpu.memory_space<vmem>>, vector<2x2x1x32xf32>,
    %cst_68 = arith.constant 0.000000e+00 : f32
    %30 = vector.broadcast %cst_68 : f32 to vector<2x2x8x32xf32>
    %c0_69 = arith.constant 0 : index
    %c1_70 = arith.constant 1 : index
    %c3_71 = arith.constant 3 : index
    %c0_72 = arith.constant 0 : index
    %31 = vector.load %arg7[%c0_69, %c1_70, %c3_71, %c0_72] : memref<2x4x11x32xf32, #tpu.memory_space<vmem>>, vector<2x2x8x32xf32>
    tpu.vector_store %arg7[%c0_69, %c1_70, %c3_71, %c0_72], %30 {strides = array<i32>} : memref<2x4x11x32xf32, #tpu.memory_space<vmem>>, vector<2x2x8x32xf32>,
    %c0_73 = arith.constant 0 : index
    %c0_74 = arith.constant 0 : index
    %c0_75 = arith.constant 0 : index
    %c0_76 = arith.constant 0 : index
    %32 = vector.load %arg0[%c0_73, %c0_74, %c0_75, %c0_76] : memref<2x16x16x8xf32, #tpu.memory_space<vmem>>, vector<2x16x16x8xf32>
    %c0_77 = arith.constant 0 : index
    %c1_78 = arith.constant 1 : index
    %c1_79 = arith.constant 1 : index
    %c0_80 = arith.constant 0 : index
    %33 = vector.load %arg4[%c0_77, %c1_78, %c1_79, %c0_80] : memref<2x18x18x8xf32, #tpu.memory_space<vmem>>, vector<2x16x16x8xf32>
    tpu.vector_store %arg4[%c0_77, %c1_78, %c1_79, %c0_80], %32 {strides = array<i32>} : memref<2x18x18x8xf32, #tpu.memory_space<vmem>>, vector<2x16x16x8xf32>,
    %c0_81 = arith.constant 0 : index
    %c0_82 = arith.constant 0 : index
    %c0_83 = arith.constant 0 : index
    %c0_84 = arith.constant 0 : index
    %34 = tpu.strided_load %arg4[%c0_81, %c0_82, %c0_83, %c0_84] {strides = array<i32: 1, 2, 2, 1>} : memref<2x18x18x8xf32, #tpu.memory_space<vmem>>, vector<2x8x8x8xf32>
    %35 = vector.shape_cast %34 : vector<2x8x8x8xf32> to vector<128x8xf32>
    %c0_85 = arith.constant 0 : index
    %c0_86 = arith.constant 0 : index
    %c1_87 = arith.constant 1 : index
    %c0_88 = arith.constant 0 : index
    %36 = tpu.strided_load %arg4[%c0_85, %c0_86, %c1_87, %c0_88] {strides = array<i32: 1, 2, 2, 1>} : memref<2x18x18x8xf32, #tpu.memory_space<vmem>>, vector<2x8x8x8xf32>
    %37 = vector.shape_cast %36 : vector<2x8x8x8xf32> to vector<128x8xf32>
    %c0_89 = arith.constant 0 : index
    %c0_90 = arith.constant 0 : index
    %c2 = arith.constant 2 : index
    %c0_91 = arith.constant 0 : index
    %38 = tpu.strided_load %arg4[%c0_89, %c0_90, %c2, %c0_91] {strides = array<i32: 1, 2, 2, 1>} : memref<2x18x18x8xf32, #tpu.memory_space<vmem>>, vector<2x8x8x8xf32>
    %39 = vector.shape_cast %38 : vector<2x8x8x8xf32> to vector<128x8xf32>
    %c0_92 = arith.constant 0 : index
    %c0_93 = arith.constant 0 : index
    %c3_94 = arith.constant 3 : index
    %c0_95 = arith.constant 0 : index
    %40 = tpu.strided_load %arg4[%c0_92, %c0_93, %c3_94, %c0_95] {strides = array<i32: 1, 2, 2, 1>} : memref<2x18x18x8xf32, #tpu.memory_space<vmem>>, vector<2x8x8x8xf32>
    %41 = vector.shape_cast %40 : vector<2x8x8x8xf32> to vector<128x8xf32>
    %c0_96 = arith.constant 0 : index
    %c1_97 = arith.constant 1 : index
    %c0_98 = arith.constant 0 : index
    %c0_99 = arith.constant 0 : index
    %42 = tpu.strided_load %arg4[%c0_96, %c1_97, %c0_98, %c0_99] {strides = array<i32: 1, 2, 2, 1>} : memref<2x18x18x8xf32, #tpu.memory_space<vmem>>, vector<2x8x8x8xf32>
    %43 = vector.shape_cast %42 : vector<2x8x8x8xf32> to vector<128x8xf32>
    %c0_100 = arith.constant 0 : index
    %c1_101 = arith.constant 1 : index
    %c1_102 = arith.constant 1 : index
    %c0_103 = arith.constant 0 : index
    %44 = tpu.strided_load %arg4[%c0_100, %c1_101, %c1_102, %c0_103] {strides = array<i32: 1, 2, 2, 1>} : memref<2x18x18x8xf32, #tpu.memory_space<vmem>>, vector<2x8x8x8xf32>
    %45 = vector.shape_cast %44 : vector<2x8x8x8xf32> to vector<128x8xf32>
    %c0_104 = arith.constant 0 : index
    %c1_105 = arith.constant 1 : index
    %c2_106 = arith.constant 2 : index
    %c0_107 = arith.constant 0 : index
    %46 = tpu.strided_load %arg4[%c0_104, %c1_105, %c2_106, %c0_107] {strides = array<i32: 1, 2, 2, 1>} : memref<2x18x18x8xf32, #tpu.memory_space<vmem>>, vector<2x8x8x8xf32>
    %47 = vector.shape_cast %46 : vector<2x8x8x8xf32> to vector<128x8xf32>
    %c0_108 = arith.constant 0 : index
    %c1_109 = arith.constant 1 : index
    %c3_110 = arith.constant 3 : index
    %c0_111 = arith.constant 0 : index
    %48 = tpu.strided_load %arg4[%c0_108, %c1_109, %c3_110, %c0_111] {strides = array<i32: 1, 2, 2, 1>} : memref<2x18x18x8xf32, #tpu.memory_space<vmem>>, vector<2x8x8x8xf32>
    %49 = vector.shape_cast %48 : vector<2x8x8x8xf32> to vector<128x8xf32>
    %c0_112 = arith.constant 0 : index
    %c2_113 = arith.constant 2 : index
    %c0_114 = arith.constant 0 : index
    %c0_115 = arith.constant 0 : index
    %50 = tpu.strided_load %arg4[%c0_112, %c2_113, %c0_114, %c0_115] {strides = array<i32: 1, 2, 2, 1>} : memref<2x18x18x8xf32, #tpu.memory_space<vmem>>, vector<2x8x8x8xf32>
    %51 = vector.shape_cast %50 : vector<2x8x8x8xf32> to vector<128x8xf32>
    %c0_116 = arith.constant 0 : index
    %c2_117 = arith.constant 2 : index
    %c1_118 = arith.constant 1 : index
    %c0_119 = arith.constant 0 : index
    %52 = tpu.strided_load %arg4[%c0_116, %c2_117, %c1_118, %c0_119] {strides = array<i32: 1, 2, 2, 1>} : memref<2x18x18x8xf32, #tpu.memory_space<vmem>>, vector<2x8x8x8xf32>
    %53 = vector.shape_cast %52 : vector<2x8x8x8xf32> to vector<128x8xf32>
    %c0_120 = arith.constant 0 : index
    %c2_121 = arith.constant 2 : index
    %c2_122 = arith.constant 2 : index
    %c0_123 = arith.constant 0 : index
    %54 = tpu.strided_load %arg4[%c0_120, %c2_121, %c2_122, %c0_123] {strides = array<i32: 1, 2, 2, 1>} : memref<2x18x18x8xf32, #tpu.memory_space<vmem>>, vector<2x8x8x8xf32>
    %55 = vector.shape_cast %54 : vector<2x8x8x8xf32> to vector<128x8xf32>
    %c0_124 = arith.constant 0 : index
    %c2_125 = arith.constant 2 : index
    %c3_126 = arith.constant 3 : index
    %c0_127 = arith.constant 0 : index
    %56 = tpu.strided_load %arg4[%c0_124, %c2_125, %c3_126, %c0_127] {strides = array<i32: 1, 2, 2, 1>} : memref<2x18x18x8xf32, #tpu.memory_space<vmem>>, vector<2x8x8x8xf32>
    %57 = vector.shape_cast %56 : vector<2x8x8x8xf32> to vector<128x8xf32>
    %c0_128 = arith.constant 0 : index
    %c3_129 = arith.constant 3 : index
    %c0_130 = arith.constant 0 : index
    %c0_131 = arith.constant 0 : index
    %58 = tpu.strided_load %arg4[%c0_128, %c3_129, %c0_130, %c0_131] {strides = array<i32: 1, 2, 2, 1>} : memref<2x18x18x8xf32, #tpu.memory_space<vmem>>, vector<2x8x8x8xf32>
    %59 = vector.shape_cast %58 : vector<2x8x8x8xf32> to vector<128x8xf32>
    %c0_132 = arith.constant 0 : index
    %c3_133 = arith.constant 3 : index
    %c1_134 = arith.constant 1 : index
    %c0_135 = arith.constant 0 : index
    %60 = tpu.strided_load %arg4[%c0_132, %c3_133, %c1_134, %c0_135] {strides = array<i32: 1, 2, 2, 1>} : memref<2x18x18x8xf32, #tpu.memory_space<vmem>>, vector<2x8x8x8xf32>
    %61 = vector.shape_cast %60 : vector<2x8x8x8xf32> to vector<128x8xf32>
    %c0_136 = arith.constant 0 : index
    %c3_137 = arith.constant 3 : index
    %c2_138 = arith.constant 2 : index
    %c0_139 = arith.constant 0 : index
    %62 = tpu.strided_load %arg4[%c0_136, %c3_137, %c2_138, %c0_139] {strides = array<i32: 1, 2, 2, 1>} : memref<2x18x18x8xf32, #tpu.memory_space<vmem>>, vector<2x8x8x8xf32>
    %63 = vector.shape_cast %62 : vector<2x8x8x8xf32> to vector<128x8xf32>
    %c0_140 = arith.constant 0 : index
    %c3_141 = arith.constant 3 : index
    %c3_142 = arith.constant 3 : index
    %c0_143 = arith.constant 0 : index
    %64 = tpu.strided_load %arg4[%c0_140, %c3_141, %c3_142, %c0_143] {strides = array<i32: 1, 2, 2, 1>} : memref<2x18x18x8xf32, #tpu.memory_space<vmem>>, vector<2x8x8x8xf32>
    %65 = vector.shape_cast %64 : vector<2x8x8x8xf32> to vector<128x8xf32>
    %66 = tpu.concatenate %35, %37, %39, %41, %43, %45, %47, %49, %51, %53, %55, %57, %59, %61, %63, %65 in 1 : vector<128x8xf32>, vector<128x8xf32>, vector<128x8xf32>, vector<128x8xf32>, vector<128x8xf32>, vector<128x8xf32>, vector<128x8xf32>, vector<128x8xf32>, vector<128x8xf32>, vector<128x8xf32>, vector<128x8xf32>, vector<128x8xf32>, vector<128x8xf32>, vector<128x8xf32>, vector<128x8xf32>, vector<128x8xf32> -> vector<128x128xf32>
    %67 = arith.truncf %66 : vector<128x128xf32> to vector<128x128xbf16>
    %c0_144 = arith.constant 0 : index
    %c0_145 = arith.constant 0 : index
    %68 = vector.load %arg1[%c0_144, %c0_145] : memref<1024x128xbf16, #tpu.memory_space<vmem>>, vector<128x128xbf16>
    %cst_146 = arith.constant dense<0.000000e+00> : vector<128x128xf32>
    %69 = tpu.matmul %67, %68, %cst_146 {dimension_numbers = #tpu.dot_dimension_numbers<[1], [0], [0], [1], [0, 0, 1, 1], [], []>} : vector<128x128xbf16>, vector<128x128xbf16>, vector<128x128xf32> -> vector<128x128xf32>
    %c0_147 = arith.constant 0 : index
    %c0_148 = arith.constant 0 : index
    %70 = vector.load %arg2[%c0_147, %c0_148] : memref<12x128xf32, #tpu.memory_space<vmem>>, vector<1x128xf32>
    %71 = vector.broadcast %70 : vector<1x128xf32> to vector<128x128xf32>
    %72 = arith.addf %69, %71 : vector<128x128xf32>
    %cst_149 = arith.constant 2.000000e-01 : f32
    %73 = vector.broadcast %cst_149 : f32 to vector<128x128xf32>
    %74 = arith.mulf %73, %72 : vector<128x128xf32>
    %75 = arith.maximumf %72, %74 : vector<128x128xf32>
    %76 = vector.extract_strided_slice %75 {offsets = [0, 0], sizes = [128, 8], strides = [1, 1]} : vector<128x128xf32> to vector<128x8xf32>
    %77 = vector.shape_cast %76 : vector<128x8xf32> to vector<2x8x8x8xf32>
    %c0_150 = arith.constant 0 : index
    %c1_151 = arith.constant 1 : index
    %c1_152 = arith.constant 1 : index
    %c0_153 = arith.constant 0 : index
    %78 = vector.load %arg5[%c0_150, %c1_151, %c1_152, %c0_153] : memref<2x10x18x8xf32, #tpu.memory_space<vmem>>, vector<2x8x8x8xf32>
    tpu.vector_store %arg5[%c0_150, %c1_151, %c1_152, %c0_153], %77 {strides = array<i32>} : memref<2x10x18x8xf32, #tpu.memory_space<vmem>>, vector<2x8x8x8xf32>,
    %c0_154 = arith.constant 0 : index
    %c0_155 = arith.constant 0 : index
    %c0_156 = arith.constant 0 : index
    %c0_157 = arith.constant 0 : index
    %79 = tpu.strided_load %arg5[%c0_154, %c0_155, %c0_156, %c0_157] {strides = array<i32: 1, 2, 2, 1>} : memref<2x10x18x8xf32, #tpu.memory_space<vmem>>, vector<2x4x8x8xf32>
    %80 = vector.shape_cast %79 : vector<2x4x8x8xf32> to vector<64x8xf32>
    %c0_158 = arith.constant 0 : index
    %c0_159 = arith.constant 0 : index
    %c1_160 = arith.constant 1 : index
    %c0_161 = arith.constant 0 : index
    %81 = tpu.strided_load %arg5[%c0_158, %c0_159, %c1_160, %c0_161] {strides = array<i32: 1, 2, 2, 1>} : memref<2x10x18x8xf32, #tpu.memory_space<vmem>>, vector<2x4x8x8xf32>
    %82 = vector.shape_cast %81 : vector<2x4x8x8xf32> to vector<64x8xf32>
    %c0_162 = arith.constant 0 : index
    %c0_163 = arith.constant 0 : index
    %c2_164 = arith.constant 2 : index
    %c0_165 = arith.constant 0 : index
    %83 = tpu.strided_load %arg5[%c0_162, %c0_163, %c2_164, %c0_165] {strides = array<i32: 1, 2, 2, 1>} : memref<2x10x18x8xf32, #tpu.memory_space<vmem>>, vector<2x4x8x8xf32>
    %84 = vector.shape_cast %83 : vector<2x4x8x8xf32> to vector<64x8xf32>
    %c0_166 = arith.constant 0 : index
    %c0_167 = arith.constant 0 : index
    %c3_168 = arith.constant 3 : index
    %c0_169 = arith.constant 0 : index
    %85 = tpu.strided_load %arg5[%c0_166, %c0_167, %c3_168, %c0_169] {strides = array<i32: 1, 2, 2, 1>} : memref<2x10x18x8xf32, #tpu.memory_space<vmem>>, vector<2x4x8x8xf32>
    %86 = vector.shape_cast %85 : vector<2x4x8x8xf32> to vector<64x8xf32>
    %c0_170 = arith.constant 0 : index
    %c1_171 = arith.constant 1 : index
    %c0_172 = arith.constant 0 : index
    %c0_173 = arith.constant 0 : index
    %87 = tpu.strided_load %arg5[%c0_170, %c1_171, %c0_172, %c0_173] {strides = array<i32: 1, 2, 2, 1>} : memref<2x10x18x8xf32, #tpu.memory_space<vmem>>, vector<2x4x8x8xf32>
    %88 = vector.shape_cast %87 : vector<2x4x8x8xf32> to vector<64x8xf32>
    %c0_174 = arith.constant 0 : index
    %c1_175 = arith.constant 1 : index
    %c1_176 = arith.constant 1 : index
    %c0_177 = arith.constant 0 : index
    %89 = tpu.strided_load %arg5[%c0_174, %c1_175, %c1_176, %c0_177] {strides = array<i32: 1, 2, 2, 1>} : memref<2x10x18x8xf32, #tpu.memory_space<vmem>>, vector<2x4x8x8xf32>
    %90 = vector.shape_cast %89 : vector<2x4x8x8xf32> to vector<64x8xf32>
    %c0_178 = arith.constant 0 : index
    %c1_179 = arith.constant 1 : index
    %c2_180 = arith.constant 2 : index
    %c0_181 = arith.constant 0 : index
    %91 = tpu.strided_load %arg5[%c0_178, %c1_179, %c2_180, %c0_181] {strides = array<i32: 1, 2, 2, 1>} : memref<2x10x18x8xf32, #tpu.memory_space<vmem>>, vector<2x4x8x8xf32>
    %92 = vector.shape_cast %91 : vector<2x4x8x8xf32> to vector<64x8xf32>
    %c0_182 = arith.constant 0 : index
    %c1_183 = arith.constant 1 : index
    %c3_184 = arith.constant 3 : index
    %c0_185 = arith.constant 0 : index
    %93 = tpu.strided_load %arg5[%c0_182, %c1_183, %c3_184, %c0_185] {strides = array<i32: 1, 2, 2, 1>} : memref<2x10x18x8xf32, #tpu.memory_space<vmem>>, vector<2x4x8x8xf32>
    %94 = vector.shape_cast %93 : vector<2x4x8x8xf32> to vector<64x8xf32>
    %c0_186 = arith.constant 0 : index
    %c2_187 = arith.constant 2 : index
    %c0_188 = arith.constant 0 : index
    %c0_189 = arith.constant 0 : index
    %95 = tpu.strided_load %arg5[%c0_186, %c2_187, %c0_188, %c0_189] {strides = array<i32: 1, 2, 2, 1>} : memref<2x10x18x8xf32, #tpu.memory_space<vmem>>, vector<2x4x8x8xf32>
    %96 = vector.shape_cast %95 : vector<2x4x8x8xf32> to vector<64x8xf32>
    %c0_190 = arith.constant 0 : index
    %c2_191 = arith.constant 2 : index
    %c1_192 = arith.constant 1 : index
    %c0_193 = arith.constant 0 : index
    %97 = tpu.strided_load %arg5[%c0_190, %c2_191, %c1_192, %c0_193] {strides = array<i32: 1, 2, 2, 1>} : memref<2x10x18x8xf32, #tpu.memory_space<vmem>>, vector<2x4x8x8xf32>
    %98 = vector.shape_cast %97 : vector<2x4x8x8xf32> to vector<64x8xf32>
    %c0_194 = arith.constant 0 : index
    %c2_195 = arith.constant 2 : index
    %c2_196 = arith.constant 2 : index
    %c0_197 = arith.constant 0 : index
    %99 = tpu.strided_load %arg5[%c0_194, %c2_195, %c2_196, %c0_197] {strides = array<i32: 1, 2, 2, 1>} : memref<2x10x18x8xf32, #tpu.memory_space<vmem>>, vector<2x4x8x8xf32>
    %100 = vector.shape_cast %99 : vector<2x4x8x8xf32> to vector<64x8xf32>
    %c0_198 = arith.constant 0 : index
    %c2_199 = arith.constant 2 : index
    %c3_200 = arith.constant 3 : index
    %c0_201 = arith.constant 0 : index
    %101 = tpu.strided_load %arg5[%c0_198, %c2_199, %c3_200, %c0_201] {strides = array<i32: 1, 2, 2, 1>} : memref<2x10x18x8xf32, #tpu.memory_space<vmem>>, vector<2x4x8x8xf32>
    %102 = vector.shape_cast %101 : vector<2x4x8x8xf32> to vector<64x8xf32>
    %c0_202 = arith.constant 0 : index
    %c3_203 = arith.constant 3 : index
    %c0_204 = arith.constant 0 : index
    %c0_205 = arith.constant 0 : index
    %103 = tpu.strided_load %arg5[%c0_202, %c3_203, %c0_204, %c0_205] {strides = array<i32: 1, 2, 2, 1>} : memref<2x10x18x8xf32, #tpu.memory_space<vmem>>, vector<2x4x8x8xf32>
    %104 = vector.shape_cast %103 : vector<2x4x8x8xf32> to vector<64x8xf32>
    %c0_206 = arith.constant 0 : index
    %c3_207 = arith.constant 3 : index
    %c1_208 = arith.constant 1 : index
    %c0_209 = arith.constant 0 : index
    %105 = tpu.strided_load %arg5[%c0_206, %c3_207, %c1_208, %c0_209] {strides = array<i32: 1, 2, 2, 1>} : memref<2x10x18x8xf32, #tpu.memory_space<vmem>>, vector<2x4x8x8xf32>
    %106 = vector.shape_cast %105 : vector<2x4x8x8xf32> to vector<64x8xf32>
    %c0_210 = arith.constant 0 : index
    %c3_211 = arith.constant 3 : index
    %c2_212 = arith.constant 2 : index
    %c0_213 = arith.constant 0 : index
    %107 = tpu.strided_load %arg5[%c0_210, %c3_211, %c2_212, %c0_213] {strides = array<i32: 1, 2, 2, 1>} : memref<2x10x18x8xf32, #tpu.memory_space<vmem>>, vector<2x4x8x8xf32>
    %108 = vector.shape_cast %107 : vector<2x4x8x8xf32> to vector<64x8xf32>
    %c0_214 = arith.constant 0 : index
    %c3_215 = arith.constant 3 : index
    %c3_216 = arith.constant 3 : index
    %c0_217 = arith.constant 0 : index
    %109 = tpu.strided_load %arg5[%c0_214, %c3_215, %c3_216, %c0_217] {strides = array<i32: 1, 2, 2, 1>} : memref<2x10x18x8xf32, #tpu.memory_space<vmem>>, vector<2x4x8x8xf32>
    %110 = vector.shape_cast %109 : vector<2x4x8x8xf32> to vector<64x8xf32>
    %111 = tpu.concatenate %80, %82, %84, %86, %88, %90, %92, %94, %96, %98, %100, %102, %104, %106, %108, %110 in 1 : vector<64x8xf32>, vector<64x8xf32>, vector<64x8xf32>, vector<64x8xf32>, vector<64x8xf32>, vector<64x8xf32>, vector<64x8xf32>, vector<64x8xf32>, vector<64x8xf32>, vector<64x8xf32>, vector<64x8xf32>, vector<64x8xf32>, vector<64x8xf32>, vector<64x8xf32>, vector<64x8xf32>, vector<64x8xf32> -> vector<64x128xf32>
    %112 = arith.truncf %111 : vector<64x128xf32> to vector<64x128xbf16>
    %c128 = arith.constant 128 : index
    %c0_218 = arith.constant 0 : index
    %113 = vector.load %arg1[%c128, %c0_218] : memref<1024x128xbf16, #tpu.memory_space<vmem>>, vector<128x128xbf16>
    %cst_219 = arith.constant dense<0.000000e+00> : vector<64x128xf32>
    %114 = tpu.matmul %112, %113, %cst_219 {dimension_numbers = #tpu.dot_dimension_numbers<[1], [0], [0], [1], [0, 0, 1, 1], [], []>} : vector<64x128xbf16>, vector<128x128xbf16>, vector<64x128xf32> -> vector<64x128xf32>
    %c3_220 = arith.constant 3 : index
    %c0_221 = arith.constant 0 : index
    %115 = vector.load %arg2[%c3_220, %c0_221] : memref<12x128xf32, #tpu.memory_space<vmem>>, vector<1x128xf32>
    %116 = vector.broadcast %115 : vector<1x128xf32> to vector<64x128xf32>
    %117 = arith.addf %114, %116 : vector<64x128xf32>
    %118 = tpu.iota {dimensions = array<i32: 0>} : vector<64x1xi32>
    %c8_i32 = arith.constant 8 : i32
    %c0_i32 = arith.constant 0 : i32
    %119 = arith.cmpi eq, %c8_i32, %c0_i32 : i32
    %c1_i32 = arith.constant 1 : i32
    %120 = arith.select %119, %c1_i32, %c8_i32 : i32
    %121 = vector.broadcast %120 : i32 to vector<64x1xi32>
    %122 = arith.remsi %118, %121 : vector<64x1xi32>
    %c0_i32_222 = arith.constant 0 : i32
    %123 = vector.broadcast %c0_i32_222 : i32 to vector<64x1xi32>
    %124 = arith.cmpi ne, %122, %123 : vector<64x1xi32>
    %c0_i32_223 = arith.constant 0 : i32
    %125 = vector.broadcast %c0_i32_223 : i32 to vector<64x1xi32>
    %126 = arith.cmpi slt, %122, %125 : vector<64x1xi32>
    %c0_i32_224 = arith.constant 0 : i32
    %127 = arith.cmpi slt, %120, %c0_i32_224 : i32
    %128 = vector.broadcast %127 : i1 to vector<64x1xi1>
    %129 = vector.broadcast %128 : vector<64x1xi1> to vector<64x1xi1>
    %130 = arith.xori %126, %129 : vector<64x1xi1>
    %131 = arith.andi %130, %124 : vector<64x1xi1>
    %132 = vector.broadcast %120 : i32 to vector<64x1xi32>
    %133 = arith.addi %122, %132 : vector<64x1xi32>
    %134 = arith.select %131, %133, %122 : vector<64x1xi1>, vector<64x1xi32>
    %c4_i32 = arith.constant 4 : i32
    %135 = vector.broadcast %c4_i32 : i32 to vector<64x1xi32>
    %136 = arith.cmpi slt, %134, %135 : vector<64x1xi32>
    %137 = arith.extui %136 : vector<64x1xi1> to vector<64x1xi32>
    %138 = arith.sitofp %137 : vector<64x1xi32> to vector<64x1xf32>
    %c4 = arith.constant 4 : index
    %c0_225 = arith.constant 0 : index
    %139 = vector.load %arg2[%c4, %c0_225] : memref<12x128xf32, #tpu.memory_space<vmem>>, vector<1x128xf32>
    %c5_226 = arith.constant 5 : index
    %c0_227 = arith.constant 0 : index
    %140 = vector.load %arg2[%c5_226, %c0_227] : memref<12x128xf32, #tpu.memory_space<vmem>>, vector<1x128xf32>
    %141 = vector.broadcast %138 : vector<64x1xf32> to vector<64x128xf32>
    %142 = arith.mulf %117, %141 : vector<64x128xf32>
    %cst_228 = arith.constant dense<0.000000e+00> : vector<128xf32>
    %143 = vector.multi_reduction <add>, %142, %cst_228 [0] : vector<64x128xf32> to vector<128xf32>
    %144 = vector.shape_cast %143 : vector<128xf32> to vector<1x128xf32>
    %cst_229 = arith.constant 3.125000e-02 : f32
    %145 = vector.broadcast %cst_229 : f32 to vector<1x128xf32>
    %146 = arith.mulf %144, %145 : vector<1x128xf32>
    %147 = vector.broadcast %146 : vector<1x128xf32> to vector<64x128xf32>
    %148 = arith.subf %117, %147 : vector<64x128xf32>
    %149 = vector.broadcast %138 : vector<64x1xf32> to vector<64x128xf32>
    %150 = arith.mulf %148, %149 : vector<64x128xf32>
    %151 = arith.mulf %150, %150 : vector<64x128xf32>
    %cst_230 = arith.constant dense<0.000000e+00> : vector<128xf32>
    %152 = vector.multi_reduction <add>, %151, %cst_230 [0] : vector<64x128xf32> to vector<128xf32>
    %153 = vector.shape_cast %152 : vector<128xf32> to vector<1x128xf32>
    %cst_231 = arith.constant 3.125000e-02 : f32
    %154 = vector.broadcast %cst_231 : f32 to vector<1x128xf32>
    %155 = arith.mulf %153, %154 : vector<1x128xf32>
    %156 = vector.broadcast %146 : vector<1x128xf32> to vector<64x128xf32>
    %157 = arith.subf %117, %156 : vector<64x128xf32>
    %cst_232 = arith.constant 9.99999974E-6 : f32
    %158 = vector.broadcast %cst_232 : f32 to vector<1x128xf32>
    %159 = arith.addf %155, %158 : vector<1x128xf32>
    %160 = math.rsqrt %159 : vector<1x128xf32>
    %161 = arith.mulf %139, %160 : vector<1x128xf32>
    %162 = vector.broadcast %161 : vector<1x128xf32> to vector<64x128xf32>
    %163 = arith.mulf %157, %162 : vector<64x128xf32>
    %164 = vector.broadcast %140 : vector<1x128xf32> to vector<64x128xf32>
    %165 = arith.addf %163, %164 : vector<64x128xf32>
    %cst_233 = arith.constant 2.000000e-01 : f32
    %166 = vector.broadcast %cst_233 : f32 to vector<64x128xf32>
    %167 = arith.mulf %166, %165 : vector<64x128xf32>
    %168 = arith.maximumf %165, %167 : vector<64x128xf32>
    %169 = vector.extract_strided_slice %168 {offsets = [0, 0], sizes = [64, 16], strides = [1, 1]} : vector<64x128xf32> to vector<64x16xf32>
    %170 = vector.shape_cast %169 : vector<64x16xf32> to vector<2x4x8x16xf32>
    %171 = vector.extract_strided_slice %170 {offsets = [0, 0, 0, 0], sizes = [2, 4, 4, 16], strides = [1, 1, 1, 1]} : vector<2x4x8x16xf32> to vector<2x4x4x16xf32>
    %c0_234 = arith.constant 0 : index
    %c1_235 = arith.constant 1 : index
    %c1_236 = arith.constant 1 : index
    %c0_237 = arith.constant 0 : index
    %172 = vector.load %arg6[%c0_234, %c1_235, %c1_236, %c0_237] : memref<2x6x18x16xf32, #tpu.memory_space<vmem>>, vector<2x4x4x16xf32>
    tpu.vector_store %arg6[%c0_234, %c1_235, %c1_236, %c0_237], %171 {strides = array<i32>} : memref<2x6x18x16xf32, #tpu.memory_space<vmem>>, vector<2x4x4x16xf32>,
    %c0_238 = arith.constant 0 : index
    %c0_239 = arith.constant 0 : index
    %c0_240 = arith.constant 0 : index
    %c0_241 = arith.constant 0 : index
    %173 = tpu.strided_load %arg6[%c0_238, %c0_239, %c0_240, %c0_241] {strides = array<i32: 1, 2, 2, 1>} : memref<2x6x18x16xf32, #tpu.memory_space<vmem>>, vector<2x2x8x16xf32>
    %174 = vector.shape_cast %173 : vector<2x2x8x16xf32> to vector<32x16xf32>
    %c0_242 = arith.constant 0 : index
    %c0_243 = arith.constant 0 : index
    %c1_244 = arith.constant 1 : index
    %c0_245 = arith.constant 0 : index
    %175 = tpu.strided_load %arg6[%c0_242, %c0_243, %c1_244, %c0_245] {strides = array<i32: 1, 2, 2, 1>} : memref<2x6x18x16xf32, #tpu.memory_space<vmem>>, vector<2x2x8x16xf32>
    %176 = vector.shape_cast %175 : vector<2x2x8x16xf32> to vector<32x16xf32>
    %c0_246 = arith.constant 0 : index
    %c0_247 = arith.constant 0 : index
    %c2_248 = arith.constant 2 : index
    %c0_249 = arith.constant 0 : index
    %177 = tpu.strided_load %arg6[%c0_246, %c0_247, %c2_248, %c0_249] {strides = array<i32: 1, 2, 2, 1>} : memref<2x6x18x16xf32, #tpu.memory_space<vmem>>, vector<2x2x8x16xf32>
    %178 = vector.shape_cast %177 : vector<2x2x8x16xf32> to vector<32x16xf32>
    %c0_250 = arith.constant 0 : index
    %c0_251 = arith.constant 0 : index
    %c3_252 = arith.constant 3 : index
    %c0_253 = arith.constant 0 : index
    %179 = tpu.strided_load %arg6[%c0_250, %c0_251, %c3_252, %c0_253] {strides = array<i32: 1, 2, 2, 1>} : memref<2x6x18x16xf32, #tpu.memory_space<vmem>>, vector<2x2x8x16xf32>
    %180 = vector.shape_cast %179 : vector<2x2x8x16xf32> to vector<32x16xf32>
    %c0_254 = arith.constant 0 : index
    %c1_255 = arith.constant 1 : index
    %c0_256 = arith.constant 0 : index
    %c0_257 = arith.constant 0 : index
    %181 = tpu.strided_load %arg6[%c0_254, %c1_255, %c0_256, %c0_257] {strides = array<i32: 1, 2, 2, 1>} : memref<2x6x18x16xf32, #tpu.memory_space<vmem>>, vector<2x2x8x16xf32>
    %182 = vector.shape_cast %181 : vector<2x2x8x16xf32> to vector<32x16xf32>
    %c0_258 = arith.constant 0 : index
    %c1_259 = arith.constant 1 : index
    %c1_260 = arith.constant 1 : index
    %c0_261 = arith.constant 0 : index
    %183 = tpu.strided_load %arg6[%c0_258, %c1_259, %c1_260, %c0_261] {strides = array<i32: 1, 2, 2, 1>} : memref<2x6x18x16xf32, #tpu.memory_space<vmem>>, vector<2x2x8x16xf32>
    %184 = vector.shape_cast %183 : vector<2x2x8x16xf32> to vector<32x16xf32>
    %c0_262 = arith.constant 0 : index
    %c1_263 = arith.constant 1 : index
    %c2_264 = arith.constant 2 : index
    %c0_265 = arith.constant 0 : index
    %185 = tpu.strided_load %arg6[%c0_262, %c1_263, %c2_264, %c0_265] {strides = array<i32: 1, 2, 2, 1>} : memref<2x6x18x16xf32, #tpu.memory_space<vmem>>, vector<2x2x8x16xf32>
    %186 = vector.shape_cast %185 : vector<2x2x8x16xf32> to vector<32x16xf32>
    %c0_266 = arith.constant 0 : index
    %c1_267 = arith.constant 1 : index
    %c3_268 = arith.constant 3 : index
    %c0_269 = arith.constant 0 : index
    %187 = tpu.strided_load %arg6[%c0_266, %c1_267, %c3_268, %c0_269] {strides = array<i32: 1, 2, 2, 1>} : memref<2x6x18x16xf32, #tpu.memory_space<vmem>>, vector<2x2x8x16xf32>
    %188 = vector.shape_cast %187 : vector<2x2x8x16xf32> to vector<32x16xf32>
    %c0_270 = arith.constant 0 : index
    %c2_271 = arith.constant 2 : index
    %c0_272 = arith.constant 0 : index
    %c0_273 = arith.constant 0 : index
    %189 = tpu.strided_load %arg6[%c0_270, %c2_271, %c0_272, %c0_273] {strides = array<i32: 1, 2, 2, 1>} : memref<2x6x18x16xf32, #tpu.memory_space<vmem>>, vector<2x2x8x16xf32>
    %190 = vector.shape_cast %189 : vector<2x2x8x16xf32> to vector<32x16xf32>
    %c0_274 = arith.constant 0 : index
    %c2_275 = arith.constant 2 : index
    %c1_276 = arith.constant 1 : index
    %c0_277 = arith.constant 0 : index
    %191 = tpu.strided_load %arg6[%c0_274, %c2_275, %c1_276, %c0_277] {strides = array<i32: 1, 2, 2, 1>} : memref<2x6x18x16xf32, #tpu.memory_space<vmem>>, vector<2x2x8x16xf32>
    %192 = vector.shape_cast %191 : vector<2x2x8x16xf32> to vector<32x16xf32>
    %c0_278 = arith.constant 0 : index
    %c2_279 = arith.constant 2 : index
    %c2_280 = arith.constant 2 : index
    %c0_281 = arith.constant 0 : index
    %193 = tpu.strided_load %arg6[%c0_278, %c2_279, %c2_280, %c0_281] {strides = array<i32: 1, 2, 2, 1>} : memref<2x6x18x16xf32, #tpu.memory_space<vmem>>, vector<2x2x8x16xf32>
    %194 = vector.shape_cast %193 : vector<2x2x8x16xf32> to vector<32x16xf32>
    %c0_282 = arith.constant 0 : index
    %c2_283 = arith.constant 2 : index
    %c3_284 = arith.constant 3 : index
    %c0_285 = arith.constant 0 : index
    %195 = tpu.strided_load %arg6[%c0_282, %c2_283, %c3_284, %c0_285] {strides = array<i32: 1, 2, 2, 1>} : memref<2x6x18x16xf32, #tpu.memory_space<vmem>>, vector<2x2x8x16xf32>
    %196 = vector.shape_cast %195 : vector<2x2x8x16xf32> to vector<32x16xf32>
    %c0_286 = arith.constant 0 : index
    %c3_287 = arith.constant 3 : index
    %c0_288 = arith.constant 0 : index
    %c0_289 = arith.constant 0 : index
    %197 = tpu.strided_load %arg6[%c0_286, %c3_287, %c0_288, %c0_289] {strides = array<i32: 1, 2, 2, 1>} : memref<2x6x18x16xf32, #tpu.memory_space<vmem>>, vector<2x2x8x16xf32>
    %198 = vector.shape_cast %197 : vector<2x2x8x16xf32> to vector<32x16xf32>
    %c0_290 = arith.constant 0 : index
    %c3_291 = arith.constant 3 : index
    %c1_292 = arith.constant 1 : index
    %c0_293 = arith.constant 0 : index
    %199 = tpu.strided_load %arg6[%c0_290, %c3_291, %c1_292, %c0_293] {strides = array<i32: 1, 2, 2, 1>} : memref<2x6x18x16xf32, #tpu.memory_space<vmem>>, vector<2x2x8x16xf32>
    %200 = vector.shape_cast %199 : vector<2x2x8x16xf32> to vector<32x16xf32>
    %c0_294 = arith.constant 0 : index
    %c3_295 = arith.constant 3 : index
    %c2_296 = arith.constant 2 : index
    %c0_297 = arith.constant 0 : index
    %201 = tpu.strided_load %arg6[%c0_294, %c3_295, %c2_296, %c0_297] {strides = array<i32: 1, 2, 2, 1>} : memref<2x6x18x16xf32, #tpu.memory_space<vmem>>, vector<2x2x8x16xf32>
    %202 = vector.shape_cast %201 : vector<2x2x8x16xf32> to vector<32x16xf32>
    %c0_298 = arith.constant 0 : index
    %c3_299 = arith.constant 3 : index
    %c3_300 = arith.constant 3 : index
    %c0_301 = arith.constant 0 : index
    %203 = tpu.strided_load %arg6[%c0_298, %c3_299, %c3_300, %c0_301] {strides = array<i32: 1, 2, 2, 1>} : memref<2x6x18x16xf32, #tpu.memory_space<vmem>>, vector<2x2x8x16xf32>
    %204 = vector.shape_cast %203 : vector<2x2x8x16xf32> to vector<32x16xf32>
    %205 = tpu.concatenate %174, %176, %178, %180, %182, %184, %186, %188, %190, %192, %194, %196, %198, %200, %202, %204 in 1 : vector<32x16xf32>, vector<32x16xf32>, vector<32x16xf32>, vector<32x16xf32>, vector<32x16xf32>, vector<32x16xf32>, vector<32x16xf32>, vector<32x16xf32>, vector<32x16xf32>, vector<32x16xf32>, vector<32x16xf32>, vector<32x16xf32>, vector<32x16xf32>, vector<32x16xf32>, vector<32x16xf32>, vector<32x16xf32> -> vector<32x256xf32>
    %206 = arith.truncf %205 : vector<32x256xf32> to vector<32x256xbf16>
    %c256 = arith.constant 256 : index
    %c0_302 = arith.constant 0 : index
    %207 = vector.load %arg1[%c256, %c0_302] : memref<1024x128xbf16, #tpu.memory_space<vmem>>, vector<256x128xbf16>
    %cst_303 = arith.constant dense<0.000000e+00> : vector<32x128xf32>
    %208 = tpu.matmul %206, %207, %cst_303 {dimension_numbers = #tpu.dot_dimension_numbers<[1], [0], [0], [1], [0, 0, 1, 1], [], []>} : vector<32x256xbf16>, vector<256x128xbf16>, vector<32x128xf32> -> vector<32x128xf32>
    %c6 = arith.constant 6 : index
    %c0_304 = arith.constant 0 : index
    %209 = vector.load %arg2[%c6, %c0_304] : memref<12x128xf32, #tpu.memory_space<vmem>>, vector<1x128xf32>
    %210 = vector.broadcast %209 : vector<1x128xf32> to vector<32x128xf32>
    %211 = arith.addf %208, %210 : vector<32x128xf32>
    %212 = tpu.iota {dimensions = array<i32: 0>} : vector<32x1xi32>
    %c8_i32_305 = arith.constant 8 : i32
    %c0_i32_306 = arith.constant 0 : i32
    %213 = arith.cmpi eq, %c8_i32_305, %c0_i32_306 : i32
    %c1_i32_307 = arith.constant 1 : i32
    %214 = arith.select %213, %c1_i32_307, %c8_i32_305 : i32
    %215 = vector.broadcast %214 : i32 to vector<32x1xi32>
    %216 = arith.remsi %212, %215 : vector<32x1xi32>
    %c0_i32_308 = arith.constant 0 : i32
    %217 = vector.broadcast %c0_i32_308 : i32 to vector<32x1xi32>
    %218 = arith.cmpi ne, %216, %217 : vector<32x1xi32>
    %c0_i32_309 = arith.constant 0 : i32
    %219 = vector.broadcast %c0_i32_309 : i32 to vector<32x1xi32>
    %220 = arith.cmpi slt, %216, %219 : vector<32x1xi32>
    %c0_i32_310 = arith.constant 0 : i32
    %221 = arith.cmpi slt, %214, %c0_i32_310 : i32
    %222 = vector.broadcast %221 : i1 to vector<32x1xi1>
    %223 = vector.broadcast %222 : vector<32x1xi1> to vector<32x1xi1>
    %224 = arith.xori %220, %223 : vector<32x1xi1>
    %225 = arith.andi %224, %218 : vector<32x1xi1>
    %226 = vector.broadcast %214 : i32 to vector<32x1xi32>
    %227 = arith.addi %216, %226 : vector<32x1xi32>
    %228 = arith.select %225, %227, %216 : vector<32x1xi1>, vector<32x1xi32>
    %c2_i32 = arith.constant 2 : i32
    %229 = vector.broadcast %c2_i32 : i32 to vector<32x1xi32>
    %230 = arith.cmpi slt, %228, %229 : vector<32x1xi32>
    %231 = arith.extui %230 : vector<32x1xi1> to vector<32x1xi32>
    %232 = arith.sitofp %231 : vector<32x1xi32> to vector<32x1xf32>
    %c7 = arith.constant 7 : index
    %c0_311 = arith.constant 0 : index
    %233 = vector.load %arg2[%c7, %c0_311] : memref<12x128xf32, #tpu.memory_space<vmem>>, vector<1x128xf32>
    %c8 = arith.constant 8 : index
    %c0_312 = arith.constant 0 : index
    %234 = vector.load %arg2[%c8, %c0_312] : memref<12x128xf32, #tpu.memory_space<vmem>>, vector<1x128xf32>
    %235 = vector.broadcast %232 : vector<32x1xf32> to vector<32x128xf32>
    %236 = arith.mulf %211, %235 : vector<32x128xf32>
    %cst_313 = arith.constant dense<0.000000e+00> : vector<128xf32>
    %237 = vector.multi_reduction <add>, %236, %cst_313 [0] : vector<32x128xf32> to vector<128xf32>
    %238 = vector.shape_cast %237 : vector<128xf32> to vector<1x128xf32>
    %cst_314 = arith.constant 1.250000e-01 : f32
    %239 = vector.broadcast %cst_314 : f32 to vector<1x128xf32>
    %240 = arith.mulf %238, %239 : vector<1x128xf32>
    %241 = vector.broadcast %240 : vector<1x128xf32> to vector<32x128xf32>
    %242 = arith.subf %211, %241 : vector<32x128xf32>
    %243 = vector.broadcast %232 : vector<32x1xf32> to vector<32x128xf32>
    %244 = arith.mulf %242, %243 : vector<32x128xf32>
    %245 = arith.mulf %244, %244 : vector<32x128xf32>
    %cst_315 = arith.constant dense<0.000000e+00> : vector<128xf32>
    %246 = vector.multi_reduction <add>, %245, %cst_315 [0] : vector<32x128xf32> to vector<128xf32>
    %247 = vector.shape_cast %246 : vector<128xf32> to vector<1x128xf32>
    %cst_316 = arith.constant 1.250000e-01 : f32
    %248 = vector.broadcast %cst_316 : f32 to vector<1x128xf32>
    %249 = arith.mulf %247, %248 : vector<1x128xf32>
    %250 = vector.broadcast %240 : vector<1x128xf32> to vector<32x128xf32>
    %251 = arith.subf %211, %250 : vector<32x128xf32>
    %cst_317 = arith.constant 9.99999974E-6 : f32
    %252 = vector.broadcast %cst_317 : f32 to vector<1x128xf32>
    %253 = arith.addf %249, %252 : vector<1x128xf32>
    %254 = math.rsqrt %253 : vector<1x128xf32>
    %255 = arith.mulf %233, %254 : vector<1x128xf32>
    %256 = vector.broadcast %255 : vector<1x128xf32> to vector<32x128xf32>
    %257 = arith.mulf %251, %256 : vector<32x128xf32>
    %258 = vector.broadcast %234 : vector<1x128xf32> to vector<32x128xf32>
    %259 = arith.addf %257, %258 : vector<32x128xf32>
    %cst_318 = arith.constant 2.000000e-01 : f32
    %260 = vector.broadcast %cst_318 : f32 to vector<32x128xf32>
    %261 = arith.mulf %260, %259 : vector<32x128xf32>
    %262 = arith.maximumf %259, %261 : vector<32x128xf32>
    %263 = vector.extract_strided_slice %262 {offsets = [0, 0], sizes = [32, 32], strides = [1, 1]} : vector<32x128xf32> to vector<32x32xf32>
    %264 = vector.shape_cast %263 : vector<32x32xf32> to vector<2x2x8x32xf32>
    %265 = vector.extract_strided_slice %264 {offsets = [0, 0, 0, 0], sizes = [2, 2, 2, 32], strides = [1, 1, 1, 1]} : vector<2x2x8x32xf32> to vector<2x2x2x32xf32>
    %c0_319 = arith.constant 0 : index
    %c1_320 = arith.constant 1 : index
    %c1_321 = arith.constant 1 : index
    %c0_322 = arith.constant 0 : index
    %266 = vector.load %arg7[%c0_319, %c1_320, %c1_321, %c0_322] : memref<2x4x11x32xf32, #tpu.memory_space<vmem>>, vector<2x2x2x32xf32>
    tpu.vector_store %arg7[%c0_319, %c1_320, %c1_321, %c0_322], %265 {strides = array<i32>} : memref<2x4x11x32xf32, #tpu.memory_space<vmem>>, vector<2x2x2x32xf32>,
    %c0_323 = arith.constant 0 : index
    %c0_324 = arith.constant 0 : index
    %c0_325 = arith.constant 0 : index
    %c0_326 = arith.constant 0 : index
    %267 = vector.load %arg7[%c0_323, %c0_324, %c0_325, %c0_326] : memref<2x4x11x32xf32, #tpu.memory_space<vmem>>, vector<2x1x8x32xf32>
    %268 = vector.shape_cast %267 : vector<2x1x8x32xf32> to vector<16x32xf32>
    %c0_327 = arith.constant 0 : index
    %c0_328 = arith.constant 0 : index
    %c1_329 = arith.constant 1 : index
    %c0_330 = arith.constant 0 : index
    %269 = vector.load %arg7[%c0_327, %c0_328, %c1_329, %c0_330] : memref<2x4x11x32xf32, #tpu.memory_space<vmem>>, vector<2x1x8x32xf32>
    %270 = vector.shape_cast %269 : vector<2x1x8x32xf32> to vector<16x32xf32>
    %c0_331 = arith.constant 0 : index
    %c0_332 = arith.constant 0 : index
    %c2_333 = arith.constant 2 : index
    %c0_334 = arith.constant 0 : index
    %271 = vector.load %arg7[%c0_331, %c0_332, %c2_333, %c0_334] : memref<2x4x11x32xf32, #tpu.memory_space<vmem>>, vector<2x1x8x32xf32>
    %272 = vector.shape_cast %271 : vector<2x1x8x32xf32> to vector<16x32xf32>
    %c0_335 = arith.constant 0 : index
    %c0_336 = arith.constant 0 : index
    %c3_337 = arith.constant 3 : index
    %c0_338 = arith.constant 0 : index
    %273 = vector.load %arg7[%c0_335, %c0_336, %c3_337, %c0_338] : memref<2x4x11x32xf32, #tpu.memory_space<vmem>>, vector<2x1x8x32xf32>
    %274 = vector.shape_cast %273 : vector<2x1x8x32xf32> to vector<16x32xf32>
    %c0_339 = arith.constant 0 : index
    %c1_340 = arith.constant 1 : index
    %c0_341 = arith.constant 0 : index
    %c0_342 = arith.constant 0 : index
    %275 = vector.load %arg7[%c0_339, %c1_340, %c0_341, %c0_342] : memref<2x4x11x32xf32, #tpu.memory_space<vmem>>, vector<2x1x8x32xf32>
    %276 = vector.shape_cast %275 : vector<2x1x8x32xf32> to vector<16x32xf32>
    %c0_343 = arith.constant 0 : index
    %c1_344 = arith.constant 1 : index
    %c1_345 = arith.constant 1 : index
    %c0_346 = arith.constant 0 : index
    %277 = vector.load %arg7[%c0_343, %c1_344, %c1_345, %c0_346] : memref<2x4x11x32xf32, #tpu.memory_space<vmem>>, vector<2x1x8x32xf32>
    %278 = vector.shape_cast %277 : vector<2x1x8x32xf32> to vector<16x32xf32>
    %c0_347 = arith.constant 0 : index
    %c1_348 = arith.constant 1 : index
    %c2_349 = arith.constant 2 : index
    %c0_350 = arith.constant 0 : index
    %279 = vector.load %arg7[%c0_347, %c1_348, %c2_349, %c0_350] : memref<2x4x11x32xf32, #tpu.memory_space<vmem>>, vector<2x1x8x32xf32>
    %280 = vector.shape_cast %279 : vector<2x1x8x32xf32> to vector<16x32xf32>
    %c0_351 = arith.constant 0 : index
    %c1_352 = arith.constant 1 : index
    %c3_353 = arith.constant 3 : index
    %c0_354 = arith.constant 0 : index
    %281 = vector.load %arg7[%c0_351, %c1_352, %c3_353, %c0_354] : memref<2x4x11x32xf32, #tpu.memory_space<vmem>>, vector<2x1x8x32xf32>
    %282 = vector.shape_cast %281 : vector<2x1x8x32xf32> to vector<16x32xf32>
    %c0_355 = arith.constant 0 : index
    %c2_356 = arith.constant 2 : index
    %c0_357 = arith.constant 0 : index
    %c0_358 = arith.constant 0 : index
    %283 = vector.load %arg7[%c0_355, %c2_356, %c0_357, %c0_358] : memref<2x4x11x32xf32, #tpu.memory_space<vmem>>, vector<2x1x8x32xf32>
    %284 = vector.shape_cast %283 : vector<2x1x8x32xf32> to vector<16x32xf32>
    %c0_359 = arith.constant 0 : index
    %c2_360 = arith.constant 2 : index
    %c1_361 = arith.constant 1 : index
    %c0_362 = arith.constant 0 : index
    %285 = vector.load %arg7[%c0_359, %c2_360, %c1_361, %c0_362] : memref<2x4x11x32xf32, #tpu.memory_space<vmem>>, vector<2x1x8x32xf32>
    %286 = vector.shape_cast %285 : vector<2x1x8x32xf32> to vector<16x32xf32>
    %c0_363 = arith.constant 0 : index
    %c2_364 = arith.constant 2 : index
    %c2_365 = arith.constant 2 : index
    %c0_366 = arith.constant 0 : index
    %287 = vector.load %arg7[%c0_363, %c2_364, %c2_365, %c0_366] : memref<2x4x11x32xf32, #tpu.memory_space<vmem>>, vector<2x1x8x32xf32>
    %288 = vector.shape_cast %287 : vector<2x1x8x32xf32> to vector<16x32xf32>
    %c0_367 = arith.constant 0 : index
    %c2_368 = arith.constant 2 : index
    %c3_369 = arith.constant 3 : index
    %c0_370 = arith.constant 0 : index
    %289 = vector.load %arg7[%c0_367, %c2_368, %c3_369, %c0_370] : memref<2x4x11x32xf32, #tpu.memory_space<vmem>>, vector<2x1x8x32xf32>
    %290 = vector.shape_cast %289 : vector<2x1x8x32xf32> to vector<16x32xf32>
    %c0_371 = arith.constant 0 : index
    %c3_372 = arith.constant 3 : index
    %c0_373 = arith.constant 0 : index
    %c0_374 = arith.constant 0 : index
    %291 = vector.load %arg7[%c0_371, %c3_372, %c0_373, %c0_374] : memref<2x4x11x32xf32, #tpu.memory_space<vmem>>, vector<2x1x8x32xf32>
    %292 = vector.shape_cast %291 : vector<2x1x8x32xf32> to vector<16x32xf32>
    %c0_375 = arith.constant 0 : index
    %c3_376 = arith.constant 3 : index
    %c1_377 = arith.constant 1 : index
    %c0_378 = arith.constant 0 : index
    %293 = vector.load %arg7[%c0_375, %c3_376, %c1_377, %c0_378] : memref<2x4x11x32xf32, #tpu.memory_space<vmem>>, vector<2x1x8x32xf32>
    %294 = vector.shape_cast %293 : vector<2x1x8x32xf32> to vector<16x32xf32>
    %c0_379 = arith.constant 0 : index
    %c3_380 = arith.constant 3 : index
    %c2_381 = arith.constant 2 : index
    %c0_382 = arith.constant 0 : index
    %295 = vector.load %arg7[%c0_379, %c3_380, %c2_381, %c0_382] : memref<2x4x11x32xf32, #tpu.memory_space<vmem>>, vector<2x1x8x32xf32>
    %296 = vector.shape_cast %295 : vector<2x1x8x32xf32> to vector<16x32xf32>
    %c0_383 = arith.constant 0 : index
    %c3_384 = arith.constant 3 : index
    %c3_385 = arith.constant 3 : index
    %c0_386 = arith.constant 0 : index
    %297 = vector.load %arg7[%c0_383, %c3_384, %c3_385, %c0_386] : memref<2x4x11x32xf32, #tpu.memory_space<vmem>>, vector<2x1x8x32xf32>
    %298 = vector.shape_cast %297 : vector<2x1x8x32xf32> to vector<16x32xf32>
    %299 = tpu.concatenate %268, %270, %272, %274, %276, %278, %280, %282, %284, %286, %288, %290, %292, %294, %296, %298 in 1 : vector<16x32xf32>, vector<16x32xf32>, vector<16x32xf32>, vector<16x32xf32>, vector<16x32xf32>, vector<16x32xf32>, vector<16x32xf32>, vector<16x32xf32>, vector<16x32xf32>, vector<16x32xf32>, vector<16x32xf32>, vector<16x32xf32>, vector<16x32xf32>, vector<16x32xf32>, vector<16x32xf32>, vector<16x32xf32> -> vector<16x512xf32>
    %300 = arith.truncf %299 : vector<16x512xf32> to vector<16x512xbf16>
    %c512 = arith.constant 512 : index
    %c0_387 = arith.constant 0 : index
    %301 = vector.load %arg1[%c512, %c0_387] : memref<1024x128xbf16, #tpu.memory_space<vmem>>, vector<512x128xbf16>
    %cst_388 = arith.constant dense<0.000000e+00> : vector<16x128xf32>
    %302 = tpu.matmul %300, %301, %cst_388 {dimension_numbers = #tpu.dot_dimension_numbers<[1], [0], [0], [1], [0, 0, 1, 1], [], []>} : vector<16x512xbf16>, vector<512x128xbf16>, vector<16x128xf32> -> vector<16x128xf32>
    %c9_389 = arith.constant 9 : index
    %c0_390 = arith.constant 0 : index
    %303 = vector.load %arg2[%c9_389, %c0_390] : memref<12x128xf32, #tpu.memory_space<vmem>>, vector<1x128xf32>
    %304 = vector.broadcast %303 : vector<1x128xf32> to vector<16x128xf32>
    %305 = arith.addf %302, %304 : vector<16x128xf32>
    %306 = tpu.iota {dimensions = array<i32: 0>} : vector<16x1xi32>
    %c8_i32_391 = arith.constant 8 : i32
    %c0_i32_392 = arith.constant 0 : i32
    %307 = arith.cmpi eq, %c8_i32_391, %c0_i32_392 : i32
    %c1_i32_393 = arith.constant 1 : i32
    %308 = arith.select %307, %c1_i32_393, %c8_i32_391 : i32
    %309 = vector.broadcast %308 : i32 to vector<16x1xi32>
    %310 = arith.remsi %306, %309 : vector<16x1xi32>
    %c0_i32_394 = arith.constant 0 : i32
    %311 = vector.broadcast %c0_i32_394 : i32 to vector<16x1xi32>
    %312 = arith.cmpi ne, %310, %311 : vector<16x1xi32>
    %c0_i32_395 = arith.constant 0 : i32
    %313 = vector.broadcast %c0_i32_395 : i32 to vector<16x1xi32>
    %314 = arith.cmpi slt, %310, %313 : vector<16x1xi32>
    %c0_i32_396 = arith.constant 0 : i32
    %315 = arith.cmpi slt, %308, %c0_i32_396 : i32
    %316 = vector.broadcast %315 : i1 to vector<16x1xi1>
    %317 = vector.broadcast %316 : vector<16x1xi1> to vector<16x1xi1>
    %318 = arith.xori %314, %317 : vector<16x1xi1>
    %319 = arith.andi %318, %312 : vector<16x1xi1>
    %320 = vector.broadcast %308 : i32 to vector<16x1xi32>
    %321 = arith.addi %310, %320 : vector<16x1xi32>
    %322 = arith.select %319, %321, %310 : vector<16x1xi1>, vector<16x1xi32>
    %c1_i32_397 = arith.constant 1 : i32
    %323 = vector.broadcast %c1_i32_397 : i32 to vector<16x1xi32>
    %324 = arith.cmpi slt, %322, %323 : vector<16x1xi32>
    %325 = arith.extui %324 : vector<16x1xi1> to vector<16x1xi32>
    %326 = arith.sitofp %325 : vector<16x1xi32> to vector<16x1xf32>
    %327 = vector.broadcast %326 : vector<16x1xf32> to vector<16x128xf32>
    %328 = arith.mulf %305, %327 : vector<16x128xf32>
    %c0_398 = arith.constant 0 : index
    %c0_399 = arith.constant 0 : index
    %329 = vector.load %arg3[%c0_398, %c0_399] : memref<16x128xf32, #tpu.memory_space<vmem>>, vector<16x128xf32>
    tpu.vector_store %arg3[%c0_398, %c0_399], %328 {strides = array<i32>} : memref<16x128xf32, #tpu.memory_space<vmem>>, vector<16x128xf32>,
    return
  }
}

</mosaic_0001>

<bundles_post_ra>
// kernel: patchgan_forward.1
= control target key start
LH: loop header
LB: loop body
LE: loop exit
PB: predicated region body
PF: predicated region fallthrough
CT: control target
= control target key end

     0   :  { %vm14_vm0 = vcmask 64512   ;;  %v8337_v0 = vmov 0.0   ;;  %s6384_s16 = smov 8   ;;  %vm17_vm1 = vcmask 58368   ;;  %vm30_vm2 = vcmask 57344   ;;  %s6385_s17 = smov 16   ;;  %s8333_s0 = inlined_call_operand.vmem [shape: f32[2,16,16,8], index: 0, kind: input, shape index: {}]   ;;  %s8334_s1 = inlined_call_operand.vmem [shape: bf16[1024,128], index: 1, kind: input, shape index: {}]   ;;  %s8335_s2 = inlined_call_operand.vmem [shape: f32[12,128], index: 2, kind: input, shape index: {}]   ;;  %s8336_s3 = inlined_call_operand.vmem [shape: f32[16,128], index: 3, kind: output, shape index: {}]  }
   0x1   :  { %19 = vst.msk [vmem:[#allocation2 + $0x1b0] sm:$0xff] %vm14_vm0, %v8337_v0  ;;  %v254_v1 = vld [vmem:[%s8333_s0 + $0x110] sm:$0xff]  ;;  %v255_v2 = vld [vmem:[%s8333_s0 + $0x118] sm:$0xff]  ;;  %s6386_s18 = smov 24   ;;  %s6387_s27 = smov 32   ;;  %vm157_vm3 = vcmask 130048  }
   0x2   :  { %20 = vst.msk [vmem:[#allocation2 + $0x1b8] sm:$0xff] %vm14_vm0, %v8337_v0  ;;  %v234_v6 = vld [vmem:[%s8333_s0 + $0x70] sm:$0xff]  ;;  %v235_v7 = vld [vmem:[%s8333_s0 + $0x78] sm:$0xff]  ;;  %s6388_s10 = smov 40   ;;  %s6389_s11 = smov 48   ;;  %vm199_vm4 = vcmask 261120  }
   0x3   :  { %318 = vst.msk [vmem:[#allocation2 + $0x1e1] sm:$0xff] %vm14_vm0, %v254_v1  ;;  %v238_v8 = vld [vmem:[%s8333_s0 + $0x90] sm:$0xff]  ;;  %v239_v9 = vld [vmem:[%s8333_s0 + $0x98] sm:$0xff]  ;;  %s6390_s12 = smov 64   ;;  %s6391_s13 = smov 72   ;;  %vm1850_vm5 = vcmask 195584  }
   0x4   :  { %319 = vst.msk [vmem:[#allocation2 + $0x1e9] sm:$0xff] %vm14_vm0, %v255_v2  ;;  %v222_v10 = vld [vmem:[%s8333_s0 + $0x10] sm:$0xff]  ;;  %v223_v11 = vld [vmem:[%s8333_s0 + $0x18] sm:$0xff]  ;;  %s6392_s14 = smov 56   ;;  %s6393_s15 = smov 88   ;;  %vm1883_vm6 = vcmask 326656  }
   0x5   :  { %15 = vst.msk [vmem:[#allocation2] sm:$0xff] %vm14_vm0, %v8337_v0  ;;  %v258_v12 = vld [vmem:[%s8333_s0 + $0x130] sm:$0xff]  ;;  %v259_v13 = vld [vmem:[%s8333_s0 + $0x138] sm:$0xff]  ;;  %s6394_s19 = smov 96   ;;  %s6395_s20 = smov 80   ;;  %vm1900_vm7 = vcmask 392192  }
   0x6   :  { %16 = vst.msk [vmem:[#allocation2 + $0x8] sm:$0xff] %vm14_vm0, %v8337_v0  ;;  %v262_v14 = vld [vmem:[%s8333_s0 + $0x150] sm:$0xff]  ;;  %v263_v15 = vld [vmem:[%s8333_s0 + $0x158] sm:$0xff]  ;;  %s6396_s21 = smov 112   ;;  %s6397_s22 = smov 120   ;;  %vm1917_vm8 = vcmask 457728  }
   0x7   :  { %23 = vst.msk [vmem:[#allocation2 + $0x198] sm:$0xff] %vm14_vm0, %v8337_v0  ;;  %v242_v16 = vld [vmem:[%s8333_s0 + $0xb0] sm:$0xff]  ;;  %v243_v18 = vld [vmem:[%s8333_s0 + $0xb8] sm:$0xff]  ;;  %s6398_s23 = smov 104   ;;  %vm1934_vm9 = vcmask 523264   ;;  %vm1951_vm10 = vcmask 588800  }
   0x8   :  { %24 = vst.msk [vmem:[#allocation2 + $0x1a0] sm:$0xff] %vm14_vm0, %v8337_v0  ;;  %v246_v19 = vld [vmem:[%s8333_s0 + $0xd0] sm:$0xff]  ;;  %v247_v22 = vld [vmem:[%s8333_s0 + $0xd8] sm:$0xff]  ;;  %vm1968_vm11 = vcmask 654336   ;;  %vm1985_vm12 = vcmask 719872   ;;  %vm2002_vm13 = vcmask 785408  }
   0x9   :  { %v396_v3 = vld [vmem:[#allocation2 + $0x1b1] ss:$2 sm:$0xff]  ;;  %26 = vst.msk [vmem:[#allocation2 + $0x348] sm:$0xff] %vm14_vm0, %v8337_v0  ;;  %vm2019_vm14 = vcmask 850944   ;;  %vm2036_vm15 = vcmask 916480  }
   0xa   :  { %27 = vst.msk [vmem:[#allocation2 + $0x350] sm:$0xff] %vm14_vm0, %v8337_v0  ;;  %v226_v24 = vld [vmem:[%s8333_s0 + $0x30] sm:$0xff]  ;;  %v227_v26 = vld [vmem:[%s8333_s0 + $0x38] sm:$0xff] }
   0xb   :  { %v398_v4 = vld [vmem:[#allocation2 + $0x1e1] ss:$2 sm:$0xff]  ;;  %95 = vst.msk [vmem:[#allocation3] sm:$0xff] %vm14_vm0, %v8337_v0  ;;  %v230_v28 = vld [vmem:[%s8333_s0 + $0x50] sm:$0xff]  ;;  %v231_v30 = vld [vmem:[%s8333_s0 + $0x58] sm:$0xff] }
   0xc   :  { %v5293_v5 = vpack.i.bf16 %v398_v4, %v396_v3  ;;  %96 = vst.msk [vmem:[#allocation3 + $0x8] sm:$0xff] %vm14_vm0, %v8337_v0  ;;  %v274_v31 = vld [vmem:[%s8333_s0 + $0x1b0] sm:$0xff]  ;;  %v275_v33 = vld [vmem:[%s8333_s0 + $0x1b8] sm:$0xff] }
   0xd   :  { %98 = vst.msk [vmem:[#allocation3 + $0xf0] sm:$0xff] %vm14_vm0, %v8337_v0  ;;  %v380_v21 = vld [vmem:[#allocation2 + $0x1] ss:$2 sm:$0xff]  ;;  %v278_v35 = vld [vmem:[%s8333_s0 + $0x1d0] sm:$0xff]  ;;  %v279_v37 = vld [vmem:[%s8333_s0 + $0x1d8] sm:$0xff] }
   0xe   :  { %5294 = vrot.lane.b32.xlu2 %v5293_v5, %s6384_s16  ;;  %99 = vst.msk [vmem:[#allocation3 + $0xf8] sm:$0xff] %vm14_vm0, %v8337_v0  ;;  %v266_v45 = vld [vmem:[%s8333_s0 + $0x170] sm:$0xff]  ;;  %v267_v47 = vld [vmem:[%s8333_s0 + $0x178] sm:$0xff] }
   0xf   :  { %102 = vst.msk [vmem:[#allocation3 + $0xd8] sm:$0xff] %vm14_vm0, %v8337_v0  ;;  %v270_v50 = vld [vmem:[%s8333_s0 + $0x190] sm:$0xff]  ;;  %v271_v52 = vld [vmem:[%s8333_s0 + $0x198] sm:$0xff] }
  0x10   :  { %103 = vst.msk [vmem:[#allocation3 + $0xe0] sm:$0xff] %vm14_vm0, %v8337_v0 }
  0x11   :  { %105 = vst.msk [vmem:[#allocation3 + $0x1c8] sm:$0xff] %vm14_vm0, %v8337_v0 }
  0x12   :  { %106 = vst.msk [vmem:[#allocation3 + $0x1d0] sm:$0xff] %vm14_vm0, %v8337_v0 }
  0x13   :  { %125 = vst.msk [vmem:[#allocation3 + $0x21] sm:$0xff] %vm14_vm0, %v8337_v0 }
  0x14   :  { %127 = vst.msk [vmem:[#allocation3 + $0x39] sm:$0xff] %vm14_vm0, %v8337_v0 }
  0x15   :  { %129 = vst.msk [vmem:[#allocation3 + $0x51] sm:$0xff] %vm14_vm0, %v8337_v0 }
  0x16   :  { %131 = vst.msk [vmem:[#allocation3 + $0x69] sm:$0xff] %vm14_vm0, %v8337_v0 }
  0x17   :  { %133 = vst.msk [vmem:[#allocation3 + $0x81] sm:$0xff] %vm14_vm0, %v8337_v0 }
  0x18   :  { %135 = vst.msk [vmem:[#allocation3 + $0x99] sm:$0xff] %vm14_vm0, %v8337_v0 }
  0x19   :  { %137 = vst.msk [vmem:[#allocation3 + $0xb1] sm:$0xff] %vm14_vm0, %v8337_v0 }
  0x1a   :  { %139 = vst.msk [vmem:[#allocation3 + $0xc9] sm:$0xff] %vm14_vm0, %v8337_v0 }
  0x1b   :  { %141 = vst.msk [vmem:[#allocation3 + $0x111] sm:$0xff] %vm14_vm0, %v8337_v0 }
  0x1c   :  { %143 = vst.msk [vmem:[#allocation3 + $0x129] sm:$0xff] %vm14_vm0, %v8337_v0 }
  0x1d   :  { %145 = vst.msk [vmem:[#allocation3 + $0x141] sm:$0xff] %vm14_vm0, %v8337_v0 }
  0x1e   :  { %147 = vst.msk [vmem:[#allocation3 + $0x159] sm:$0xff] %vm14_vm0, %v8337_v0 }
  0x1f   :  { %149 = vst.msk [vmem:[#allocation3 + $0x171] sm:$0xff] %vm14_vm0, %v8337_v0 }
  0x20   :  { %151 = vst.msk [vmem:[#allocation3 + $0x189] sm:$0xff] %vm14_vm0, %v8337_v0 }
  0x21   :  { %153 = vst.msk [vmem:[#allocation3 + $0x1a1] sm:$0xff] %vm14_vm0, %v8337_v0 }
  0x22   :  { %155 = vst.msk [vmem:[#allocation3 + $0x1b9] sm:$0xff] %vm14_vm0, %v8337_v0 }
  0x23   :  { %298 = vst.msk [vmem:[#allocation2 + $0xc1] sm:$0xff] %vm14_vm0, %v234_v6 }
  0x24   :  { %299 = vst.msk [vmem:[#allocation2 + $0xc9] sm:$0xff] %vm14_vm0, %v235_v7 }
  0x25   :  { %302 = vst.msk [vmem:[#allocation2 + $0xf1] sm:$0xff] %vm14_vm0, %v238_v8 }
  0x26   :  { %303 = vst.msk [vmem:[#allocation2 + $0xf9] sm:$0xff] %vm14_vm0, %v239_v9 }
  0x27   :  { %286 = vst.msk [vmem:[#allocation2 + $0x31] sm:$0xff] %vm14_vm0, %v222_v10 }
  0x28   :  { %287 = vst.msk [vmem:[#allocation2 + $0x39] sm:$0xff] %vm14_vm0, %v223_v11 }
  0x29   :  { %322 = vst.msk [vmem:[#allocation2 + $0x211] sm:$0xff] %vm14_vm0, %v258_v12  ;;  %v430_v12 = vld [vmem:[#allocation2 + $0x1e2] ss:$2 sm:$0xff] }
  0x2a   :  { %323 = vst.msk [vmem:[#allocation2 + $0x219] sm:$0xff] %vm14_vm0, %v259_v13 }
  0x2b   :  { %v388_v17 = vld [vmem:[#allocation2 + $0xc1] ss:$2 sm:$0xff]  ;;  %326 = vst.msk [vmem:[#allocation2 + $0x241] sm:$0xff] %vm14_vm0, %v262_v14  ;;  %v420_v53 = vld [vmem:[#allocation2 + $0xc2] ss:$2 sm:$0xff] }
  0x2c   :  { %327 = vst.msk [vmem:[#allocation2 + $0x249] sm:$0xff] %vm14_vm0, %v263_v15 }
  0x2d   :  { %v390_v20 = vld [vmem:[#allocation2 + $0xf1] ss:$2 sm:$0xff]  ;;  %306 = vst.msk [vmem:[#allocation2 + $0x121] sm:$0xff] %vm14_vm0, %v242_v16  ;;  %v422_v54 = vld [vmem:[#allocation2 + $0xf2] ss:$2 sm:$0xff] }
  0x2e   :  { %v5283_v23 = vpack.i.bf16 %v390_v20, %v388_v17  ;;  %307 = vst.msk [vmem:[#allocation2 + $0x129] sm:$0xff] %vm14_vm0, %v243_v18  ;;  %v5323_v57 = vpack.i.bf16 %v422_v54, %v420_v53  ;;  %v253_v53 = vld [vmem:[%s8333_s0 + $0x108] sm:$0xff] }
  0x2f   :  { %v382_v25 = vld [vmem:[#allocation2 + $0x31] ss:$2 sm:$0xff]  ;;  %310 = vst.msk [vmem:[#allocation2 + $0x151] sm:$0xff] %vm14_vm0, %v246_v19  ;;  %v414_v44 = vld [vmem:[#allocation2 + $0x32] ss:$2 sm:$0xff] }
  0x30   :  { %5284 = vrot.lane.b32.xlu1 %v5283_v23, %s6384_s16  ;;  %v5273_v27 = vpack.i.bf16 %v382_v25, %v380_v21  ;;  %311 = vst.msk [vmem:[#allocation2 + $0x159] sm:$0xff] %vm14_vm0, %v247_v22 }
  0x31   :  { %v400_v29 = vld [vmem:[#allocation2 + $0x211] ss:$2 sm:$0xff]  ;;  %290 = vst.msk [vmem:[#allocation2 + $0x61] sm:$0xff] %vm14_vm0, %v226_v24  ;;  %v432_v60 = vld [vmem:[#allocation2 + $0x212] ss:$2 sm:$0xff] }
  0x32   :  { %5274 = vrot.lane.b32.xlu0 %v5273_v27, %s6384_s16  ;;  %291 = vst.msk [vmem:[#allocation2 + $0x69] sm:$0xff] %vm14_vm0, %v227_v26 }
  0x33   :  { %v402_v32 = vld [vmem:[#allocation2 + $0x241] ss:$2 sm:$0xff]  ;;  %294 = vst.msk [vmem:[#allocation2 + $0x91] sm:$0xff] %vm14_vm0, %v230_v28  ;;  %v434_v62 = vld [vmem:[#allocation2 + $0x242] ss:$2 sm:$0xff] }
  0x34   :  { %v5298_v34 = vpack.i.bf16 %v402_v32, %v400_v29  ;;  %295 = vst.msk [vmem:[#allocation2 + $0x99] sm:$0xff] %vm14_vm0, %v231_v30  ;;  %v5338_v3 = vpack.i.bf16 %v434_v62, %v432_v60  ;;  %v261_v60 = vld [vmem:[%s8333_s0 + $0x148] sm:$0xff]  ;;  %v264_v62 = vld [vmem:[%s8333_s0 + $0x160] sm:$0xff] }
  0x35   :  { %v392_v36 = vld [vmem:[#allocation2 + $0x121] ss:$2 sm:$0xff]  ;;  %338 = vst.msk [vmem:[#allocation2 + $0x2d1] sm:$0xff] %vm14_vm0, %v274_v31  ;;  %v424_v55 = vld [vmem:[#allocation2 + $0x122] ss:$2 sm:$0xff] }
  0x36   :  { %5299 = vrot.lane.b32.xlu2 %v5298_v34, %s6384_s16  ;;  %339 = vst.msk [vmem:[#allocation2 + $0x2d9] sm:$0xff] %vm14_vm0, %v275_v33 }
  0x37   :  { %v394_v38 = vld [vmem:[#allocation2 + $0x151] ss:$2 sm:$0xff]  ;;  %342 = vst.msk [vmem:[#allocation2 + $0x301] sm:$0xff] %vm14_vm0, %v278_v35  ;;  %v426_v56 = vld [vmem:[#allocation2 + $0x152] ss:$2 sm:$0xff] }
  0x38   :  { %v5288_v39 = vpack.i.bf16 %v394_v38, %v392_v36  ;;  %343 = vst.msk [vmem:[#allocation2 + $0x309] sm:$0xff] %vm14_vm0, %v279_v37  ;;  %v5328_v58 = vpack.i.bf16 %v426_v56, %v424_v55  ;;  %v228_v38 = vld [vmem:[%s8333_s0 + $0x40] sm:$0xff] }
  0x39   :  { %v384_v40 = vld [vmem:[#allocation2 + $0x61] ss:$2 sm:$0xff]  ;;  %18 = vst.msk [vmem:[#allocation2 + $0x10] sm:$0x3] %vm17_vm1, %v8337_v0  ;;  %v416_v4 = vld [vmem:[#allocation2 + $0x62] ss:$2 sm:$0xff] }
  0x3a   :  { %5289 = vrot.lane.b32.xlu1 %v5288_v39, %s6384_s16  ;;  %21 = vst.msk [vmem:[#allocation2 + $0x1c0] sm:$0x3] %vm17_vm1, %v8337_v0  ;;  %v229_v39 = vld [vmem:[%s8333_s0 + $0x48] sm:$0xff]  ;;  %v256_v55 = vld [vmem:[%s8333_s0 + $0x120] sm:$0xff] }
  0x3b   :  { %v386_v41 = vld [vmem:[#allocation2 + $0x91] ss:$2 sm:$0xff]  ;;  %25 = vst.msk [vmem:[#allocation2 + $0x1a8] sm:$0x3] %vm17_vm1, %v8337_v0  ;;  %v418_v5 = vld [vmem:[#allocation2 + $0x92] ss:$2 sm:$0xff] }
  0x3c   :  { %v5278_v42 = vpack.i.bf16 %v386_v41, %v384_v40  ;;  %28 = vst.msk [vmem:[#allocation2 + $0x358] sm:$0x3] %vm17_vm1, %v8337_v0  ;;  %v5318_v7 = vpack.i.bf16 %v418_v5, %v416_v4  ;;  %v232_v40 = vld [vmem:[%s8333_s0 + $0x60] sm:$0xff]  ;;  %v233_v41 = vld [vmem:[%s8333_s0 + $0x68] sm:$0xff] }
  0x3d   :  { %v408_v43 = vld [vmem:[#allocation2 + $0x2d1] ss:$2 sm:$0xff]  ;;  %97 = vst.msk [vmem:[#allocation3 + $0x10] sm:$0x3] %vm17_vm1, %v8337_v0  ;;  %v440_v14 = vld [vmem:[#allocation2 + $0x2d2] ss:$2 sm:$0xff] }
  0x3e   :  { %5279 = vrot.lane.b32.xlu0 %v5278_v42, %s6384_s16  ;;  %100 = vst.msk [vmem:[#allocation3 + $0x100] sm:$0x3] %vm17_vm1, %v8337_v0  ;;  %v236_v42 = vld [vmem:[%s8333_s0 + $0x80] sm:$0xff]  ;;  %v245_v4 = vld [vmem:[%s8333_s0 + $0xc8] sm:$0xff] }
  0x3f   :  { %v410_v46 = vld [vmem:[#allocation2 + $0x301] ss:$2 sm:$0xff]  ;;  %104 = vst.msk [vmem:[#allocation3 + $0xe8] sm:$0x3] %vm17_vm1, %v8337_v0  ;;  %v442_v15 = vld [vmem:[#allocation2 + $0x302] ss:$2 sm:$0xff] }
  0x40   :  { %v5308_v48 = vpack.i.bf16 %v410_v46, %v408_v43  ;;  %v412_v49 = vld [vmem:[#allocation2 + $0x2] ss:$2 sm:$0xff]  ;;  %107 = vst.msk [vmem:[#allocation3 + $0x1d8] sm:$0x3] %vm17_vm1, %v8337_v0  ;;  %v444_v8 = vld [vmem:[#allocation2 + $0x3] ss:$2 sm:$0xff]  ;;  %v5348_v16 = vpack.i.bf16 %v442_v15, %v440_v14 }
  0x41   :  { %v5313_v51 = vpack.i.bf16 %v414_v44, %v412_v49  ;;  %330 = vst.msk [vmem:[#allocation2 + $0x271] sm:$0xff] %vm14_vm0, %v266_v45  ;;  %v428_v11 = vld [vmem:[#allocation2 + $0x1b2] ss:$2 sm:$0xff]  ;;  %v460_v26 = vld [vmem:[#allocation2 + $0x1b3] ss:$2 sm:$0xff]  ;;  %v237_v43 = vld [vmem:[%s8333_s0 + $0x88] sm:$0xff] }
  0x42   :  { %5309 = vrot.lane.b32.xlu1 %v5308_v48, %s6384_s16  ;;  %331 = vst.msk [vmem:[#allocation2 + $0x279] sm:$0xff] %vm14_vm0, %v267_v47  ;;  %v5333_v13 = vpack.i.bf16 %v430_v12, %v428_v11  ;;  %v240_v44 = vld [vmem:[%s8333_s0 + $0xa0] sm:$0xff]  ;;  %v241_v45 = vld [vmem:[%s8333_s0 + $0xa8] sm:$0xff]  ;;  %vm2053_vm1 = vcmask 982016  }
  0x43   :  { %5314 = vrot.lane.b32.xlu2 %v5313_v51, %s6385_s17  ;;  %334 = vst.msk [vmem:[#allocation2 + $0x2a1] sm:$0xff] %vm14_vm0, %v270_v50  ;;  %v220_v46 = vld [vmem:[%s8333_s0] sm:$0xff]  ;;  %v221_v47 = vld [vmem:[%s8333_s0 + $0x8] sm:$0xff] }
  0x44   :  { %335 = vst.msk [vmem:[#allocation2 + $0x2a9] sm:$0xff] %vm14_vm0, %v271_v52  ;;  %v224_v48 = vld [vmem:[%s8333_s0 + $0x20] sm:$0xff]  ;;  %v225_v50 = vld [vmem:[%s8333_s0 + $0x28] sm:$0xff] }
  0x45   :  { %64 = vst.msk [vmem:[#allocation2 + $0x41] sm:$0x1] %vm30_vm2, %v8337_v0  ;;  %v252_v51 = vld [vmem:[%s8333_s0 + $0x100] sm:$0xff]  ;;  %v277_v11 = vld [vmem:[%s8333_s0 + $0x1c8] sm:$0xff] }
  0x46   :  { %31 = vst.msk [vmem:[#allocation2 + $0x18] sm:$0x1] %vm30_vm2, %v8337_v0  ;;  %v281_v15 = vld [vmem:[%s8333_s0 + $0x1e8] sm:$0xff] }
  0x47   :  { %32 = vst.msk [vmem:[#allocation2 + $0x30] sm:$0x1] %vm30_vm2, %v8337_v0 }
  0x48   :  { %33 = vst.msk [vmem:[#allocation2 + $0x48] sm:$0x1] %vm30_vm2, %v8337_v0 }
  0x49   :  { %v404_v59 = vld [vmem:[#allocation2 + $0x271] ss:$2 sm:$0xff]  ;;  %34 = vst.msk [vmem:[#allocation2 + $0x60] sm:$0x1] %vm30_vm2, %v8337_v0  ;;  %v436_v1 = vld [vmem:[#allocation2 + $0x272] ss:$2 sm:$0xff] }
  0x4a   :  { %5324 = vrot.lane.b32.xlu1 %v5323_v57, %s6385_s17  ;;  %35 = vst.msk [vmem:[#allocation2 + $0x78] sm:$0x1] %vm30_vm2, %v8337_v0  ;;  %v257_v57 = vld [vmem:[%s8333_s0 + $0x128] sm:$0xff] }
  0x4b   :  { %v406_v61 = vld [vmem:[#allocation2 + $0x2a1] ss:$2 sm:$0xff]  ;;  %5329 = vrot.lane.b32.xlu2 %v5328_v58, %s6385_s17  ;;  %36 = vst.msk [vmem:[#allocation2 + $0x90] sm:$0x1] %vm30_vm2, %v8337_v0  ;;  %v438_v2 = vld [vmem:[#allocation2 + $0x2a2] ss:$2 sm:$0xff] }
  0x4c   :  { %v5303_v63 = vpack.i.bf16 %v406_v61, %v404_v59  ;;  %37 = vst.msk [vmem:[#allocation2 + $0xa8] sm:$0x1] %vm30_vm2, %v8337_v0  ;;  %v5343_v6 = vpack.i.bf16 %v438_v2, %v436_v1  ;;  %v446_v9 = vld [vmem:[#allocation2 + $0x33] ss:$2 sm:$0xff]  ;;  %v265_v1 = vld [vmem:[%s8333_s0 + $0x168] sm:$0xff] }
  0x4d   :  { %38 = vst.msk [vmem:[#allocation2 + $0xc0] sm:$0x1] %vm30_vm2, %v8337_v0  ;;  %v5353_v10 = vpack.i.bf16 %v446_v9, %v444_v8  ;;  %v260_v58 = vld [vmem:[%s8333_s0 + $0x140] sm:$0xff]  ;;  %v249_v8 = vld [vmem:[%s8333_s0 + $0xe8] sm:$0xff] }
  0x4e   :  { %5304 = vrot.lane.b32.xlu0 %v5303_v63, %s6384_s16  ;;  %39 = vst.msk [vmem:[#allocation2 + $0xd8] sm:$0x1] %vm30_vm2, %v8337_v0  ;;  %v244_v2 = vld [vmem:[%s8333_s0 + $0xc0] sm:$0xff] }
  0x4f   :  { %40 = vst.msk [vmem:[#allocation2 + $0xf0] sm:$0x1] %vm30_vm2, %v8337_v0  ;;  %v276_v9 = vld [vmem:[%s8333_s0 + $0x1c0] sm:$0xff] }
  0x50   :  { %41 = vst.msk [vmem:[#allocation2 + $0x108] sm:$0x1] %vm30_vm2, %v8337_v0 }
  0x51   :  { %42 = vst.msk [vmem:[#allocation2 + $0x120] sm:$0x1] %vm30_vm2, %v8337_v0 }
  0x52   :  { %5339 = vrot.lane.b32.xlu1 %v5338_v3, %s6385_s17  ;;  %43 = vst.msk [vmem:[#allocation2 + $0x138] sm:$0x1] %vm30_vm2, %v8337_v0 }
  0x53   :  { %5344 = vrot.lane.b32.xlu2 %v5343_v6, %s6385_s17  ;;  %44 = vst.msk [vmem:[#allocation2 + $0x150] sm:$0x1] %vm30_vm2, %v8337_v0  ;;  %v248_v6 = vld [vmem:[%s8333_s0 + $0xe0] sm:$0xff] }
  0x54   :  { %45 = vst.msk [vmem:[#allocation2 + $0x168] sm:$0x1] %vm30_vm2, %v8337_v0 }
  0x55   :  { %46 = vst.msk [vmem:[#allocation2 + $0x180] sm:$0x1] %vm30_vm2, %v8337_v0 }
  0x56   :  { %5319 = vrot.lane.b32.xlu0 %v5318_v7, %s6385_s17  ;;  %47 = vst.msk [vmem:[#allocation2 + $0x1c8] sm:$0x1] %vm30_vm2, %v8337_v0 }
  0x57   :  { %48 = vst.msk [vmem:[#allocation2 + $0x1e0] sm:$0x1] %vm30_vm2, %v8337_v0 }
  0x58   :  { %49 = vst.msk [vmem:[#allocation2 + $0x1f8] sm:$0x1] %vm30_vm2, %v8337_v0 }
  0x59   :  { %50 = vst.msk [vmem:[#allocation2 + $0x210] sm:$0x1] %vm30_vm2, %v8337_v0 }
  0x5a   :  { %5354 = vrot.lane.b32.xlu1 %v5353_v10, %s6386_s18  ;;  %51 = vst.msk [vmem:[#allocation2 + $0x228] sm:$0x1] %vm30_vm2, %v8337_v0 }
  0x5b   :  { %52 = vst.msk [vmem:[#allocation2 + $0x240] sm:$0x1] %vm30_vm2, %v8337_v0 }
  0x5c   :  { %53 = vst.msk [vmem:[#allocation2 + $0x258] sm:$0x1] %vm30_vm2, %v8337_v0 }
  0x5d   :  { %54 = vst.msk [vmem:[#allocation2 + $0x270] sm:$0x1] %vm30_vm2, %v8337_v0 }
  0x5e   :  { %5334 = vrot.lane.b32.xlu0 %v5333_v13, %s6385_s17  ;;  %55 = vst.msk [vmem:[#allocation2 + $0x288] sm:$0x1] %vm30_vm2, %v8337_v0  ;;  %v280_v13 = vld [vmem:[%s8333_s0 + $0x1e0] sm:$0xff] }
  0x5f   :  { %56 = vst.msk [vmem:[#allocation2 + $0x2a0] sm:$0x1] %vm30_vm2, %v8337_v0 }
  0x60   :  { %57 = vst.msk [vmem:[#allocation2 + $0x2b8] sm:$0x1] %vm30_vm2, %v8337_v0 }
  0x61   :  { %58 = vst.msk [vmem:[#allocation2 + $0x2d0] sm:$0x1] %vm30_vm2, %v8337_v0 }
  0x62   :  { %59 = vst.msk [vmem:[#allocation2 + $0x2e8] sm:$0x1] %vm30_vm2, %v8337_v0 }
  0x63   :  { %60 = vst.msk [vmem:[#allocation2 + $0x300] sm:$0x1] %vm30_vm2, %v8337_v0 }
  0x64   :  { %61 = vst.msk [vmem:[#allocation2 + $0x318] sm:$0x1] %vm30_vm2, %v8337_v0 }
  0x65   :  { %62 = vst.msk [vmem:[#allocation2 + $0x330] sm:$0x1] %vm30_vm2, %v8337_v0 }
  0x66   :  { %63 = vst.msk [vmem:[#allocation2 + $0x29] sm:$0x1] %vm30_vm2, %v8337_v0  ;;  %5349 = vrot.lane.b32.xlu0 %v5348_v16, %s6385_s17  ;;  %v268_v16 = vld [vmem:[%s8333_s0 + $0x180] sm:$0xff] }
  0x67   :  { %65 = vst.msk [vmem:[#allocation2 + $0x59] sm:$0x1] %vm30_vm2, %v8337_v0 }
  0x68   :  { %66 = vst.msk [vmem:[#allocation2 + $0x71] sm:$0x1] %vm30_vm2, %v8337_v0 }
  0x69   :  { %67 = vst.msk [vmem:[#allocation2 + $0x89] sm:$0x1] %vm30_vm2, %v8337_v0 }
  0x6a   :  { %68 = vst.msk [vmem:[#allocation2 + $0xa1] sm:$0x1] %vm30_vm2, %v8337_v0 }
  0x6b   :  { %69 = vst.msk [vmem:[#allocation2 + $0xb9] sm:$0x1] %vm30_vm2, %v8337_v0 }
  0x6c   :  { %70 = vst.msk [vmem:[#allocation2 + $0xd1] sm:$0x1] %vm30_vm2, %v8337_v0 }
  0x6d   :  { %71 = vst.msk [vmem:[#allocation2 + $0xe9] sm:$0x1] %vm30_vm2, %v8337_v0 }
  0x6e   :  { %72 = vst.msk [vmem:[#allocation2 + $0x101] sm:$0x1] %vm30_vm2, %v8337_v0 }
  0x6f   :  { %73 = vst.msk [vmem:[#allocation2 + $0x119] sm:$0x1] %vm30_vm2, %v8337_v0  ;;  %v448_v17 = vld [vmem:[#allocation2 + $0x63] ss:$2 sm:$0xff] }
  0x70   :  { %74 = vst.msk [vmem:[#allocation2 + $0x131] sm:$0x1] %vm30_vm2, %v8337_v0 }
  0x71   :  { %75 = vst.msk [vmem:[#allocation2 + $0x149] sm:$0x1] %vm30_vm2, %v8337_v0  ;;  %v450_v18 = vld [vmem:[#allocation2 + $0x93] ss:$2 sm:$0xff] }
  0x72   :  { %76 = vst.msk [vmem:[#allocation2 + $0x161] sm:$0x1] %vm30_vm2, %v8337_v0  ;;  %v5358_v19 = vpack.i.bf16 %v450_v18, %v448_v17  ;;  %v269_v18 = vld [vmem:[%s8333_s0 + $0x188] sm:$0xff] }
  0x73   :  { %77 = vst.msk [vmem:[#allocation2 + $0x179] sm:$0x1] %vm30_vm2, %v8337_v0  ;;  %v452_v20 = vld [vmem:[#allocation2 + $0xc3] ss:$2 sm:$0xff] }
  0x74   :  { %78 = vst.msk [vmem:[#allocation2 + $0x191] sm:$0x1] %vm30_vm2, %v8337_v0  ;;  %5359 = vrot.lane.b32.xlu2 %v5358_v19, %s6386_s18 }
  0x75   :  { %79 = vst.msk [vmem:[#allocation2 + $0x1d9] sm:$0x1] %vm30_vm2, %v8337_v0  ;;  %v454_v21 = vld [vmem:[#allocation2 + $0xf3] ss:$2 sm:$0xff] }
  0x76   :  { %80 = vst.msk [vmem:[#allocation2 + $0x1f1] sm:$0x1] %vm30_vm2, %v8337_v0  ;;  %v5363_v22 = vpack.i.bf16 %v454_v21, %v452_v20  ;;  %v272_v20 = vld [vmem:[%s8333_s0 + $0x1a0] sm:$0xff] }
  0x77   :  { %81 = vst.msk [vmem:[#allocation2 + $0x209] sm:$0x1] %vm30_vm2, %v8337_v0  ;;  %v456_v23 = vld [vmem:[#allocation2 + $0x123] ss:$2 sm:$0xff] }
  0x78   :  { %82 = vst.msk [vmem:[#allocation2 + $0x221] sm:$0x1] %vm30_vm2, %v8337_v0  ;;  %5364 = vrot.lane.b32.xlu0 %v5363_v22, %s6386_s18  ;;  %v273_v22 = vld [vmem:[%s8333_s0 + $0x1a8] sm:$0xff] }
  0x79   :  { %83 = vst.msk [vmem:[#allocation2 + $0x239] sm:$0x1] %vm30_vm2, %v8337_v0  ;;  %v458_v24 = vld [vmem:[#allocation2 + $0x153] ss:$2 sm:$0xff] }
  0x7a   :  { %84 = vst.msk [vmem:[#allocation2 + $0x251] sm:$0x1] %vm30_vm2, %v8337_v0  ;;  %v5368_v25 = vpack.i.bf16 %v458_v24, %v456_v23  ;;  %v6958_v24 = vpop.permute.xlu2 %5294 }
  0x7b   :  { %85 = vst.msk [vmem:[#allocation2 + $0x269] sm:$0x1] %vm30_vm2, %v8337_v0 }
  0x7c   :  { %86 = vst.msk [vmem:[#allocation2 + $0x281] sm:$0x1] %vm30_vm2, %v8337_v0  ;;  %5369 = vrot.lane.b32.xlu1 %v5368_v25, %s6386_s18 }
  0x7d   :  { %87 = vst.msk [vmem:[#allocation2 + $0x299] sm:$0x1] %vm30_vm2, %v8337_v0  ;;  %v462_v27 = vld [vmem:[#allocation2 + $0x1e3] ss:$2 sm:$0xff] }
  0x7e   :  { %88 = vst.msk [vmem:[#allocation2 + $0x2b1] sm:$0x1] %vm30_vm2, %v8337_v0  ;;  %v5373_v28 = vpack.i.bf16 %v462_v27, %v460_v26 }
  0x7f   :  { %89 = vst.msk [vmem:[#allocation2 + $0x2c9] sm:$0x1] %vm30_vm2, %v8337_v0  ;;  %v464_v29 = vld [vmem:[#allocation2 + $0x213] ss:$2 sm:$0xff] }
  0x80   :  { %90 = vst.msk [vmem:[#allocation2 + $0x2e1] sm:$0x1] %vm30_vm2, %v8337_v0  ;;  %5374 = vrot.lane.b32.xlu2 %v5373_v28, %s6386_s18 }
  0x81   :  { %91 = vst.msk [vmem:[#allocation2 + $0x2f9] sm:$0x1] %vm30_vm2, %v8337_v0  ;;  %v466_v30 = vld [vmem:[#allocation2 + $0x243] ss:$2 sm:$0xff] }
  0x82   :  { %92 = vst.msk [vmem:[#allocation2 + $0x311] sm:$0x1] %vm30_vm2, %v8337_v0  ;;  %v5378_v31 = vpack.i.bf16 %v466_v30, %v464_v29 }
  0x83   :  { %93 = vst.msk [vmem:[#allocation2 + $0x329] sm:$0x1] %vm30_vm2, %v8337_v0  ;;  %v468_v32 = vld [vmem:[#allocation2 + $0x273] ss:$2 sm:$0xff] }
  0x84   :  { %94 = vst.msk [vmem:[#allocation2 + $0x341] sm:$0x1] %vm30_vm2, %v8337_v0  ;;  %5379 = vrot.lane.b32.xlu0 %v5378_v31, %s6386_s18 }
  0x85   :  { %109 = vst.msk [vmem:[#allocation3 + $0x18] sm:$0x1] %vm30_vm2, %v8337_v0  ;;  %v470_v33 = vld [vmem:[#allocation2 + $0x2a3] ss:$2 sm:$0xff] }
  0x86   :  { %110 = vst.msk [vmem:[#allocation3 + $0x30] sm:$0x1] %vm30_vm2, %v8337_v0  ;;  %v5383_v34 = vpack.i.bf16 %v470_v33, %v468_v32 }
  0x87   :  { %111 = vst.msk [vmem:[#allocation3 + $0x48] sm:$0x1] %vm30_vm2, %v8337_v0  ;;  %v472_v35 = vld [vmem:[#allocation2 + $0x2d3] ss:$2 sm:$0xff] }
  0x88   :  { %112 = vst.msk [vmem:[#allocation3 + $0x60] sm:$0x1] %vm30_vm2, %v8337_v0  ;;  %5384 = vrot.lane.b32.xlu1 %v5383_v34, %s6386_s18 }
  0x89   :  { %113 = vst.msk [vmem:[#allocation3 + $0x78] sm:$0x1] %vm30_vm2, %v8337_v0  ;;  %v474_v36 = vld [vmem:[#allocation2 + $0x303] ss:$2 sm:$0xff] }
  0x8a   :  { %114 = vst.msk [vmem:[#allocation3 + $0x90] sm:$0x1] %vm30_vm2, %v8337_v0  ;;  %v5388_v37 = vpack.i.bf16 %v474_v36, %v472_v35 }
  0x8b   :  { %115 = vst.msk [vmem:[#allocation3 + $0xa8] sm:$0x1] %vm30_vm2, %v8337_v0 }
  0x8c   :  { %116 = vst.msk [vmem:[#allocation3 + $0xc0] sm:$0x1] %vm30_vm2, %v8337_v0  ;;  %5389 = vrot.lane.b32.xlu2 %v5388_v37, %s6386_s18 }
  0x8d   :  { %117 = vst.msk [vmem:[#allocation3 + $0x108] sm:$0x1] %vm30_vm2, %v8337_v0 }
  0x8e   :  { %118 = vst.msk [vmem:[#allocation3 + $0x120] sm:$0x1] %vm30_vm2, %v8337_v0 }
  0x8f   :  { %119 = vst.msk [vmem:[#allocation3 + $0x138] sm:$0x1] %vm30_vm2, %v8337_v0 }
  0x90   :  { %120 = vst.msk [vmem:[#allocation3 + $0x150] sm:$0x1] %vm30_vm2, %v8337_v0 }
  0x91   :  { %121 = vst.msk [vmem:[#allocation3 + $0x168] sm:$0x1] %vm30_vm2, %v8337_v0 }
  0x92   :  { %122 = vst.msk [vmem:[#allocation3 + $0x180] sm:$0x1] %vm30_vm2, %v8337_v0 }
  0x93   :  { %123 = vst.msk [vmem:[#allocation3 + $0x198] sm:$0x1] %vm30_vm2, %v8337_v0 }
  0x94   :  { %124 = vst.msk [vmem:[#allocation3 + $0x1b0] sm:$0x1] %vm30_vm2, %v8337_v0 }
  0x95   :  { %126 = vst.msk [vmem:[#allocation3 + $0x29] sm:$0x1] %vm30_vm2, %v8337_v0 }
  0x96   :  { %128 = vst.msk [vmem:[#allocation3 + $0x41] sm:$0x1] %vm30_vm2, %v8337_v0 }
  0x97   :  { %130 = vst.msk [vmem:[#allocation3 + $0x59] sm:$0x1] %vm30_vm2, %v8337_v0 }
  0x98   :  { %132 = vst.msk [vmem:[#allocation3 + $0x71] sm:$0x1] %vm30_vm2, %v8337_v0 }
  0x99   :  { %134 = vst.msk [vmem:[#allocation3 + $0x89] sm:$0x1] %vm30_vm2, %v8337_v0 }
  0x9a   :  { %136 = vst.msk [vmem:[#allocation3 + $0xa1] sm:$0x1] %vm30_vm2, %v8337_v0 }
  0x9b   :  { %138 = vst.msk [vmem:[#allocation3 + $0xb9] sm:$0x1] %vm30_vm2, %v8337_v0 }
  0x9c   :  { %140 = vst.msk [vmem:[#allocation3 + $0xd1] sm:$0x1] %vm30_vm2, %v8337_v0 }
  0x9d   :  { %142 = vst.msk [vmem:[#allocation3 + $0x119] sm:$0x1] %vm30_vm2, %v8337_v0 }
  0x9e   :  { %144 = vst.msk [vmem:[#allocation3 + $0x131] sm:$0x1] %vm30_vm2, %v8337_v0 }
  0x9f   :  { %146 = vst.msk [vmem:[#allocation3 + $0x149] sm:$0x1] %vm30_vm2, %v8337_v0 }
  0xa0   :  { %148 = vst.msk [vmem:[#allocation3 + $0x161] sm:$0x1] %vm30_vm2, %v8337_v0 }
  0xa1   :  { %150 = vst.msk [vmem:[#allocation3 + $0x179] sm:$0x1] %vm30_vm2, %v8337_v0 }
  0xa2   :  { %152 = vst.msk [vmem:[#allocation3 + $0x191] sm:$0x1] %vm30_vm2, %v8337_v0 }
  0xa3   :  { %154 = vst.msk [vmem:[#allocation3 + $0x1a9] sm:$0x1] %vm30_vm2, %v8337_v0 }
  0xa4   :  { %156 = vst.msk [vmem:[#allocation3 + $0x1c1] sm:$0x1] %vm30_vm2, %v8337_v0 }
  0xa5   :  { %292 = vst.msk [vmem:[#allocation2 + $0x79] sm:$0xff] %vm14_vm0, %v228_v38 }
  0xa6   :  { %293 = vst.msk [vmem:[#allocation2 + $0x81] sm:$0xff] %vm14_vm0, %v229_v39  ;;  %v6965_v39 = vpop.permute.xlu2 %5299 }
  0xa7   :  { %296 = vst.msk [vmem:[#allocation2 + $0xa9] sm:$0xff] %vm14_vm0, %v232_v40 }
  0xa8   :  { %297 = vst.msk [vmem:[#allocation2 + $0xb1] sm:$0xff] %vm14_vm0, %v233_v41 }
  0xa9   :  { %300 = vst.msk [vmem:[#allocation2 + $0xd9] sm:$0xff] %vm14_vm0, %v236_v42 }
  0xaa   :  { %301 = vst.msk [vmem:[#allocation2 + $0xe1] sm:$0xff] %vm14_vm0, %v237_v43 }
  0xab   :  { %304 = vst.msk [vmem:[#allocation2 + $0x109] sm:$0xff] %vm14_vm0, %v240_v44 }
  0xac   :  { %305 = vst.msk [vmem:[#allocation2 + $0x111] sm:$0xff] %vm14_vm0, %v241_v45 }
  0xad   :  { %v479_v49 = vld [vmem:[#allocation2 + $0x78] ss:$2 sm:$0xff]  ;;  %284 = vst.msk [vmem:[#allocation2 + $0x19] sm:$0xff] %vm14_vm0, %v220_v46  ;;  %v511_v42 = vld [vmem:[#allocation2 + $0x79] ss:$2 sm:$0xff] }
  0xae   :  { %285 = vst.msk [vmem:[#allocation2 + $0x21] sm:$0xff] %vm14_vm0, %v221_v47 }
  0xaf   :  { %v481_v52 = vld [vmem:[#allocation2 + $0xa8] ss:$2 sm:$0xff]  ;;  %288 = vst.msk [vmem:[#allocation2 + $0x49] sm:$0xff] %vm14_vm0, %v224_v48  ;;  %v513_v43 = vld [vmem:[#allocation2 + $0xa9] ss:$2 sm:$0xff] }
  0xb0   :  { %v5398_v54 = vpack.i.bf16 %v481_v52, %v479_v49  ;;  %289 = vst.msk [vmem:[#allocation2 + $0x51] sm:$0xff] %vm14_vm0, %v225_v50  ;;  %v5438_v44 = vpack.i.bf16 %v513_v43, %v511_v42  ;;  %v829_v43 = vld [vmem:[#allocation2 + $0x7b] ss:$2 sm:$0xff] }
  0xb1   :  { %v483_v56 = vld [vmem:[#allocation2 + $0xd8] ss:$2 sm:$0xff]  ;;  %316 = vst.msk [vmem:[#allocation2 + $0x1c9] sm:$0xff] %vm14_vm0, %v252_v51  ;;  %v515_v33 = vld [vmem:[#allocation2 + $0xd9] ss:$2 sm:$0xff]  ;;  %v6975_v51 = vpop.permute.xlu2 %5314 }
  0xb2   :  { %5399 = vrot.lane.b32.xlu1 %v5398_v54, %s6387_s27  ;;  %317 = vst.msk [vmem:[#allocation2 + $0x1d1] sm:$0xff] %vm14_vm0, %v253_v53  ;;  %v6977_v54 = vpop.permute.xlu1 %5284 }
  0xb3   :  { %v485_v59 = vld [vmem:[#allocation2 + $0x108] ss:$2 sm:$0xff]  ;;  %320 = vst.msk [vmem:[#allocation2 + $0x1f9] sm:$0xff] %vm14_vm0, %v256_v55  ;;  %v517_v34 = vld [vmem:[#allocation2 + $0x109] ss:$2 sm:$0xff] }
  0xb4   :  { %v5403_v61 = vpack.i.bf16 %v485_v59, %v483_v56  ;;  %321 = vst.msk [vmem:[#allocation2 + $0x201] sm:$0xff] %vm14_vm0, %v257_v57  ;;  %v5443_v40 = vpack.i.bf16 %v517_v34, %v515_v33  ;;  %v545_v59 = vld [vmem:[#allocation2 + $0xaa] ss:$2 sm:$0xff] }
  0xb5   :  { %v475_v63 = vld [vmem:[#allocation2 + $0x18] ss:$2 sm:$0xff]  ;;  %324 = vst.msk [vmem:[#allocation2 + $0x229] sm:$0xff] %vm14_vm0, %v260_v58  ;;  %v507_v23 = vld [vmem:[#allocation2 + $0x19] ss:$2 sm:$0xff] }
  0xb6   :  { %5404 = vrot.lane.b32.xlu2 %v5403_v61, %s6387_s27  ;;  %325 = vst.msk [vmem:[#allocation2 + $0x231] sm:$0xff] %vm14_vm0, %v261_v60  ;;  %v539_v56 = vld [vmem:[#allocation2 + $0x1a] ss:$2 sm:$0xff] }
  0xb7   :  { %v477_v3 = vld [vmem:[#allocation2 + $0x48] ss:$2 sm:$0xff]  ;;  %328 = vst.msk [vmem:[#allocation2 + $0x259] sm:$0xff] %vm14_vm0, %v264_v62  ;;  %v509_v26 = vld [vmem:[#allocation2 + $0x49] ss:$2 sm:$0xff]  ;;  %v6992_v62 = vpop.permute.xlu0 %5274 }
  0xb8   :  { %v5393_v5 = vpack.i.bf16 %v477_v3, %v475_v63  ;;  %329 = vst.msk [vmem:[#allocation2 + $0x261] sm:$0xff] %vm14_vm0, %v265_v1  ;;  %v5433_v29 = vpack.i.bf16 %v509_v26, %v507_v23  ;;  %v541_v57 = vld [vmem:[#allocation2 + $0x4a] ss:$2 sm:$0xff]  ;;  %v543_v58 = vld [vmem:[#allocation2 + $0x7a] ss:$2 sm:$0xff] }
  0xb9   :  { %v491_v7 = vld [vmem:[#allocation2 + $0x1c8] ss:$2 sm:$0xff]  ;;  %308 = vst.msk [vmem:[#allocation2 + $0x139] sm:$0xff] %vm14_vm0, %v244_v2  ;;  %v523_v52 = vld [vmem:[#allocation2 + $0x1c9] ss:$2 sm:$0xff]  ;;  %v5473_v60 = vpack.i.bf16 %v541_v57, %v539_v56  ;;  %v5478_v61 = vpack.i.bf16 %v545_v59, %v543_v58  ;;  %v6994_v2 = vpop.permute.xlu2 %5329 }
  0xba   :  { %5394 = vrot.lane.b32.xlu0 %v5393_v5, %s6387_s27  ;;  %309 = vst.msk [vmem:[#allocation2 + $0x141] sm:$0xff] %vm14_vm0, %v245_v4  ;;  %v571_v23 = vld [vmem:[#allocation2 + $0x1b] ss:$2 sm:$0xff]  ;;  %v827_v42 = vld [vmem:[#allocation2 + $0x4b] ss:$2 sm:$0xff] }
  0xbb   :  { %v493_v10 = vld [vmem:[#allocation2 + $0x1f8] ss:$2 sm:$0xff]  ;;  %312 = vst.msk [vmem:[#allocation2 + $0x169] sm:$0xff] %vm14_vm0, %v248_v6  ;;  %v525_v53 = vld [vmem:[#allocation2 + $0x1f9] ss:$2 sm:$0xff]  ;;  %v7002_v6 = vpop.permute.xlu1 %5289 }
  0xbc   :  { %v5413_v12 = vpack.i.bf16 %v493_v10, %v491_v7  ;;  %313 = vst.msk [vmem:[#allocation2 + $0x171] sm:$0xff] %vm14_vm0, %v249_v8  ;;  %v5453_v55 = vpack.i.bf16 %v525_v53, %v523_v52  ;;  %v555_v7 = vld [vmem:[#allocation2 + $0x1ca] ss:$2 sm:$0xff]  ;;  %v557_v8 = vld [vmem:[#allocation2 + $0x1fa] ss:$2 sm:$0xff] }
  0xbd   :  { %v495_v14 = vld [vmem:[#allocation2 + $0x228] ss:$2 sm:$0xff]  ;;  %340 = vst.msk [vmem:[#allocation2 + $0x2e9] sm:$0xff] %vm14_vm0, %v276_v9  ;;  %v527_v45 = vld [vmem:[#allocation2 + $0x229] ss:$2 sm:$0xff]  ;;  %v5493_v10 = vpack.i.bf16 %v557_v8, %v555_v7 }
  0xbe   :  { %5414 = vrot.lane.b32.xlu1 %v5413_v12, %s6387_s27  ;;  %341 = vst.msk [vmem:[#allocation2 + $0x2f1] sm:$0xff] %vm14_vm0, %v277_v11  ;;  %v547_v11 = vld [vmem:[#allocation2 + $0xda] ss:$2 sm:$0xff]  ;;  %v549_v12 = vld [vmem:[#allocation2 + $0x10a] ss:$2 sm:$0xff] }
  0xbf   :  { %v497_v17 = vld [vmem:[#allocation2 + $0x258] ss:$2 sm:$0xff]  ;;  %344 = vst.msk [vmem:[#allocation2 + $0x319] sm:$0xff] %vm14_vm0, %v280_v13  ;;  %v529_v46 = vld [vmem:[#allocation2 + $0x259] ss:$2 sm:$0xff]  ;;  %v7015_v13 = vpop.permute.xlu0 %5279 }
  0xc0   :  { %v5418_v19 = vpack.i.bf16 %v497_v17, %v495_v14  ;;  %345 = vst.msk [vmem:[#allocation2 + $0x321] sm:$0xff] %vm14_vm0, %v281_v15  ;;  %v5458_v49 = vpack.i.bf16 %v529_v46, %v527_v45  ;;  %v5483_v14 = vpack.i.bf16 %v549_v12, %v547_v11  ;;  %v603_v15 = vld [vmem:[#allocation2 + $0x30] ss:$2 sm:$0xff]  ;;  %v605_v17 = vld [vmem:[#allocation2 + $0x60] ss:$2 sm:$0xff]  ;;  %v5538_v46 = vpack.i.bf16 %v829_v43, %v827_v42 }
  0xc1   :  { %v487_v21 = vld [vmem:[#allocation2 + $0x138] ss:$2 sm:$0xff]  ;;  %332 = vst.msk [vmem:[#allocation2 + $0x289] sm:$0xff] %vm14_vm0, %v268_v16  ;;  %v519_v36 = vld [vmem:[#allocation2 + $0x139] ss:$2 sm:$0xff]  ;;  %v7023_v16 = vpop.permute.xlu2 %5344 }
  0xc2   :  { %5419 = vrot.lane.b32.xlu2 %v5418_v19, %s6387_s27  ;;  %333 = vst.msk [vmem:[#allocation2 + $0x291] sm:$0xff] %vm14_vm0, %v269_v18  ;;  %v551_v4 = vld [vmem:[#allocation2 + $0x13a] ss:$2 sm:$0xff]  ;;  %v635_v18 = vld [vmem:[#allocation2 + $0x31] ss:$2 sm:$0xff] }
  0xc3   :  { %v489_v25 = vld [vmem:[#allocation2 + $0x168] ss:$2 sm:$0xff]  ;;  %336 = vst.msk [vmem:[#allocation2 + $0x2b9] sm:$0xff] %vm14_vm0, %v272_v20  ;;  %v521_v37 = vld [vmem:[#allocation2 + $0x169] ss:$2 sm:$0xff]  ;;  %v7025_v20 = vpop.permute.xlu1 %5309 }
  0xc4   :  { %v5408_v27 = vpack.i.bf16 %v489_v25, %v487_v21  ;;  %337 = vst.msk [vmem:[#allocation2 + $0x2c1] sm:$0xff] %vm14_vm0, %v273_v22  ;;  %v5448_v41 = vpack.i.bf16 %v521_v37, %v519_v36  ;;  %v553_v5 = vld [vmem:[#allocation2 + $0x16a] ss:$2 sm:$0xff]  ;;  %v637_v19 = vld [vmem:[#allocation2 + $0x61] ss:$2 sm:$0xff]  ;;  %v5503_v21 = vpack.i.bf16 %v605_v17, %v603_v15 }
  0xc5   :  { %v503_v28 = vld [vmem:[#allocation2 + $0x2e8] ss:$2 sm:$0xff]  ;;  %158 = vst.msk [vmem:[#allocation4] sm:$0xff] %vm157_vm3, %v8337_v0  ;;  %v535_v63 = vld [vmem:[#allocation2 + $0x2e9] ss:$2 sm:$0xff]  ;;  %v5488_v9 = vpack.i.bf16 %v553_v5, %v551_v4  ;;  %v5508_v22 = vpack.i.bf16 %v637_v19, %v635_v18 }
  0xc6   :  { %5409 = vrot.lane.b32.xlu0 %v5408_v27, %s6387_s27  ;;  %159 = vst.msk [vmem:[#allocation4 + $0x8] sm:$0xff] %vm157_vm3, %v8337_v0  ;;  %v573_v25 = vld [vmem:[#allocation2 + $0x4b] ss:$2 sm:$0xff]  ;;  %v667_v36 = vld [vmem:[#allocation2 + $0x32] ss:$2 sm:$0xff] }
  0xc7   :  { %v505_v30 = vld [vmem:[#allocation2 + $0x318] ss:$2 sm:$0xff]  ;;  %162 = vst.msk [vmem:[#allocation4 + $0x90] sm:$0xff] %vm157_vm3, %v8337_v0  ;;  %v537_v1 = vld [vmem:[#allocation2 + $0x319] ss:$2 sm:$0xff]  ;;  %v5498_v26 = vpack.i.bf16 %v573_v25, %v571_v23  ;;  %v250_v25 = vld [vmem:[%s8333_s0 + $0xf0] sm:$0xff] }
  0xc8   :  { %v5428_v31 = vpack.i.bf16 %v505_v30, %v503_v28  ;;  %163 = vst.msk [vmem:[#allocation4 + $0x98] sm:$0xff] %vm157_vm3, %v8337_v0  ;;  %v5468_v3 = vpack.i.bf16 %v537_v1, %v535_v63  ;;  %v699_v27 = vld [vmem:[#allocation2 + $0x33] ss:$2 sm:$0xff]  ;;  %v7030_v28 = vpop.permute.xlu0 %5304  ;;  %v731_v30 = vld [vmem:[#allocation2 + $0x48] ss:$2 sm:$0xff] }
  0xc9   :  { %v499_v32 = vld [vmem:[#allocation2 + $0x288] ss:$2 sm:$0xff]  ;;  %v531_v47 = vld [vmem:[#allocation2 + $0x289] ss:$2 sm:$0xff]  ;;  %166 = vst.msk [vmem:[#allocation4 + $0x78] sm:$0xff] %vm157_vm3, %v8337_v0 }
  0xca   :  { %5429 = vrot.lane.b32.xlu1 %v5428_v31, %s6387_s27  ;;  %5434 = vrot.lane.b32.xlu2 %v5433_v29, %s6388_s10  ;;  %167 = vst.msk [vmem:[#allocation4 + $0x80] sm:$0xff] %vm157_vm3, %v8337_v0  ;;  %v701_v29 = vld [vmem:[#allocation2 + $0x63] ss:$2 sm:$0xff]  ;;  %v733_v31 = vld [vmem:[#allocation2 + $0x78] ss:$2 sm:$0xff] }
  0xcb   :  { %v501_v35 = vld [vmem:[#allocation2 + $0x2b8] ss:$2 sm:$0xff]  ;;  %v533_v48 = vld [vmem:[#allocation2 + $0x2b9] ss:$2 sm:$0xff]  ;;  %169 = vst.msk [vmem:[#allocation4 + $0x108] sm:$0xff] %vm157_vm3, %v8337_v0  ;;  %v5518_v33 = vpack.i.bf16 %v701_v29, %v699_v27  ;;  %v5523_v34 = vpack.i.bf16 %v733_v31, %v731_v30 }
  0xcc   :  { %v5423_v38 = vpack.i.bf16 %v501_v35, %v499_v32  ;;  %v5463_v50 = vpack.i.bf16 %v533_v48, %v531_v47  ;;  %170 = vst.msk [vmem:[#allocation4 + $0x110] sm:$0xff] %vm157_vm3, %v8337_v0  ;;  %v7035_v35 = vpop.permute.xlu1 %5324  ;;  %v669_v37 = vld [vmem:[#allocation2 + $0x62] ss:$2 sm:$0xff]  ;;  %v763_v48 = vld [vmem:[#allocation2 + $0x49] ss:$2 sm:$0xff] }
  0xcd   :  { %182 = vst.msk [vmem:[#allocation4 + $0x1d] sm:$0xff] %vm157_vm3, %v8337_v0  ;;  %v607_v53 = vld [vmem:[#allocation2 + $0x90] ss:$2 sm:$0xff]  ;;  %v639_v56 = vld [vmem:[#allocation2 + $0x91] ss:$2 sm:$0xff] }
  0xce   :  { %5424 = vrot.lane.b32.xlu0 %v5423_v38, %s6387_s27  ;;  %185 = vst.msk [vmem:[#allocation4 + $0x35] sm:$0xff] %vm157_vm3, %v8337_v0  ;;  %v7032_v32 = vpop.permute.xlu2 %5359  ;;  %v5513_v38 = vpack.i.bf16 %v669_v37, %v667_v36  ;;  %v641_v57 = vld [vmem:[#allocation2 + $0xc1] ss:$2 sm:$0xff]  ;;  %v735_v8 = vld [vmem:[#allocation2 + $0xa8] ss:$2 sm:$0xff] }
  0xcf   :  { %187 = vst.msk [vmem:[#allocation4 + $0x4d] sm:$0xff] %vm157_vm3, %v8337_v0  ;;  %v5553_v59 = vpack.i.bf16 %v641_v57, %v639_v56  ;;  %v577_v63 = vld [vmem:[#allocation2 + $0xab] ss:$2 sm:$0xff]  ;;  %v671_v12 = vld [vmem:[#allocation2 + $0x92] ss:$2 sm:$0xff] }
  0xd0   :  { %189 = vst.msk [vmem:[#allocation4 + $0x65] sm:$0xff] %vm157_vm3, %v8337_v0  ;;  %v703_v4 = vld [vmem:[#allocation2 + $0x93] ss:$2 sm:$0xff]  ;;  %v705_v5 = vld [vmem:[#allocation2 + $0xc3] ss:$2 sm:$0xff] }
  0xd1   :  { %191 = vst.msk [vmem:[#allocation4 + $0xad] sm:$0xff] %vm157_vm3, %v8337_v0  ;;  %v799_v19 = vld [vmem:[#allocation2 + $0xaa] ss:$2 sm:$0xff]  ;;  %v833_v23 = vld [vmem:[#allocation2 + $0xdb] ss:$2 sm:$0xff] }
  0xd2   :  { %5444 = vrot.lane.b32.xlu1 %v5443_v40, %s6388_s10  ;;  %5449 = vrot.lane.b32.xlu2 %v5448_v41, %s6388_s10  ;;  %193 = vst.msk [vmem:[#allocation4 + $0xc5] sm:$0xff] %vm157_vm3, %v8337_v0  ;;  %v795_v40 = vld [vmem:[#allocation2 + $0x4a] ss:$2 sm:$0xff]  ;;  %v797_v41 = vld [vmem:[#allocation2 + $0x7a] ss:$2 sm:$0xff] }
  0xd3   :  { %195 = vst.msk [vmem:[#allocation4 + $0xdd] sm:$0xff] %vm157_vm3, %v8337_v0  ;;  %v5533_v45 = vpack.i.bf16 %v797_v41, %v795_v40  ;;  %v767_v31 = vld [vmem:[#allocation2 + $0xa9] ss:$2 sm:$0xff]  ;;  %v611_v37 = vld [vmem:[#allocation2 + $0xf0] ss:$2 sm:$0xff] }
  0xd4   :  { %197 = vst.msk [vmem:[#allocation4 + $0xf5] sm:$0xff] %vm157_vm3, %v8337_v0  ;;  %v643_v40 = vld [vmem:[#allocation2 + $0xf1] ss:$2 sm:$0xff]  ;;  %v645_v41 = vld [vmem:[#allocation2 + $0x121] ss:$2 sm:$0xff] }
  0xd5   :  { %8347 = vst [vmem:[#allocation6_spill] sm:$0xff] %v7025_v20  ;;  %v739_v56 = vld [vmem:[#allocation2 + $0x108] ss:$2 sm:$0xff]  ;;  %v741_v57 = vld [vmem:[#allocation2 + $0x138] ss:$2 sm:$0xff] }
  0xd6   :  { %5439 = vrot.lane.b32.xlu0 %v5438_v44, %s6388_s10  ;;  %v7039_v44 = vpop.permute.xlu0 %5319  ;;  %200 = vst.msk [vmem:[#allocation5] sm:$0xff] %vm199_vm4, %v8337_v0  ;;  %v565_v20 = vld [vmem:[#allocation2 + $0x2ba] ss:$2 sm:$0xff] }
  0xd7   :  { %203 = vst.msk [vmem:[#allocation5 + $0x40] sm:$0xff] %vm199_vm4, %v8337_v0 }
  0xd8   :  { %206 = vst.msk [vmem:[#allocation5 + $0x30] sm:$0xff] %vm199_vm4, %v8337_v0 }
  0xd9   :  { %208 = vst.msk [vmem:[#allocation5 + $0x70] sm:$0xff] %vm199_vm4, %v8337_v0 }
  0xda   :  { %5459 = vrot.lane.b32.xlu1 %v5458_v49, %s6388_s10  ;;  %5464 = vrot.lane.b32.xlu2 %v5463_v50, %s6388_s10  ;;  %v7042_v47 = vpop.permute.xlu2 %5374  ;;  %v765_v49 = vld [vmem:[#allocation2 + $0x79] ss:$2 sm:$0xff]  ;;  %v7044_v50 = vpop.permute.xlu1 %5339  ;;  %216 = vst.msk [vmem:[#allocation5 + $0x13] sm:$0xff] %vm199_vm4, %v8337_v0 }
  0xdb   :  { %v5528_v52 = vpack.i.bf16 %v765_v49, %v763_v48  ;;  %217 = vst.msk [vmem:[#allocation5 + $0x23] sm:$0xff] %vm199_vm4, %v8337_v0  ;;  %v579_v48 = vld [vmem:[#allocation2 + $0xdb] ss:$2 sm:$0xff]  ;;  %v581_v49 = vld [vmem:[#allocation2 + $0x10b] ss:$2 sm:$0xff] }
  0xdc   :  { %218 = vst.msk [vmem:[#allocation5 + $0x53] sm:$0xff] %vm199_vm4, %v8337_v0 }
  0xdd   :  { %219 = vst.msk [vmem:[#allocation5 + $0x63] sm:$0xff] %vm199_vm4, %v8337_v0  ;;  %v5317_v0 = vunpack.i.h.bf16 %v6975_v51 }
  0xde   :  { %5454 = vrot.lane.b32.xlu0 %v5453_v55, %s6388_s10  ;;  %v609_v55 = vld [vmem:[#allocation2 + $0xc0] ss:$2 sm:$0xff]  ;;  %314 = vst.msk [vmem:[#allocation2 + $0x181] sm:$0xff] %vm14_vm0, %v250_v25 }
  0xdf   :  { %v5548_v58 = vpack.i.bf16 %v609_v55, %v607_v53  ;;  %v707_v53 = vld [vmem:[#allocation2 + $0xf3] ss:$2 sm:$0xff]  ;;  %v709_v55 = vld [vmem:[#allocation2 + $0x123] ss:$2 sm:$0xff] }
  0xe2   :  { %5474 = vrot.lane.b32.xlu1 %v5473_v60, %s6389_s11  ;;  %5479 = vrot.lane.b32.xlu2 %v5478_v61, %s6389_s11  ;;  %v7053_v60 = vpop.permute.xlu0 %5334  ;;  %v575_v61 = vld [vmem:[#allocation2 + $0x7b] ss:$2 sm:$0xff]  ;;  %v7067_v7 = vpop.permute.xlu1 %5354 }
  0xe6   :  { %5469 = vrot.lane.b32.xlu0 %v5468_v3, %s6388_s10  ;;  %v7059_v1 = vpop.permute.xlu2 %5389  ;;  %v5543_v3 = vpack.i.bf16 %v577_v63, %v575_v61  ;;  %v5608_v61 = vpack.i.bf16 %v709_v55, %v707_v53  ;;  %v5613_v63 = vpack.i.bf16 %v741_v57, %v739_v56  ;;  %v745_v53 = vld [vmem:[#allocation2 + $0x198] ss:$2 sm:$0xff] }
  0xe7   :  { %8348 = vst [vmem:[#allocation7_spill] sm:$0xff] %v7059_v1 }
  0xea   :  { %5489 = vrot.lane.b32.xlu1 %v5488_v9, %s6389_s11  ;;  %5494 = vrot.lane.b32.xlu2 %v5493_v10, %s6389_s11  ;;  %v737_v9 = vld [vmem:[#allocation2 + $0xd8] ss:$2 sm:$0xff]  ;;  %v5563_v10 = vpack.i.bf16 %v705_v5, %v703_v4  ;;  %v7074_v15 = vpop.permute.xlu0 %5349 }
  0xeb   :  { %v5568_v11 = vpack.i.bf16 %v737_v9, %v735_v8  ;;  %8349 = vst [vmem:[#allocation8_spill] sm:$0xff] %v7074_v15  ;;  %v677_v4 = vld [vmem:[#allocation2 + $0x122] ss:$2 sm:$0xff] }
  0xec   :  { %v803_v9 = vld [vmem:[#allocation2 + $0x10a] ss:$2 sm:$0xff] }
  0xed   :  { %v563_v15 = vld [vmem:[#allocation2 + $0x28a] ss:$2 sm:$0xff] }
  0xee   :  { %5484 = vrot.lane.b32.xlu0 %v5483_v14, %s6389_s11  ;;  %v673_v14 = vld [vmem:[#allocation2 + $0xc2] ss:$2 sm:$0xff]  ;;  %v7086_v27 = vpop.permute.xlu1 %5369 }
  0xef   :  { %v5558_v17 = vpack.i.bf16 %v673_v14, %v671_v12  ;;  %v837_v12 = vld [vmem:[#allocation2 + $0x13b] ss:$2 sm:$0xff] }
  0xf2   :  { %5504 = vrot.lane.b32.xlu1 %v5503_v21, %s6390_s12  ;;  %5509 = vrot.lane.b32.xlu2 %v5508_v22, %s6391_s13  ;;  %v801_v21 = vld [vmem:[#allocation2 + $0xda] ss:$2 sm:$0xff]  ;;  %v831_v22 = vld [vmem:[#allocation2 + $0xab] ss:$2 sm:$0xff]  ;;  %v7093_v36 = vpop.permute.xlu0 %5364 }
  0xf3   :  { %v5578_v29 = vpack.i.bf16 %v801_v21, %v799_v19  ;;  %v5583_v30 = vpack.i.bf16 %v833_v23, %v831_v22  ;;  %v771_v22 = vld [vmem:[#allocation2 + $0x109] ss:$2 sm:$0xff]  ;;  %v773_v23 = vld [vmem:[#allocation2 + $0x139] ss:$2 sm:$0xff] }
  0xf4   :  { %v5618_v25 = vpack.i.bf16 %v773_v23, %v771_v22 }
  0xf6   :  { %5499 = vrot.lane.b32.xlu0 %v5498_v26, %s6392_s14  ;;  %v251_v26 = vld [vmem:[%s8333_s0 + $0xf8] sm:$0xff] }
  0xf7   :  { %315 = vst.msk [vmem:[#allocation2 + $0x189] sm:$0xff] %vm14_vm0, %v251_v26 }
  0xfa   :  { %5519 = vrot.lane.b32.xlu1 %v5518_v33, %s6393_s15  ;;  %5524 = vrot.lane.b32.xlu2 %v5523_v34, %s6394_s19  ;;  %v769_v33 = vld [vmem:[#allocation2 + $0xd9] ss:$2 sm:$0xff] }
  0xfb   :  { %v5573_v34 = vpack.i.bf16 %v769_v33, %v767_v31  ;;  %v647_v31 = vld [vmem:[#allocation2 + $0x151] ss:$2 sm:$0xff] }
  0xfe   :  { %5514 = vrot.lane.b32.xlu0 %v5513_v38, %s6395_s20  ;;  %v613_v38 = vld [vmem:[#allocation2 + $0x120] ss:$2 sm:$0xff]  ;;  %v649_v33 = vld [vmem:[#allocation2 + $0x181] ss:$2 sm:$0xff] }
  0xff   :  { %v5593_v43 = vpack.i.bf16 %v613_v38, %v611_v37  ;;  %v5643_v38 = vpack.i.bf16 %v649_v33, %v647_v31  ;;  %v777_v31 = vld [vmem:[#allocation2 + $0x199] ss:$2 sm:$0xff]  ;;  %v5190_v33 = vld [vmem:[%s8334_s1 + $0x28] sm:$0xff] }
 0x102   :  { %5534 = vrot.lane.b32.xlu1 %v5533_v45, %s6396_s21  ;;  %5539 = vrot.lane.b32.xlu2 %v5538_v46, %s6397_s22  ;;  %v5598_v45 = vpack.i.bf16 %v645_v41, %v643_v40  ;;  %v7098_v46 = vpop.permute.xlu1 %5384  ;;  %v583_v40 = vld [vmem:[#allocation2 + $0x13b] ss:$2 sm:$0xff]  ;;  %v585_v41 = vld [vmem:[#allocation2 + $0x16b] ss:$2 sm:$0xff] }
 0x106   :  { %5529 = vrot.lane.b32.xlu0 %v5528_v52, %s6398_s23  ;;  %v5588_v52 = vpack.i.bf16 %v581_v49, %v579_v48  ;;  %v711_v48 = vld [vmem:[#allocation2 + $0x153] ss:$2 sm:$0xff]  ;;  %v713_v49 = vld [vmem:[#allocation2 + $0x183] ss:$2 sm:$0xff] }
 0x107   :  { %v5653_v57 = vpack.i.bf16 %v713_v49, %v711_v48  ;;  %v653_v48 = vld [vmem:[#allocation2 + $0x211] ss:$2 sm:$0xff]  ;;  %v5189_v49 = vld [vmem:[%s8334_s1 + $0x20] sm:$0xff] }
 0x10a   :  { %5549 = vrot.lane.b32.xlu1 %v5548_v58, %s6390_s12  ;;  %5554 = vrot.lane.b32.xlu2 %v5553_v59, %s6391_s13  ;;  %v7102_v58 = vpop.permute.xlu0 %5379 }
 0x10b   :  { %8351 = vst [vmem:[#allocation10_spill] sm:$0xff] %v7102_v58 }
 0x10e   :  { %5544 = vrot.lane.b32.xlu0 %v5543_v3, %s6392_s14  ;;  %v675_v3 = vld [vmem:[#allocation2 + $0xf2] ss:$2 sm:$0xff] }
 0x10f   :  { %v5603_v8 = vpack.i.bf16 %v677_v4, %v675_v3  ;;  %v681_v3 = vld [vmem:[#allocation2 + $0x182] ss:$2 sm:$0xff]  ;;  %v5192_v4 = vld [vmem:[%s8334_s1 + $0x38] sm:$0xff] }
 0x110   :  { %v7078_v18 = vpop.permute.xlu2 %5404  ;;  %2144 = vmatpush.bf16.msra.mxu0 %v5192_v4  ;;  %5249 = vmatpush.bf16.msra.mxu3 %v5192_v4 }
 0x112   :  { %5564 = vrot.lane.b32.xlu1 %v5563_v10, %s6393_s15  ;;  %5569 = vrot.lane.b32.xlu2 %v5568_v11, %s6394_s19  ;;  %v805_v10 = vld [vmem:[#allocation2 + $0x13a] ss:$2 sm:$0xff]  ;;  %v835_v11 = vld [vmem:[#allocation2 + $0x10b] ss:$2 sm:$0xff] }
 0x113   :  { %v5623_v19 = vpack.i.bf16 %v805_v10, %v803_v9  ;;  %v5628_v21 = vpack.i.bf16 %v837_v12, %v835_v11  ;;  %v807_v10 = vld [vmem:[#allocation2 + $0x16a] ss:$2 sm:$0xff]  ;;  %v809_v11 = vld [vmem:[#allocation2 + $0x19a] ss:$2 sm:$0xff]  ;;  %v839_v12 = vld [vmem:[#allocation2 + $0x16b] ss:$2 sm:$0xff] }
 0x116   :  { %5559 = vrot.lane.b32.xlu0 %v5558_v17, %s6395_s20 }
 0x11a   :  { %5579 = vrot.lane.b32.xlu1 %v5578_v29, %s6396_s21  ;;  %5584 = vrot.lane.b32.xlu2 %v5583_v30, %s6397_s22  ;;  %v615_v29 = vld [vmem:[#allocation2 + $0x150] ss:$2 sm:$0xff]  ;;  %v617_v30 = vld [vmem:[#allocation2 + $0x180] ss:$2 sm:$0xff] }
 0x11b   :  { %v5638_v37 = vpack.i.bf16 %v617_v30, %v615_v29  ;;  %v775_v30 = vld [vmem:[#allocation2 + $0x169] ss:$2 sm:$0xff] }
 0x11c   :  { %v7095_v42 = vpop.permute.xlu2 %5419 }
 0x11d   :  { %8350 = vst [vmem:[#allocation9_spill] sm:$0xff] %v7095_v42 }
 0x11e   :  { %5574 = vrot.lane.b32.xlu0 %v5573_v34, %s6398_s23 }
 0x122   :  { %5594 = vrot.lane.b32.xlu1 %v5593_v43, %s6390_s12  ;;  %5599 = vrot.lane.b32.xlu2 %v5598_v45, %s6391_s13  ;;  %v5633_v45 = vpack.i.bf16 %v585_v41, %v583_v40  ;;  %v619_v40 = vld [vmem:[#allocation2 + $0x1e0] ss:$2 sm:$0xff]  ;;  %v621_v41 = vld [vmem:[#allocation2 + $0x210] ss:$2 sm:$0xff] }
 0x124   :  { %v7104_v59 = vpop.permute.xlu2 %5434  ;;  %v7107_v5 = vpop.permute.xlu1 %5399 }
 0x126   :  { %5589 = vrot.lane.b32.xlu0 %v5588_v52, %s6392_s14  ;;  %v743_v52 = vld [vmem:[#allocation2 + $0x168] ss:$2 sm:$0xff] }
 0x12a   :  { %5609 = vrot.lane.b32.xlu1 %v5608_v61, %s6393_s15  ;;  %5614 = vrot.lane.b32.xlu2 %v5613_v63, %s6394_s19  ;;  %v5658_v61 = vpack.i.bf16 %v745_v53, %v743_v52  ;;  %v679_v63 = vld [vmem:[#allocation2 + $0x152] ss:$2 sm:$0xff] }
 0x12b   :  { %v5648_v9 = vpack.i.bf16 %v681_v3, %v679_v63  ;;  %v587_v63 = vld [vmem:[#allocation2 + $0x1cb] ss:$2 sm:$0xff]  ;;  %v589_v3 = vld [vmem:[#allocation2 + $0x1fb] ss:$2 sm:$0xff] }
 0x12c   :  { %v7111_v14 = vpop.permute.xlu2 %5449  ;;  %v7114_v17 = vpop.permute.xlu0 %5394 }
 0x12d   :  { %v5397_v1 = vunpack.i.h.bf16 %v7114_v17 }
 0x12e   :  { %5604 = vrot.lane.b32.xlu0 %v5603_v8, %s6395_s20 }
 0x130   :  { %v7118_v26 = vpop.permute.xlu1 %5414 }
 0x132   :  { %5624 = vrot.lane.b32.xlu1 %v5623_v19, %s6396_s21  ;;  %5629 = vrot.lane.b32.xlu2 %v5628_v21, %s6397_s22  ;;  %v841_v19 = vld [vmem:[#allocation2 + $0x19b] ss:$2 sm:$0xff]  ;;  %v5191_v21 = vld [vmem:[%s8334_s1 + $0x30] sm:$0xff] }
 0x133   :  { %2145 = vmatpush.bf16.msra.mxu0 %v5191_v21  ;;  %5250 = vmatpush.bf16.msra.mxu3 %v5191_v21  ;;  %v5673_v29 = vpack.i.bf16 %v841_v19, %v839_v12  ;;  %v717_v12 = vld [vmem:[#allocation2 + $0x213] ss:$2 sm:$0xff]  ;;  %v747_v19 = vld [vmem:[#allocation2 + $0x1f8] ss:$2 sm:$0xff]  ;;  %v749_v21 = vld [vmem:[#allocation2 + $0x228] ss:$2 sm:$0xff] }
 0x134   :  { %v7120_v34 = vpop.permute.xlu2 %5464 }
 0x136   :  { %5619 = vrot.lane.b32.xlu0 %v5618_v25, %s6398_s23  ;;  %v5668_v25 = vpack.i.bf16 %v809_v11, %v807_v10  ;;  %v5678_v10 = vpack.i.bf16 %v589_v3, %v587_v63  ;;  %v715_v11 = vld [vmem:[#allocation2 + $0x1e3] ss:$2 sm:$0xff] }
 0x137   :  { %2146 = vmatpush.bf16.msra.mxu0 %v5190_v33  ;;  %5251 = vmatpush.bf16.msra.mxu3 %v5190_v33  ;;  %v5703_v33 = vpack.i.bf16 %v749_v21, %v747_v19  ;;  %v845_v63 = vld [vmem:[#allocation2 + $0x22b] ss:$2 sm:$0xff]  ;;  %v5185_v3 = vld [vmem:[%s8334_s1] sm:$0xff] }
 0x138   :  { %v7123_v43 = vpop.permute.xlu0 %5409  ;;  %v348_v21 = vld [vmem:[#allocation2] ss:$2 sm:$0xff] }
 0x13a   :  { %5639 = vrot.lane.b32.xlu1 %v5638_v37, %s6390_s12  ;;  %5644 = vrot.lane.b32.xlu2 %v5643_v38, %s6391_s13  ;;  %v5663_v38 = vpack.i.bf16 %v777_v31, %v775_v30  ;;  %v5187_v30 = vld [vmem:[%s8334_s1 + $0x10] sm:$0xff]  ;;  %v5698_v31 = vpack.i.bf16 %v717_v12, %v715_v11  ;;  %v5276_v11 = vunpack.i.l.bf16 %v6992_v62 }
 0x13b   :  { %2147 = vmatpush.bf16.msra.mxu0 %v5189_v49  ;;  %5252 = vmatpush.bf16.msra.mxu3 %v5189_v49  ;;  %v811_v49 = vld [vmem:[#allocation2 + $0x1fa] ss:$2 sm:$0xff] }
 0x13c   :  { %v7127_v55 = vpop.permute.xlu1 %5429  ;;  %v7129_v56 = vpop.permute.xlu2 %5479 }
 0x13d   :  { %8352 = vst [vmem:[#allocation11_spill] sm:$0xff] %v7127_v55  ;;  %v629_v55 = vld [vmem:[#allocation2 + $0x2d0] ss:$2 sm:$0xff] }
 0x13e   :  { %5634 = vrot.lane.b32.xlu0 %v5633_v45, %s6392_s14  ;;  %v651_v45 = vld [vmem:[#allocation2 + $0x1e1] ss:$2 sm:$0xff] }
 0x140   :  { %v7135_v8 = vpop.permute.xlu0 %5424 }
 0x142   :  { %5654 = vrot.lane.b32.xlu1 %v5653_v57, %s6393_s15  ;;  %5659 = vrot.lane.b32.xlu2 %v5658_v61, %s6394_s19  ;;  %v5683_v57 = vpack.i.bf16 %v621_v41, %v619_v40  ;;  %v5688_v61 = vpack.i.bf16 %v653_v48, %v651_v45  ;;  %v685_v40 = vld [vmem:[#allocation2 + $0x212] ss:$2 sm:$0xff]  ;;  %v5186_v45 = vld [vmem:[%s8334_s1 + $0x8] sm:$0xff] }
 0x144   :  { %v7142_v22 = vpop.permute.xlu1 %5444  ;;  %v7144_v23 = vpop.permute.xlu2 %5494 }
 0x146   :  { %5649 = vrot.lane.b32.xlu0 %v5648_v9, %s6395_s20  ;;  %v5188_v9 = vld [vmem:[%s8334_s1 + $0x18] sm:$0xff] }
 0x147   :  { %2148 = vmatpush.bf16.msra.mxu0 %v5188_v9  ;;  %5253 = vmatpush.bf16.msra.mxu3 %v5188_v9 }
 0x148   :  { %v7150_v37 = vpop.permute.xlu0 %5439 }
 0x14a   :  { %5669 = vrot.lane.b32.xlu1 %v5668_v25, %s6396_s21  ;;  %5674 = vrot.lane.b32.xlu2 %v5673_v29, %s6397_s22 }
 0x14b   :  { %2149 = vmatpush.bf16.msra.mxu0 %v5187_v30  ;;  %5254 = vmatpush.bf16.msra.mxu3 %v5187_v30  ;;  %v5277_v30 = vunpack.i.h.bf16 %v6992_v62 }
 0x14c   :  { %v7157_v52 = vpop.permute.xlu1 %5459  ;;  %v7159_v53 = vpop.permute.xlu2 %5509 }
 0x14d   :  { %8353 = vst [vmem:[#allocation12_spill] sm:$0xff] %v7157_v52 }
 0x14e   :  { %5664 = vrot.lane.b32.xlu0 %v5663_v38, %s6398_s23  ;;  %v683_v38 = vld [vmem:[#allocation2 + $0x1e2] ss:$2 sm:$0xff] }
 0x14f   :  { %v5693_v48 = vpack.i.bf16 %v685_v40, %v683_v38  ;;  %2150 = vmatpush.bf16.msra.mxu0 %v5186_v45  ;;  %5255 = vmatpush.bf16.msra.mxu3 %v5186_v45  ;;  %v350_v38 = vld [vmem:[#allocation2 + $0x30] ss:$2 sm:$0xff]  ;;  %v5316_v45 = vunpack.i.l.bf16 %v6975_v51  ;;  %v5396_v51 = vunpack.i.l.bf16 %v7114_v17  ;;  %v5436_v17 = vunpack.i.l.bf16 %v7104_v59 }
 0x150   :  { %v7162_v4 = vpop.permute.xlu0 %5454 }
 0x152   :  { %5684 = vrot.lane.b32.xlu1 %v5683_v57, %s6390_s12  ;;  %5689 = vrot.lane.b32.xlu2 %v5688_v61, %s6391_s13  ;;  %v813_v57 = vld [vmem:[#allocation2 + $0x22a] ss:$2 sm:$0xff]  ;;  %v843_v61 = vld [vmem:[#allocation2 + $0x1fb] ss:$2 sm:$0xff] }
 0x153   :  { %v5713_v12 = vpack.i.bf16 %v813_v57, %v811_v49  ;;  %v5718_v19 = vpack.i.bf16 %v845_v63, %v843_v61  ;;  %2151 = vmatpush.bf16.msra.mxu0 %v5185_v3  ;;  %5256 = vmatpush.bf16.msra.mxu3 %v5185_v3  ;;  %v595_v49 = vld [vmem:[#allocation2 + $0x28b] ss:$2 sm:$0xff]  ;;  %v1819_v57 = vsel %vm14_vm0, %v350_v38, %v5277_v30  ;;  %v5357_v61 = vunpack.i.h.bf16 %v7067_v7  ;;  %v597_v63 = vld [vmem:[#allocation2 + $0x2bb] ss:$2 sm:$0xff]  ;;  %v627_v3 = vld [vmem:[#allocation2 + $0x2a0] ss:$2 sm:$0xff] }
 0x154   :  { %v7169_v25 = vpop.permute.xlu1 %5474  ;;  %v7171_v29 = vpop.permute.xlu2 %5524  ;;  %v5733_v30 = vpack.i.bf16 %v629_v55, %v627_v3  ;;  %v5437_v38 = vunpack.i.h.bf16 %v7104_v59  ;;  %v5723_v59 = vpack.i.bf16 %v565_v20, %v563_v15  ;;  %v725_v3 = vld [vmem:[#allocation2 + $0x2d3] ss:$2 sm:$0xff] }
 0x156   :  { %5679 = vrot.lane.b32.xlu0 %v5678_v10, %s6392_s14 }
 0x158   :  { %v7177_v41 = vpop.permute.xlu0 %5469 }
 0x159   :  { %8354 = vst [vmem:[#allocation13_spill] sm:$0xff] %v7177_v41  ;;  %v1818_v41 = vsel %vm14_vm0, %v348_v21, %v5276_v11 }
 0x15a   :  { %5699 = vrot.lane.b32.xlu1 %v5698_v31, %s6393_s15  ;;  %5704 = vrot.lane.b32.xlu2 %v5703_v33, %s6394_s19  ;;  %v779_v31 = vld [vmem:[#allocation2 + $0x1f9] ss:$2 sm:$0xff]  ;;  %v781_v33 = vld [vmem:[#allocation2 + $0x229] ss:$2 sm:$0xff] }
 0x15b   :  { %v5708_v62 = vpack.i.bf16 %v781_v33, %v779_v31 }
 0x15c   :  { %v7187_v9 = vpop.permute.xlu1 %5489  ;;  %v7189_v10 = vpop.permute.xlu2 %5539 }
 0x15d   :  { %v5542_v42 = vunpack.i.h.bf16 %v7189_v10 }
 0x15e   :  { %5694 = vrot.lane.b32.xlu0 %v5693_v48, %s6395_s20  ;;  %v5356_v48 = vunpack.i.l.bf16 %v7067_v7  ;;  %v5728_v7 = vpack.i.bf16 %v597_v63, %v595_v49  ;;  %v691_v49 = vld [vmem:[#allocation2 + $0x2a2] ss:$2 sm:$0xff]  ;;  %v723_v63 = vld [vmem:[#allocation2 + $0x2a3] ss:$2 sm:$0xff] }
 0x160   :  { %v7194_v40 = vpop.permute.xlu0 %5484 }
 0x162   :  { %5714 = vrot.lane.b32.xlu1 %v5713_v12, %s6396_s21  ;;  %5719 = vrot.lane.b32.xlu2 %v5718_v19, %s6397_s22  ;;  %v1834_v12 = vsel %vm157_vm3, %v1818_v41, %v5316_v45  ;;  %v1835_v19 = vsel %vm157_vm3, %v1819_v57, %v5317_v0  ;;  %v5477_v0 = vunpack.i.h.bf16 %v7169_v25  ;;  %v5476_v45 = vunpack.i.l.bf16 %v7169_v25 }
 0x163   :  { %v1851_v31 = vsel %vm1850_vm5, %v1834_v12, %v5356_v48  ;;  %v1852_v33 = vsel %vm1850_vm5, %v1835_v19, %v5357_v61  ;;  %v693_v61 = vld [vmem:[#allocation2 + $0x2d2] ss:$2 sm:$0xff] }
 0x164   :  { %v5505_v11 = vpop.permute.xlu1 %5504  ;;  %v7206_v21 = vpop.permute.xlu2 %5554  ;;  %v1868_v52 = vsel %vm199_vm4, %v1852_v33, %v5397_v1  ;;  %v1867_v41 = vsel %vm199_vm4, %v1851_v31, %v5396_v51 }
 0x165   :  { %v1884_v57 = vsel %vm1883_vm6, %v1867_v41, %v5436_v17  ;;  %v1885_v1 = vsel %vm1883_vm6, %v1868_v52, %v5437_v38  ;;  %v5507_v12 = vunpack.i.h.bf16 %v5505_v11  ;;  %v5506_v19 = vunpack.i.l.bf16 %v5505_v11  ;;  %v659_v17 = vld [vmem:[#allocation2 + $0x2a1] ss:$2 sm:$0xff]  ;;  %v661_v41 = vld [vmem:[#allocation2 + $0x2d1] ss:$2 sm:$0xff] }
 0x166   :  { %5709 = vrot.lane.b32.xlu0 %v5708_v62, %s6398_s23  ;;  %v1901_v25 = vsel %vm1900_vm7, %v1884_v57, %v5476_v45  ;;  %v1902_v51 = vsel %vm1900_vm7, %v1885_v1, %v5477_v0  ;;  %v5743_v52 = vpack.i.bf16 %v693_v61, %v691_v49  ;;  %v5511_v38 = vunpack.i.l.bf16 %v7159_v53  ;;  %v352_v57 = vld [vmem:[#allocation2 + $0x60] ss:$2 sm:$0xff] }
 0x167   :  { %v5282_v11 = vunpack.i.h.bf16 %v7015_v13  ;;  %v755_v1 = vld [vmem:[#allocation2 + $0x2b8] ss:$2 sm:$0xff] }
 0x168   :  { %v5500_v48 = vpop.permute.xlu0 %5499 }
 0x169   :  { %v5502_v62 = vunpack.i.h.bf16 %v5500_v48  ;;  %v5501_v55 = vunpack.i.l.bf16 %v5500_v48 }
 0x16a   :  { %5729 = vrot.lane.b32.xlu1 %v5728_v7, %s6392_s14  ;;  %5734 = vrot.lane.b32.xlu2 %v5733_v30, %s6390_s12  ;;  %v5748_v7 = vpack.i.bf16 %v725_v3, %v723_v63  ;;  %v5512_v30 = vunpack.i.h.bf16 %v7159_v53  ;;  %v5738_v53 = vpack.i.bf16 %v661_v41, %v659_v17  ;;  %v559_v41 = vld [vmem:[#allocation2 + $0x22a] ss:$2 sm:$0xff] }
 0x16b   :  { %v1918_v20 = vsel %vm1917_vm8, %v1901_v25, %v5501_v55  ;;  %v1919_v15 = vsel %vm1917_vm8, %v1902_v51, %v5502_v62  ;;  %v354_v55 = vld [vmem:[#allocation2 + $0x90] ss:$2 sm:$0xff]  ;;  %v5281_v62 = vunpack.i.l.bf16 %v7015_v13 }
 0x16c   :  { %v5520_v31 = vpop.permute.xlu1 %5519  ;;  %v7225_v33 = vpop.permute.xlu2 %5569  ;;  %v1935_v0 = vsel %vm1934_vm9, %v1918_v20, %v5506_v19  ;;  %v1936_v45 = vsel %vm1934_vm9, %v1919_v15, %v5507_v12  ;;  %v757_v51 = vld [vmem:[#allocation2 + $0x2e8] ss:$2 sm:$0xff]  ;;  %v591_v12 = vld [vmem:[#allocation2 + $0x22b] ss:$2 sm:$0xff]  ;;  %v593_v19 = vld [vmem:[#allocation2 + $0x25b] ss:$2 sm:$0xff]  ;;  %v1821_v13 = vsel %vm14_vm0, %v354_v55, %v5282_v11  ;;  %v5527_v11 = vunpack.i.h.bf16 %v7171_v29 }
 0x16d   :  { %v5522_v61 = vunpack.i.h.bf16 %v5520_v31  ;;  %v5521_v63 = vunpack.i.l.bf16 %v5520_v31  ;;  %v1952_v3 = vsel %vm1951_vm10, %v1935_v0, %v5511_v38  ;;  %v1953_v25 = vsel %vm1951_vm10, %v1936_v45, %v5512_v30  ;;  %v561_v0 = vld [vmem:[#allocation2 + $0x25a] ss:$2 sm:$0xff] }
 0x16e   :  { %5724 = vrot.lane.b32.xlu0 %v5723_v59, %s6389_s11  ;;  %v1820_v17 = vsel %vm14_vm0, %v352_v57, %v5281_v62  ;;  %v5362_v31 = vunpack.i.h.bf16 %v7032_v32  ;;  %v5361_v38 = vunpack.i.l.bf16 %v7032_v32  ;;  %v5322_v30 = vunpack.i.h.bf16 %v7039_v44 }
 0x16f   :  { %v5526_v45 = vunpack.i.l.bf16 %v7171_v29  ;;  %v5763_v55 = vpack.i.bf16 %v593_v19, %v591_v12 }
 0x170   :  { %v5515_v48 = vpop.permute.xlu0 %5514 }
 0x171   :  { %v5517_v59 = vunpack.i.h.bf16 %v5515_v48  ;;  %v5516_v49 = vunpack.i.l.bf16 %v5515_v48  ;;  %v5758_v48 = vpack.i.bf16 %v757_v51, %v755_v1  ;;  %v1837_v51 = vsel %vm157_vm3, %v1821_v13, %v5322_v30 }
 0x172   :  { %5744 = vrot.lane.b32.xlu1 %v5743_v52, %s6395_s20  ;;  %5749 = vrot.lane.b32.xlu2 %v5748_v7, %s6393_s15  ;;  %v5442_v13 = vunpack.i.h.bf16 %v7150_v37  ;;  %v5441_v30 = vunpack.i.l.bf16 %v7150_v37 }
 0x173   :  { %v1969_v20 = vsel %vm1968_vm11, %v1952_v3, %v5516_v49  ;;  %v1970_v15 = vsel %vm1968_vm11, %v1953_v25, %v5517_v59  ;;  %v5321_v59 = vunpack.i.l.bf16 %v7039_v44  ;;  %v5753_v25 = vpack.i.bf16 %v561_v0, %v559_v41 }
 0x174   :  { %v5535_v52 = vpop.permute.xlu1 %5534  ;;  %v7243_v7 = vpop.permute.xlu2 %5584  ;;  %v1986_v62 = vsel %vm1985_vm12, %v1969_v20, %v5521_v63  ;;  %v1987_v49 = vsel %vm1985_vm12, %v1970_v15, %v5522_v61  ;;  %v623_v61 = vld [vmem:[#allocation2 + $0x240] ss:$2 sm:$0xff]  ;;  %v625_v20 = vld [vmem:[#allocation2 + $0x270] ss:$2 sm:$0xff]  ;;  %v5401_v41 = vunpack.i.l.bf16 %v7107_v5 }
 0x175   :  { %v5537_v32 = vunpack.i.h.bf16 %v5535_v52  ;;  %v5536_v57 = vunpack.i.l.bf16 %v5535_v52  ;;  %v2003_v44 = vsel %vm2002_vm13, %v1986_v62, %v5526_v45  ;;  %v2004_v1 = vsel %vm2002_vm13, %v1987_v49, %v5527_v11  ;;  %v821_v15 = vld [vmem:[#allocation2 + $0x2ea] ss:$2 sm:$0xff] }
 0x176   :  { %5739 = vrot.lane.b32.xlu0 %v5738_v53, %s6391_s13  ;;  %v5541_v53 = vunpack.i.l.bf16 %v7189_v10  ;;  %v1836_v63 = vsel %vm157_vm3, %v1820_v17, %v5321_v59  ;;  %v819_v10 = vld [vmem:[#allocation2 + $0x2ba] ss:$2 sm:$0xff]  ;;  %v5402_v52 = vunpack.i.h.bf16 %v7107_v5  ;;  %v5773_v5 = vpack.i.bf16 %v625_v20, %v623_v61  ;;  %v282_v49 = vld [vmem:[%s8333_s0 + $0x1f0] sm:$0xff] }
 0x177   :  { %v5778_v62 = vpack.i.bf16 %v821_v15, %v819_v10  ;;  %v1853_v37 = vsel %vm1850_vm5, %v1836_v63, %v5361_v38  ;;  %346 = vst.msk [vmem:[#allocation2 + $0x331] sm:$0xff] %vm14_vm0, %v282_v49  ;;  %v689_v20 = vld [vmem:[#allocation2 + $0x272] ss:$2 sm:$0xff] }
 0x178   :  { %v5530_v3 = vpop.permute.xlu0 %5529 }
 0x179   :  { %v5532_v58 = vunpack.i.h.bf16 %v5530_v3  ;;  %v5531_v29 = vunpack.i.l.bf16 %v5530_v3 }
 0x17a   :  { %5759 = vrot.lane.b32.xlu1 %v5758_v48, %s6394_s19  ;;  %5764 = vrot.lane.b32.xlu2 %v5763_v55, %s6392_s14  ;;  %v787_v48 = vld [vmem:[#allocation2 + $0x2b9] ss:$2 sm:$0xff] }
 0x17b   :  { %v2020_v12 = vsel %vm2019_vm14, %v2003_v44, %v5531_v29  ;;  %v2021_v19 = vsel %vm2019_vm14, %v2004_v1, %v5532_v58  ;;  %v789_v58 = vld [vmem:[#allocation2 + $0x2e9] ss:$2 sm:$0xff]  ;;  %v5482_v29 = vunpack.i.h.bf16 %v7129_v56 }
 0x17c   :  { %v5550_v0 = vpop.permute.xlu1 %5549  ;;  %v7267_v45 = vpop.permute.xlu2 %5599  ;;  %v2037_v11 = vsel %vm2036_vm15, %v2020_v12, %v5536_v57  ;;  %v2038_v17 = vsel %vm2036_vm15, %v2021_v19, %v5537_v32  ;;  %v283_v32 = vld [vmem:[%s8333_s0 + $0x1f8] sm:$0xff]  ;;  %v1854_v57 = vsel %vm1850_vm5, %v1837_v51, %v5362_v31  ;;  %v5768_v63 = vpack.i.bf16 %v789_v58, %v787_v48  ;;  %v687_v19 = vld [vmem:[#allocation2 + $0x242] ss:$2 sm:$0xff] }
 0x17d   :  { %v2054_v55 = vsel %vm2053_vm1, %v2037_v11, %v5541_v53  ;;  %v2055_v59 = vsel %vm2053_vm1, %v2038_v17, %v5542_v42  ;;  %v1870_v42 = vsel %vm199_vm4, %v1854_v57, %v5402_v52  ;;  %v5481_v53 = vunpack.i.l.bf16 %v7129_v56  ;;  %347 = vst.msk [vmem:[#allocation2 + $0x339] sm:$0xff] %vm14_vm0, %v283_v32  ;;  %v851_v51 = vld [vmem:[#allocation2 + $0x2bb] ss:$2 sm:$0xff]  ;;  %v853_v12 = vld [vmem:[#allocation2 + $0x2eb] ss:$2 sm:$0xff] }
 0x17e   :  { %5754 = vrot.lane.b32.xlu0 %v5753_v25, %s6389_s11  ;;  %v2070_v3 = vpack.c.bf16 %v2055_v59, %v2054_v55  ;;  %v1869_v25 = vsel %vm199_vm4, %v1853_v37, %v5401_v41  ;;  %v1887_v1 = vsel %vm1883_vm6, %v1870_v42, %v5442_v13  ;;  %v5552_v56 = vunpack.i.h.bf16 %v5550_v0  ;;  %v657_v59 = vld [vmem:[#allocation2 + $0x271] ss:$2 sm:$0xff] }
 0x17f   :  { %v1886_v38 = vsel %vm1883_vm6, %v1869_v25, %v5441_v30  ;;  %v5551_v10 = vunpack.i.l.bf16 %v5550_v0  ;;  %v1904_v52 = vsel %vm1900_vm7, %v1887_v1, %v5482_v29  ;;  %v5788_v30 = vpack.i.bf16 %v853_v12, %v851_v51  ;;  %v655_v0 = vld [vmem:[#allocation2 + $0x241] ss:$2 sm:$0xff]  ;;  %v753_v1 = vld [vmem:[#allocation2 + $0x288] ss:$2 sm:$0xff] }
 0x180   :  { %v5545_v44 = vpop.permute.xlu0 %5544  ;;  %2152 = vmatmul.bf16.vlgmr.msra.gmra.mxu0 %v2070_v3  ;;  %v1903_v15 = vsel %vm1900_vm7, %v1886_v38, %v5481_v53  ;;  %v5793_v48 = vpack.i.bf16 %v689_v20, %v687_v19  ;;  %v5557_v58 = vunpack.i.h.bf16 %v7206_v21  ;;  %v5556_v55 = vunpack.i.l.bf16 %v7206_v21  ;;  %v783_v3 = vld [vmem:[#allocation2 + $0x259] ss:$2 sm:$0xff]  ;;  %v785_v53 = vld [vmem:[#allocation2 + $0x289] ss:$2 sm:$0xff] }
 0x181   :  { %v5547_v61 = vunpack.i.h.bf16 %v5545_v44  ;;  %v5546_v31 = vunpack.i.l.bf16 %v5545_v44  ;;  %v5783_v57 = vpack.i.bf16 %v657_v59, %v655_v0  ;;  %v751_v44 = vld [vmem:[#allocation2 + $0x258] ss:$2 sm:$0xff]  ;;  %v5572_v51 = vunpack.i.h.bf16 %v7225_v33  ;;  %v719_v20 = vld [vmem:[#allocation2 + $0x243] ss:$2 sm:$0xff] }
 0x182   :  { %5774 = vrot.lane.b32.xlu1 %v5773_v5, %s6390_s12  ;;  %5779 = vrot.lane.b32.xlu2 %v5778_v62, %s6396_s21  ;;  %v5571_v12 = vunpack.i.l.bf16 %v7225_v33  ;;  %v5808_v19 = vpack.i.bf16 %v785_v53, %v783_v3  ;;  %v356_v0 = vld [vmem:[#allocation2 + $0xc0] ss:$2 sm:$0xff]  ;;  %v5367_v59 = vunpack.i.h.bf16 %v7093_v36  ;;  %v847_v53 = vld [vmem:[#allocation2 + $0x25b] ss:$2 sm:$0xff] }
 0x183   :  { %v1920_v17 = vsel %vm1917_vm8, %v1903_v15, %v5546_v31  ;;  %v1921_v13 = vsel %vm1917_vm8, %v1904_v52, %v5547_v61  ;;  %v5287_v15 = vunpack.i.h.bf16 %v6977_v54  ;;  %v5286_v52 = vunpack.i.l.bf16 %v6977_v54 }
 0x184   :  { %v5565_v41 = vpop.permute.xlu1 %5564  ;;  %v7296_v11 = vpop.permute.xlu2 %5614  ;;  %v1937_v5 = vsel %vm1934_vm9, %v1920_v17, %v5551_v10  ;;  %v1938_v62 = vsel %vm1934_vm9, %v1921_v13, %v5552_v56  ;;  %v721_v56 = vld [vmem:[#allocation2 + $0x273] ss:$2 sm:$0xff]  ;;  %v5803_v10 = vpack.i.bf16 %v753_v1, %v751_v44  ;;  %v358_v13 = vld [vmem:[#allocation2 + $0xf0] ss:$2 sm:$0xff]  ;;  %v5587_v54 = vunpack.i.h.bf16 %v7243_v7 }
 0x185   :  { %v5567_v25 = vunpack.i.h.bf16 %v5565_v41  ;;  %v5566_v42 = vunpack.i.l.bf16 %v5565_v41  ;;  %v1954_v29 = vsel %vm1951_vm10, %v1937_v5, %v5556_v55  ;;  %v1955_v21 = vsel %vm1951_vm10, %v1938_v62, %v5557_v58 }
 0x186   :  { %5769 = vrot.lane.b32.xlu0 %v5768_v63, %s6398_s23  ;;  %v1823_v3 = vsel %vm14_vm0, %v358_v13, %v5287_v15  ;;  %v1822_v44 = vsel %vm14_vm0, %v356_v0, %v5286_v52  ;;  %v5446_v13 = vunpack.i.l.bf16 %v7142_v22 }
 0x188   :  { %v5560_v49 = vpop.permute.xlu0 %5559 }
 0x189   :  { %v5562_v32 = vunpack.i.h.bf16 %v5560_v49  ;;  %v5561_v37 = vunpack.i.l.bf16 %v5560_v49  ;;  %v5798_v49 = vpack.i.bf16 %v721_v56, %v719_v20 }
 0x18a   :  { %5789 = vrot.lane.b32.xlu1 %v5788_v30, %s6397_s22  ;;  %5794 = vrot.lane.b32.xlu2 %v5793_v48, %s6395_s20  ;;  %v5327_v30 = vunpack.i.h.bf16 %v7035_v35  ;;  %v5326_v48 = vunpack.i.l.bf16 %v7035_v35 }
 0x18b   :  { %v1971_v38 = vsel %vm1968_vm11, %v1954_v29, %v5561_v37  ;;  %v1972_v61 = vsel %vm1968_vm11, %v1955_v21, %v5562_v32  ;;  %v5586_v32 = vunpack.i.l.bf16 %v7243_v7  ;;  %v569_v21 = vld [vmem:[#allocation2 + $0x31a] ss:$2 sm:$0xff]  ;;  %v849_v7 = vld [vmem:[#allocation2 + $0x28b] ss:$2 sm:$0xff] }
 0x18c   :  { %v5580_v31 = vpop.permute.xlu1 %5579  ;;  %v7311_v63 = vpop.permute.xlu2 %5629  ;;  %v1988_v41 = vsel %vm1985_vm12, %v1971_v38, %v5566_v42  ;;  %v1989_v17 = vsel %vm1985_vm12, %v1972_v61, %v5567_v25  ;;  %v5366_v25 = vunpack.i.l.bf16 %v7093_v36  ;;  %v1839_v1 = vsel %vm157_vm3, %v1823_v3, %v5327_v30 }
 0x18d   :  { %v5582_v33 = vunpack.i.h.bf16 %v5580_v31  ;;  %v5581_v58 = vunpack.i.l.bf16 %v5580_v31  ;;  %v2005_v37 = vsel %vm2002_vm13, %v1988_v41, %v5571_v12  ;;  %v2006_v35 = vsel %vm2002_vm13, %v1989_v17, %v5572_v51 }
 0x18e   :  { %5784 = vrot.lane.b32.xlu0 %v5783_v57, %s6391_s13  ;;  %v567_v57 = vld [vmem:[#allocation2 + $0x2ea] ss:$2 sm:$0xff]  ;;  %v1838_v36 = vsel %vm157_vm3, %v1822_v44, %v5326_v48  ;;  %v5407_v12 = vunpack.i.h.bf16 %v7078_v18  ;;  %v1856_v20 = vsel %vm1850_vm5, %v1839_v1, %v5367_v59  ;;  %v5818_v52 = vpack.i.bf16 %v849_v7, %v847_v53  ;;  %v815_v48 = vld [vmem:[#allocation2 + $0x25a] ss:$2 sm:$0xff]  ;;  %v663_v53 = vld [vmem:[#allocation2 + $0x301] ss:$2 sm:$0xff] }
 0x18f   :  { %v5823_v15 = vpack.i.bf16 %v569_v21, %v567_v57  ;;  %v1855_v41 = vsel %vm1850_vm5, %v1838_v36, %v5366_v25  ;;  %v5447_v17 = vunpack.i.h.bf16 %v7142_v22  ;;  %v665_v7 = vld [vmem:[#allocation2 + $0x331] ss:$2 sm:$0xff] }
 0x190   :  { %v5575_v55 = vpop.permute.xlu0 %5574  ;;  %v5838_v1 = vpack.i.bf16 %v665_v7, %v663_v53  ;;  %v599_v36 = vld [vmem:[#allocation2 + $0x2eb] ss:$2 sm:$0xff] }
 0x191   :  { %v5577_v5 = vunpack.i.h.bf16 %v5575_v55  ;;  %v5576_v62 = vunpack.i.l.bf16 %v5575_v55 }
 0x192   :  { %5809 = vrot.lane.b32.xlu2 %v5808_v19, %s6398_s23  ;;  %5804 = vrot.lane.b32.xlu1 %v5803_v10, %s6394_s19  ;;  %v5406_v19 = vunpack.i.l.bf16 %v7078_v18  ;;  %v5487_v18 = vunpack.i.h.bf16 %v7194_v40 }
 0x193   :  { %v2022_v42 = vsel %vm2019_vm14, %v2005_v37, %v5576_v62  ;;  %v2023_v29 = vsel %vm2019_vm14, %v2006_v35, %v5577_v5  ;;  %v1872_v62 = vsel %vm199_vm4, %v1856_v20, %v5407_v12  ;;  %v633_v37 = vld [vmem:[#allocation2 + $0x330] ss:$2 sm:$0xff]  ;;  %v601_v12 = vld [vmem:[#allocation2 + $0x31b] ss:$2 sm:$0xff] }
 0x194   :  { %v5595_v38 = vpop.permute.xlu1 %5594  ;;  %v7335_v61 = vpop.permute.xlu2 %5644  ;;  %v2039_v31 = vsel %vm2036_vm15, %v2022_v42, %v5581_v58  ;;  %v2040_v51 = vsel %vm2036_vm15, %v2023_v29, %v5582_v33  ;;  %v817_v33 = vld [vmem:[#allocation2 + $0x28a] ss:$2 sm:$0xff]  ;;  %v5486_v58 = vunpack.i.l.bf16 %v7194_v40  ;;  %v1871_v5 = vsel %vm199_vm4, %v1855_v41, %v5406_v19 }
 0x195   :  { %v2056_v56 = vsel %vm2053_vm1, %v2039_v31, %v5586_v32  ;;  %v2057_v10 = vsel %vm2053_vm1, %v2040_v51, %v5587_v54  ;;  %v1888_v22 = vsel %vm1883_vm6, %v1871_v5, %v5446_v13  ;;  %v1889_v54 = vsel %vm1883_vm6, %v1872_v62, %v5447_v17  ;;  %v631_v32 = vld [vmem:[#allocation2 + $0x300] ss:$2 sm:$0xff]  ;;  %v727_v13 = vld [vmem:[#allocation2 + $0x303] ss:$2 sm:$0xff] }
 0x196   :  { %5799 = vrot.lane.b32.xlu0 %v5798_v49, %s6393_s15  ;;  %v2071_v30 = vpack.c.bf16 %v2057_v10, %v2056_v56  ;;  %v5813_v49 = vpack.i.bf16 %v817_v33, %v815_v48  ;;  %v1906_v40 = vsel %vm1900_vm7, %v1889_v54, %v5487_v18  ;;  %v1905_v35 = vsel %vm1900_vm7, %v1888_v22, %v5486_v58  ;;  %v360_v48 = vld [vmem:[#allocation2 + $0x120] ss:$2 sm:$0xff] }
 0x197   :  { %v5597_v57 = vunpack.i.h.bf16 %v5595_v38  ;;  %v5596_v3 = vunpack.i.l.bf16 %v5595_v38  ;;  %v5833_v44 = vpack.i.bf16 %v633_v37, %v631_v32  ;;  %v5602_v31 = vunpack.i.h.bf16 %v7267_v45  ;;  %v759_v5 = vld [vmem:[#allocation2 + $0x318] ss:$2 sm:$0xff]  ;;  %v761_v62 = vld [vmem:[#allocation2 + $0x348] ss:$2 sm:$0xff] }
 0x198   :  { %v5590_v55 = vpop.permute.xlu0 %5589  ;;  %2157 = vmatmul.bf16.gmra.mxu0 %v2071_v30  ;;  %v5601_v51 = vunpack.i.l.bf16 %v7267_v45  ;;  %v729_v30 = vld [vmem:[#allocation2 + $0x333] ss:$2 sm:$0xff]  ;;  %v5292_v33 = vunpack.i.h.bf16 %v7002_v6  ;;  %v5291_v18 = vunpack.i.l.bf16 %v7002_v6  ;;  %v5616_v22 = vunpack.i.l.bf16 %v7296_v11  ;;  %v695_v32 = vld [vmem:[#allocation2 + $0x302] ss:$2 sm:$0xff]  ;;  %v697_v37 = vld [vmem:[#allocation2 + $0x332] ss:$2 sm:$0xff] }
 0x199   :  { %v5592_v0 = vunpack.i.h.bf16 %v5590_v55  ;;  %v5591_v59 = vunpack.i.l.bf16 %v5590_v55  ;;  %v5853_v6 = vpack.i.bf16 %v761_v62, %v759_v5  ;;  %v5451_v5 = vunpack.i.l.bf16 %v7111_v14 }
 0x19a   :  { %5824 = vrot.lane.b32.xlu2 %v5823_v15, %s6389_s11  ;;  %5819 = vrot.lane.b32.xlu1 %v5818_v52, %s6397_s22  ;;  %v5828_v15 = vpack.i.bf16 %v601_v12, %v599_v36  ;;  %v5632_v36 = vunpack.i.h.bf16 %v7311_v63 }
 0x19b   :  { %v1922_v29 = vsel %vm1917_vm8, %v1905_v35, %v5591_v59  ;;  %v1923_v21 = vsel %vm1917_vm8, %v1906_v40, %v5592_v0  ;;  %v362_v59 = vld [vmem:[#allocation2 + $0x150] ss:$2 sm:$0xff]  ;;  %v5848_v40 = vpack.i.bf16 %v729_v30, %v727_v13  ;;  %v5332_v35 = vunpack.i.h.bf16 %v6994_v2 }
 0x19c   :  { %v5610_v25 = vpop.permute.xlu1 %5609  ;;  %v7359_v42 = vpop.permute.xlu2 %5659  ;;  %v1939_v38 = vsel %vm1934_vm9, %v1922_v29, %v5596_v3  ;;  %v1940_v19 = vsel %vm1934_vm9, %v1923_v21, %v5597_v57  ;;  %v5331_v57 = vunpack.i.l.bf16 %v6994_v2  ;;  %v1825_v29 = vsel %vm14_vm0, %v362_v59, %v5292_v33  ;;  %v857_v33 = vld [vmem:[#allocation2 + $0x34b] ss:$2 sm:$0xff] }
 0x19d   :  { %v5612_v52 = vunpack.i.h.bf16 %v5610_v25  ;;  %v5611_v41 = vunpack.i.l.bf16 %v5610_v25  ;;  %v1956_v17 = vsel %vm1951_vm10, %v1939_v38, %v5601_v51  ;;  %v1957_v45 = vsel %vm1951_vm10, %v1940_v19, %v5602_v31 }
 0x19e   :  { %5814 = vrot.lane.b32.xlu0 %v5813_v49, %s6396_s21  ;;  %v5617_v49 = vunpack.i.h.bf16 %v7296_v11  ;;  %v1824_v11 = vsel %vm14_vm0, %v360_v48, %v5291_v18  ;;  %v5843_v51 = vpack.i.bf16 %v697_v37, %v695_v32  ;;  %v5631_v2 = vunpack.i.l.bf16 %v7311_v63  ;;  %v855_v48 = vld [vmem:[#allocation2 + $0x31b] ss:$2 sm:$0xff] }
 0x19f   :  { %v5372_v19 = vunpack.i.h.bf16 %v7086_v27  ;;  %v5412_v63 = vunpack.i.h.bf16 %v7123_v43  ;;  %v1841_v30 = vsel %vm157_vm3, %v1825_v29, %v5332_v35  ;;  %v5452_v59 = vunpack.i.h.bf16 %v7111_v14 }
 0x1a0   :  { %v5605_v20 = vpop.permute.xlu0 %5604 }
 0x1a1   :  { %v5607_v56 = vunpack.i.h.bf16 %v5605_v20  ;;  %v5606_v10 = vunpack.i.l.bf16 %v5605_v20  ;;  %v1840_v20 = vsel %vm157_vm3, %v1824_v11, %v5331_v57 }
 0x1a2   :  { %5834 = vrot.lane.b32.xlu1 %v5833_v44, %s6390_s12  ;;  %5839 = vrot.lane.b32.xlu2 %v5838_v1, %s6391_s13  ;;  %v5371_v44 = vunpack.i.l.bf16 %v7086_v27 }
 0x1a3   :  { %v1973_v58 = vsel %vm1968_vm11, %v1956_v17, %v5606_v10  ;;  %v1974_v55 = vsel %vm1968_vm11, %v1957_v45, %v5607_v56 }
 0x1a4   :  { %v5625_v0 = vpop.permute.xlu1 %5624  ;;  %v7379_v54 = vpop.permute.xlu2 %5674  ;;  %v1990_v3 = vsel %vm1985_vm12, %v1973_v58, %v5611_v41  ;;  %v1991_v25 = vsel %vm1985_vm12, %v1974_v55, %v5612_v52  ;;  %v825_v52 = vld [vmem:[#allocation2 + $0x34a] ss:$2 sm:$0xff]  ;;  %v5411_v41 = vunpack.i.l.bf16 %v7123_v43  ;;  %v1857_v27 = vsel %vm1850_vm5, %v1840_v20, %v5371_v44 }
 0x1a5   :  { %v5627_v21 = vunpack.i.h.bf16 %v5625_v0  ;;  %v5626_v53 = vunpack.i.l.bf16 %v5625_v0  ;;  %v2007_v12 = vsel %vm2002_vm13, %v1990_v3, %v5616_v22  ;;  %v2008_v38 = vsel %vm2002_vm13, %v1991_v25, %v5617_v49  ;;  %v791_v49 = vld [vmem:[#allocation2 + $0x319] ss:$2 sm:$0xff]  ;;  %v793_v22 = vld [vmem:[#allocation2 + $0x349] ss:$2 sm:$0xff] }
 0x1a6   :  { %5829 = vrot.lane.b32.xlu0 %v5828_v15, %s6392_s14  ;;  %v823_v15 = vld [vmem:[#allocation2 + $0x31a] ss:$2 sm:$0xff]  ;;  %v5868_v0 = vpack.i.bf16 %v857_v33, %v855_v48  ;;  %v1858_v43 = vsel %vm1850_vm5, %v1841_v30, %v5372_v19  ;;  %v1873_v37 = vsel %vm199_vm4, %v1857_v27, %v5411_v41  ;;  %v5858_v29 = vpack.i.bf16 %v793_v22, %v791_v49 }
 0x1a7   :  { %v5863_v55 = vpack.i.bf16 %v825_v52, %v823_v15  ;;  %v1874_v32 = vsel %vm199_vm4, %v1858_v43, %v5412_v63  ;;  %v1890_v14 = vsel %vm1883_vm6, %v1873_v37, %v5451_v5  ;;  %v5297_v41 = vunpack.i.h.bf16 %v6958_v24  ;;  %v364_v30 = vld [vmem:[#allocation2 + $0x1b0] ss:$2 sm:$0xff]  ;;  %v366_v27 = vld [vmem:[#allocation2 + $0x1e0] ss:$2 sm:$0xff] }
 0x1a8   :  { %v5620_v7 = vpop.permute.xlu0 %5619  ;;  %v1891_v11 = vsel %vm1883_vm6, %v1874_v32, %v5452_v59  ;;  %v5662_v48 = vunpack.i.h.bf16 %v7359_v42  ;;  %v5661_v33 = vunpack.i.l.bf16 %v7359_v42  ;;  %v5377_v49 = vunpack.i.h.bf16 %v7042_v47 }
 0x1a9   :  { %v5622_v1 = vunpack.i.h.bf16 %v5620_v7  ;;  %v5621_v31 = vunpack.i.l.bf16 %v5620_v7  ;;  %v1827_v43 = vsel %vm14_vm0, %v366_v27, %v5297_v41  ;;  %v5376_v22 = vunpack.i.l.bf16 %v7042_v47 }
 0x1aa   :  { %5849 = vrot.lane.b32.xlu1 %v5848_v40, %s6393_s15  ;;  %5854 = vrot.lane.b32.xlu2 %v5853_v6, %s6394_s19  ;;  %v5492_v40 = vunpack.i.h.bf16 %v7187_v9  ;;  %v5491_v6 = vunpack.i.l.bf16 %v7187_v9  ;;  %v5677_v37 = vunpack.i.h.bf16 %v7379_v54  ;;  %v5417_v47 = vunpack.i.h.bf16 %v7118_v26 }
 0x1ab   :  { %v2024_v56 = vsel %vm2019_vm14, %v2007_v12, %v5621_v31  ;;  %v2025_v10 = vsel %vm2019_vm14, %v2008_v38, %v5622_v1 }
 0x1ac   :  { %v5640_v17 = vpop.permute.xlu1 %5639  ;;  %v2041_v45 = vsel %vm2036_vm15, %v2024_v56, %v5626_v53  ;;  %v2042_v13 = vsel %vm2036_vm15, %v2025_v10, %v5627_v21  ;;  %v7414_v35 = vpop.permute.xlu2 %5689  ;;  %v1907_v21 = vsel %vm1900_vm7, %v1890_v14, %v5491_v6  ;;  %v1908_v53 = vsel %vm1900_vm7, %v1891_v11, %v5492_v40 }
 0x1ad   :  { %v2058_v18 = vsel %vm2053_vm1, %v2041_v45, %v5631_v2  ;;  %v2059_v58 = vsel %vm2053_vm1, %v2042_v13, %v5632_v36  ;;  %v5642_v9 = vunpack.i.h.bf16 %v5640_v17  ;;  %v5641_v7 = vunpack.i.l.bf16 %v5640_v17 }
 0x1ae   :  { %5844 = vrot.lane.b32.xlu0 %v5843_v51, %s6395_s20  ;;  %v2072_v62 = vpack.c.bf16 %v2059_v58, %v2058_v18  ;;  %v5647_v51 = vunpack.i.h.bf16 %v7335_v61  ;;  %v5646_v36 = vunpack.i.l.bf16 %v7335_v61  ;;  %v5296_v17 = vunpack.i.l.bf16 %v6958_v24 }
 0x1af   :  { %v5337_v18 = vunpack.i.h.bf16 %v7053_v60  ;;  %v5336_v58 = vunpack.i.l.bf16 %v7053_v60  ;;  %v5676_v60 = vunpack.i.l.bf16 %v7379_v54  ;;  %v5416_v14 = vunpack.i.l.bf16 %v7118_v26 }
 0x1b0   :  { %v5635_v57 = vpop.permute.xlu0 %5634  ;;  %2162 = vmatmul.bf16.gmra.mxu0 %v2072_v62  ;;  %v1826_v24 = vsel %vm14_vm0, %v364_v30, %v5296_v17  ;;  %v5692_v30 = vunpack.i.h.bf16 %v7414_v35  ;;  %v5691_v27 = vunpack.i.l.bf16 %v7414_v35 }
 0x1b1   :  { %v5637_v3 = vunpack.i.h.bf16 %v5635_v57  ;;  %v5636_v25 = vunpack.i.l.bf16 %v5635_v57  ;;  %v1843_v57 = vsel %vm157_vm3, %v1827_v43, %v5337_v18 }
 0x1b2   :  { %5864 = vrot.lane.b32.xlu1 %v5863_v55, %s6396_s21  ;;  %5869 = vrot.lane.b32.xlu2 %v5868_v0, %s6397_s22 }
 0x1b3   :  { %v1924_v1 = vsel %vm1917_vm8, %v1907_v21, %v5636_v25  ;;  %v1925_v31 = vsel %vm1917_vm8, %v1908_v53, %v5637_v3  ;;  %v1842_v3 = vsel %vm157_vm3, %v1826_v24, %v5336_v58 }
 0x1b4   :  { %v5655_v44 = vpop.permute.xlu1 %5654  ;;  %v1941_v2 = vsel %vm1934_vm9, %v1924_v1, %v5641_v7  ;;  %v1942_v12 = vsel %vm1934_vm9, %v1925_v31, %v5642_v9  ;;  %v7429_v56 = vpop.permute.xlu2 %5704  ;;  %v5457_v9 = vunpack.i.h.bf16 %v7162_v4  ;;  %v5456_v7 = vunpack.i.l.bf16 %v7162_v4 }
 0x1b5   :  { %v5657_v10 = vunpack.i.h.bf16 %v5655_v44  ;;  %v5656_v15 = vunpack.i.l.bf16 %v5655_v44  ;;  %v1958_v52 = vsel %vm1951_vm10, %v1941_v2, %v5646_v36  ;;  %v1959_v63 = vsel %vm1951_vm10, %v1942_v12, %v5647_v51 }
 0x1b6   :  { %5859 = vrot.lane.b32.xlu0 %v5858_v29, %s6398_s23  ;;  %v1859_v31 = vsel %vm1850_vm5, %v1842_v3, %v5376_v22  ;;  %v1860_v51 = vsel %vm1850_vm5, %v1843_v57, %v5377_v49  ;;  %v5497_v12 = vunpack.i.h.bf16 %v7144_v23  ;;  %v5707_v35 = vunpack.i.h.bf16 %v7429_v56 }
 0x1b7   :  { %v1875_v36 = vsel %vm199_vm4, %v1859_v31, %v5416_v14  ;;  %v1876_v2 = vsel %vm199_vm4, %v1860_v51, %v5417_v47  ;;  %v5706_v22 = vunpack.i.l.bf16 %v7429_v56  ;;  %v372_v51 = vld [vmem:[#allocation2 + $0x270] ss:$2 sm:$0xff] }
 0x1b8   :  { %v5650_v38 = vpop.permute.xlu0 %5649  ;;  %v1893_v4 = vsel %vm1883_vm6, %v1876_v2, %v5457_v9  ;;  %v5347_v2 = vunpack.i.h.bf16 %v7023_v16 }
 0x1b9   :  { %v5652_v19 = vunpack.i.h.bf16 %v5650_v38  ;;  %v5651_v20 = vunpack.i.l.bf16 %v5650_v38  ;;  %v5496_v38 = vunpack.i.l.bf16 %v7144_v23  ;;  %v1910_v17 = vsel %vm1900_vm7, %v1893_v4, %v5497_v12 }
 0x1ba   :  { %v5346_v12 = vunpack.i.l.bf16 %v7023_v16 }
 0x1bb   :  { %v1975_v61 = vsel %vm1968_vm11, %v1958_v52, %v5651_v20  ;;  %v1976_v45 = vsel %vm1968_vm11, %v1959_v63, %v5652_v19  ;;  %v1892_v20 = vsel %vm1883_vm6, %v1875_v36, %v5456_v7 }
 0x1bc   :  { %v5670_v13 = vpop.permute.xlu1 %5669  ;;  %v1992_v55 = vsel %vm1985_vm12, %v1975_v61, %v5656_v15  ;;  %v1993_v0 = vsel %vm1985_vm12, %v1976_v45, %v5657_v10  ;;  %v7457_v11 = vpop.permute.xlu2 %5719  ;;  %v1909_v41 = vsel %vm1900_vm7, %v1892_v20, %v5496_v38  ;;  %v5387_v20 = vunpack.i.h.bf16 %v7098_v46 }
 0x1bd   :  { %v5672_v59 = vunpack.i.h.bf16 %v5670_v13  ;;  %v5671_v5 = vunpack.i.l.bf16 %v5670_v13  ;;  %v2009_v40 = vsel %vm2002_vm13, %v1992_v55, %v5661_v33  ;;  %v2010_v6 = vsel %vm2002_vm13, %v1993_v0, %v5662_v48 }
 0x1c0   :  { %v5665_v62 = vpop.permute.xlu0 %5664 }
 0x1c1   :  { %v5667_v42 = vunpack.i.h.bf16 %v5665_v62  ;;  %v5666_v32 = vunpack.i.l.bf16 %v5665_v62 }
 0x1c3   :  { %v2026_v25 = vsel %vm2019_vm14, %v2009_v40, %v5666_v32  ;;  %v2027_v29 = vsel %vm2019_vm14, %v2010_v6, %v5667_v42 }
 0x1c4   :  { %v5685_v21 = vpop.permute.xlu1 %5684  ;;  %v2043_v54 = vsel %vm2036_vm15, %v2026_v25, %v5671_v5  ;;  %v2044_v53 = vsel %vm2036_vm15, %v2027_v29, %v5672_v59  ;;  %v7477_v23 = vpop.permute.xlu2 %5734  ;;  %v5722_v25 = vunpack.i.h.bf16 %v7457_v11  ;;  %v5721_v29 = vunpack.i.l.bf16 %v7457_v11 }
 0x1c5   :  { %v2060_v44 = vsel %vm2053_vm1, %v2043_v54, %v5676_v60  ;;  %v2061_v1 = vsel %vm2053_vm1, %v2044_v53, %v5677_v37  ;;  %v5687_v52 = vunpack.i.h.bf16 %v5685_v21  ;;  %v5686_v63 = vunpack.i.l.bf16 %v5685_v21 }
 0x1c6   :  { %v2073_v26 = vpack.c.bf16 %v2061_v1, %v2060_v44  ;;  %v5307_v1 = vunpack.i.h.bf16 %v7030_v28  ;;  %v5306_v11 = vunpack.i.l.bf16 %v7030_v28  ;;  %v5427_v28 = vunpack.i.h.bf16 %v7135_v8 }
 0x1c8   :  { %v5680_v19 = vpop.permute.xlu0 %5679  ;;  %2167 = vmatmul.bf16.gmra.mxu0 %v2073_v26  ;;  %v374_v26 = vld [vmem:[#allocation2 + $0x2a0] ss:$2 sm:$0xff]  ;;  %v1830_v4 = vsel %vm14_vm0, %v372_v51, %v5306_v11 }
 0x1c9   :  { %v5682_v10 = vunpack.i.h.bf16 %v5680_v19  ;;  %v5681_v15 = vunpack.i.l.bf16 %v5680_v19  ;;  %v1831_v19 = vsel %vm14_vm0, %v374_v26, %v5307_v1 }
 0x1cb   :  { %v1926_v45 = vsel %vm1917_vm8, %v1909_v41, %v5681_v15  ;;  %v1927_v13 = vsel %vm1917_vm8, %v1910_v17, %v5682_v10  ;;  %v5386_v10 = vunpack.i.l.bf16 %v7098_v46  ;;  %v5426_v15 = vunpack.i.l.bf16 %v7135_v8 }
 0x1cc   :  { %v5700_v61 = vpop.permute.xlu1 %5699  ;;  %v1943_v48 = vsel %vm1934_vm9, %v1926_v45, %v5686_v63  ;;  %v1944_v33 = vsel %vm1934_vm9, %v1927_v13, %v5687_v52  ;;  %v7491_v37 = vpop.permute.xlu2 %5749  ;;  %v1846_v63 = vsel %vm157_vm3, %v1830_v4, %v5346_v12  ;;  %v1847_v41 = vsel %vm157_vm3, %v1831_v19, %v5347_v2 }
 0x1cd   :  { %v5702_v0 = vunpack.i.h.bf16 %v5700_v61  ;;  %v5701_v24 = vunpack.i.l.bf16 %v5700_v61  ;;  %v1960_v43 = vsel %vm1951_vm10, %v1943_v48, %v5691_v27  ;;  %v1961_v59 = vsel %vm1951_vm10, %v1944_v33, %v5692_v30 }
 0x1ce   :  { %v1863_v16 = vsel %vm1850_vm5, %v1846_v63, %v5386_v10  ;;  %v1864_v17 = vsel %vm1850_vm5, %v1847_v41, %v5387_v20  ;;  %v5467_v61 = vunpack.i.h.bf16 %v7120_v34  ;;  %v5466_v45 = vunpack.i.l.bf16 %v7120_v34  ;;  %v7568_v41 = vld [vmem:[%s8335_s2] ss:$0 sm:$0xff] }
 0x1cf   :  { %v1880_v13 = vsel %vm199_vm4, %v1864_v17, %v5427_v28  ;;  %v1879_v46 = vsel %vm199_vm4, %v1863_v16, %v5426_v15  ;;  %v8356_v16 = vld [vmem:[#allocation9_spill] sm:$0xff] }
 0x1d0   :  { %v5695_v18 = vpop.permute.xlu0 %5694  ;;  %v5421_v17 = vunpack.i.l.bf16 %v8356_v16 }
 0x1d1   :  { %v5697_v58 = vunpack.i.h.bf16 %v5695_v18  ;;  %v5696_v55 = vunpack.i.l.bf16 %v5695_v18  ;;  %v1896_v18 = vsel %vm1883_vm6, %v1879_v46, %v5466_v45  ;;  %v5422_v46 = vunpack.i.h.bf16 %v8356_v16 }
 0x1d3   :  { %v1977_v5 = vsel %vm1968_vm11, %v1960_v43, %v5696_v55  ;;  %v1978_v62 = vsel %vm1968_vm11, %v1961_v59, %v5697_v58  ;;  %v1897_v58 = vsel %vm1883_vm6, %v1880_v13, %v5467_v61  ;;  %v5737_v43 = vunpack.i.h.bf16 %v7477_v23 }
 0x1d4   :  { %v5715_v49 = vpop.permute.xlu1 %5714  ;;  %v1994_v42 = vsel %vm1985_vm12, %v1977_v5, %v5701_v24  ;;  %v1995_v32 = vsel %vm1985_vm12, %v1978_v62, %v5702_v0  ;;  %v7507_v38 = vpop.permute.xlu2 %5764  ;;  %v5736_v59 = vunpack.i.l.bf16 %v7477_v23  ;;  %v5302_v23 = vunpack.i.h.bf16 %v6965_v39 }
 0x1d5   :  { %v5717_v60 = vunpack.i.h.bf16 %v5715_v49  ;;  %v5716_v40 = vunpack.i.l.bf16 %v5715_v49  ;;  %v2011_v47 = vsel %vm2002_vm13, %v1994_v42, %v5706_v22  ;;  %v2012_v14 = vsel %vm2002_vm13, %v1995_v32, %v5707_v35 }
 0x1d8   :  { %v5710_v6 = vpop.permute.xlu0 %5709 }
 0x1d9   :  { %v5712_v57 = vunpack.i.h.bf16 %v5710_v6  ;;  %v5711_v3 = vunpack.i.l.bf16 %v5710_v6 }
 0x1db   :  { %v2028_v56 = vsel %vm2019_vm14, %v2011_v47, %v5711_v3  ;;  %v2029_v21 = vsel %vm2019_vm14, %v2012_v14, %v5712_v57  ;;  %v5301_v3 = vunpack.i.l.bf16 %v6965_v39  ;;  %v370_v47 = vld [vmem:[#allocation2 + $0x240] ss:$2 sm:$0xff]  ;;  %v5752_v14 = vunpack.i.h.bf16 %v7491_v37 }
 0x1dc   :  { %v5730_v54 = vpop.permute.xlu1 %5729  ;;  %v2045_v53 = vsel %vm2036_vm15, %v2028_v56, %v5716_v40  ;;  %v2046_v9 = vsel %vm2036_vm15, %v2029_v21, %v5717_v60  ;;  %v7525_v55 = vpop.permute.xlu2 %5779  ;;  %v5751_v56 = vunpack.i.l.bf16 %v7491_v37  ;;  %v5341_v39 = vunpack.i.l.bf16 %v7044_v50 }
 0x1dd   :  { %v2062_v7 = vsel %vm2053_vm1, %v2045_v53, %v5721_v29  ;;  %v2063_v44 = vsel %vm2053_vm1, %v2046_v9, %v5722_v25  ;;  %v5732_v48 = vunpack.i.h.bf16 %v5730_v54  ;;  %v5731_v33 = vunpack.i.l.bf16 %v5730_v54  ;;  %v368_v29 = vld [vmem:[#allocation2 + $0x210] ss:$2 sm:$0xff] }
 0x1de   :  { %v2074_v31 = vpack.c.bf16 %v2063_v44, %v2062_v7  ;;  %v5342_v44 = vunpack.i.h.bf16 %v7044_v50  ;;  %v1829_v1 = vsel %vm14_vm0, %v370_v47, %v5302_v23  ;;  %v1828_v11 = vsel %vm14_vm0, %v368_v29, %v5301_v3 }
 0x1df   :  { %v5782_v4 = vunpack.i.h.bf16 %v7525_v55  ;;  %v5781_v20 = vunpack.i.l.bf16 %v7525_v55  ;;  %v1844_v15 = vsel %vm157_vm3, %v1828_v11, %v5341_v39 }
 0x1e0   :  { %v5725_v36 = vpop.permute.xlu0 %5724  ;;  %2172 = vmatmul.bf16.gmra.mxu0 %v2074_v31  ;;  %v8355_v31 = vld [vmem:[#allocation10_spill] sm:$0xff]  ;;  %v1845_v28 = vsel %vm157_vm3, %v1829_v1, %v5342_v44 }
 0x1e1   :  { %v5727_v30 = vunpack.i.h.bf16 %v5725_v36  ;;  %v5726_v27 = vunpack.i.l.bf16 %v5725_v36  ;;  %v5382_v51 = vunpack.i.h.bf16 %v8355_v31  ;;  %v5381_v37 = vunpack.i.l.bf16 %v8355_v31 }
 0x1e3   :  { %v1913_v0 = vsel %vm1900_vm7, %v1896_v18, %v5726_v27  ;;  %v1914_v24 = vsel %vm1900_vm7, %v1897_v58, %v5727_v30  ;;  %v1862_v61 = vsel %vm1850_vm5, %v1845_v28, %v5382_v51  ;;  %v1861_v45 = vsel %vm1850_vm5, %v1844_v15, %v5381_v37  ;;  %v8357_v30 = vld [vmem:[#allocation12_spill] sm:$0xff]  ;;  %v8358_v15 = vld [vmem:[#allocation6_spill] sm:$0xff] }
 0x1e4   :  { %v5745_v52 = vpop.permute.xlu1 %5744  ;;  %v1930_v5 = vsel %vm1917_vm8, %v1913_v0, %v5731_v33  ;;  %v1931_v62 = vsel %vm1917_vm8, %v1914_v24, %v5732_v48  ;;  %v7545_v21 = vpop.permute.xlu2 %5794  ;;  %v5461_v27 = vunpack.i.l.bf16 %v8357_v30  ;;  %v5462_v33 = vunpack.i.h.bf16 %v8357_v30 }
 0x1e5   :  { %v5747_v42 = vunpack.i.h.bf16 %v5745_v52  ;;  %v5746_v32 = vunpack.i.l.bf16 %v5745_v52  ;;  %v1947_v60 = vsel %vm1934_vm9, %v1930_v5, %v5736_v59  ;;  %v1948_v40 = vsel %vm1934_vm9, %v1931_v62, %v5737_v43 }
 0x1e6   :  { %v1877_v5 = vsel %vm199_vm4, %v1861_v45, %v5421_v17  ;;  %v5797_v39 = vunpack.i.h.bf16 %v7545_v21  ;;  %v5311_v16 = vunpack.i.l.bf16 %v8358_v15  ;;  %v376_v45 = vld [vmem:[#allocation2 + $0x2d0] ss:$2 sm:$0xff] }
 0x1e8   :  { %v5740_v8 = vpop.permute.xlu0 %5739 }
 0x1e9   :  { %v5742_v49 = vunpack.i.h.bf16 %v5740_v8  ;;  %v5741_v35 = vunpack.i.l.bf16 %v5740_v8 }
 0x1eb   :  { %v1964_v6 = vsel %vm1951_vm10, %v1947_v60, %v5741_v35  ;;  %v1965_v57 = vsel %vm1951_vm10, %v1948_v40, %v5742_v49  ;;  %v5766_v60 = vunpack.i.l.bf16 %v7507_v38 }
 0x1ec   :  { %v5760_v34 = vpop.permute.xlu1 %5759  ;;  %v1981_v54 = vsel %vm1968_vm11, %v1964_v6, %v5746_v32  ;;  %v1982_v53 = vsel %vm1968_vm11, %v1965_v57, %v5747_v42  ;;  %v7584_v62 = vpop.permute.xlu2 %5809  ;;  %v1878_v42 = vsel %vm199_vm4, %v1862_v61, %v5422_v46  ;;  %v1894_v32 = vsel %vm1883_vm6, %v1877_v5, %v5461_v27  ;;  %v2273_v5 = vld [vmem:[#allocation3 + $0x2] ss:$2 sm:$0xff] }
 0x1ed   :  { %v5762_v9 = vunpack.i.h.bf16 %v5760_v34  ;;  %v5761_v7 = vunpack.i.l.bf16 %v5760_v34  ;;  %v1998_v36 = vsel %vm1985_vm12, %v1981_v54, %v5751_v56  ;;  %v1999_v2 = vsel %vm1985_vm12, %v1982_v53, %v5752_v14 }
 0x1ee   :  { %v5767_v6 = vunpack.i.h.bf16 %v7507_v38  ;;  %v5812_v17 = vunpack.i.h.bf16 %v7584_v62  ;;  %v5811_v61 = vunpack.i.l.bf16 %v7584_v62  ;;  %v2257_v62 = vld [vmem:[#allocation3 + $0x1] ss:$2 sm:$0xff] }
 0x1ef   :  { %v2015_v50 = vsel %vm2002_vm13, %v1998_v36, %v5761_v7  ;;  %v2016_v10 = vsel %vm2002_vm13, %v1999_v2, %v5762_v9  ;;  %v5796_v9 = vunpack.i.l.bf16 %v7545_v21 }
 0x1f0   :  { %v7533_v22 = vpop.permute.xlu0 %5754 }
 0x1f1   :  { %v5756_v18 = vunpack.i.l.bf16 %v7533_v22  ;;  %v5757_v24 = vunpack.i.h.bf16 %v7533_v22  ;;  %v1895_v22 = vsel %vm1883_vm6, %v1878_v42, %v5462_v33 }
 0x1f3   :  { %v1911_v57 = vsel %vm1900_vm7, %v1894_v32, %v5756_v18  ;;  %v1912_v3 = vsel %vm1900_vm7, %v1895_v22, %v5757_v24  ;;  %v1832_v24 = vsel %vm14_vm0, %v376_v45, %v5311_v16 }
 0x1f4   :  { %v7541_v25 = vpop.permute.xlu1 %5774  ;;  %v1928_v53 = vsel %vm1917_vm8, %v1911_v57, %v5766_v60  ;;  %v1929_v38 = vsel %vm1917_vm8, %v1912_v3, %v5767_v6  ;;  %v7605_v2 = vpop.permute.xlu2 %5824  ;;  %v8361_v57 = vld [vmem:[#allocation11_spill] sm:$0xff] }
 0x1f5   :  { %v5776_v23 = vunpack.i.l.bf16 %v7541_v25  ;;  %v5777_v29 = vunpack.i.h.bf16 %v7541_v25 }
 0x1f7   :  { %v1945_v7 = vsel %vm1934_vm9, %v1928_v53, %v5776_v23  ;;  %v1946_v1 = vsel %vm1934_vm9, %v1929_v38, %v5777_v29  ;;  %v5431_v23 = vunpack.i.l.bf16 %v8361_v57 }
 0x1f8   :  { %v5770_v26 = vpop.permute.xlu0 %5769 }
 0x1f9   :  { %v5772_v12 = vunpack.i.h.bf16 %v5770_v26  ;;  %v5771_v19 = vunpack.i.l.bf16 %v5770_v26 }
 0x1fb   :  { %v2032_v52 = vsel %vm2019_vm14, %v2015_v50, %v5771_v19  ;;  %v2033_v63 = vsel %vm2019_vm14, %v2016_v10, %v5772_v12 }
 0x1fc   :  { %v5790_v13 = vpop.permute.xlu1 %5789  ;;  %v2049_v55 = vsel %vm2036_vm15, %v2032_v52, %v5781_v20  ;;  %v2050_v0 = vsel %vm2036_vm15, %v2033_v63, %v5782_v4  ;;  %v5312_v52 = vunpack.i.h.bf16 %v8358_v15  ;;  %v378_v63 = vld [vmem:[#allocation2 + $0x300] ss:$2 sm:$0xff]  ;;  %v5840_v42 = vpop.permute.xlu2 %5839 }
 0x1fd   :  { %v5792_v8 = vunpack.i.h.bf16 %v5790_v13  ;;  %v5791_v48 = vunpack.i.l.bf16 %v5790_v13  ;;  %v2153_v58 = vpop.f32.mrf.mxu0  ;;  %v8359_v13 = vld [vmem:[#allocation8_spill] sm:$0xff] }
 0x1fe   :  { %v2154_v34 = vadd.f32 %v7568_v41, %v2153_v58  ;;  %v5352_v46 = vunpack.i.h.bf16 %v8359_v13  ;;  %v1833_v58 = vsel %vm14_vm0, %v378_v63, %v5312_v52 }
 0x1ff   :  { %v2066_v43 = vsel %vm2053_vm1, %v2049_v55, %v5791_v48  ;;  %v2067_v59 = vsel %vm2053_vm1, %v2050_v0, %v5792_v8  ;;  %v5351_v8 = vunpack.i.l.bf16 %v8359_v13 }
 0x200   :  { %v5785_v49 = vpop.permute.xlu0 %5784  ;;  %v2076_v35 = vpack.c.bf16 %v2067_v59, %v2066_v43  ;;  %v2193_v40 = vmul.f32 0.2, %v2154_v34  ;;  %v2289_v59 = vld [vmem:[#allocation3 + $0x3] ss:$2 sm:$0xff]  ;;  %v1849_v60 = vsel %vm157_vm3, %v1833_v58, %v5352_v46  ;;  %v5841_v46 = vunpack.i.l.bf16 %v5840_v42 }
 0x201   :  { %v5786_v14 = vunpack.i.l.bf16 %v5785_v49  ;;  %v5787_v56 = vunpack.i.h.bf16 %v5785_v49  ;;  %v1848_v6 = vsel %vm157_vm3, %v1832_v24, %v5351_v8  ;;  %v5842_v8 = vunpack.i.h.bf16 %v5840_v42 }
 0x202   :  { %2182 = vmatmul.bf16.vlgmr.msra.gmra.mxu3 %v2076_v35  ;;  %v2209_v47 = vmax.f32 %v2154_v34, %v2193_v40  ;;  %v8360_v34 = vld [vmem:[#allocation7_spill] sm:$0xff] }
 0x203   :  { %v1962_v25 = vsel %vm1951_vm10, %v1945_v7, %v5786_v14  ;;  %v1963_v31 = vsel %vm1951_vm10, %v1946_v1, %v5787_v56  ;;  %v5392_v43 = vunpack.i.h.bf16 %v8360_v34  ;;  %v5391_v32 = vunpack.i.l.bf16 %v8360_v34 }
 0x204   :  { %v5805_v54 = vpop.permute.xlu1 %5804  ;;  %2225 = vst.msk [vmem:[#allocation3 + $0x19] sm:$0xff] %vm14_vm0, %v2209_v47  ;;  %v1979_v12 = vsel %vm1968_vm11, %v1962_v25, %v5796_v9  ;;  %v1980_v4 = vsel %vm1968_vm11, %v1963_v31, %v5797_v39  ;;  %v8362_v39 = vld [vmem:[#allocation13_spill] sm:$0xff]  ;;  %v5826_v31 = vunpack.i.l.bf16 %v7605_v2  ;;  %v5855_v45 = vpop.permute.xlu2 %5854 }
 0x205   :  { %v2155_v44 = vpop.f32.mrf.mxu0  ;;  %v5807_v21 = vunpack.i.h.bf16 %v5805_v54  ;;  %v5806_v20 = vunpack.i.l.bf16 %v5805_v54  ;;  %v5471_v1 = vunpack.i.l.bf16 %v8362_v39 }
 0x206   :  { %v2156_v11 = vadd.f32 %v7568_v41, %v2155_v44  ;;  %v5432_v44 = vunpack.i.h.bf16 %v8361_v57 }
 0x208   :  { %v5800_v51 = vpop.permute.xlu0 %5799  ;;  %v2194_v37 = vmul.f32 0.2, %v2156_v11 }
 0x209   :  { %v5802_v26 = vunpack.i.h.bf16 %v5800_v51  ;;  %v5801_v36 = vunpack.i.l.bf16 %v5800_v51 }
 0x20a   :  { %v2210_v19 = vmax.f32 %v2156_v11, %v2194_v37  ;;  %v5472_v11 = vunpack.i.h.bf16 %v8362_v39  ;;  %v1865_v37 = vsel %vm1850_vm5, %v1848_v6, %v5391_v32 }
 0x20b   :  { %v1996_v50 = vsel %vm1985_vm12, %v1979_v12, %v5801_v36  ;;  %v1997_v10 = vsel %vm1985_vm12, %v1980_v4, %v5802_v26  ;;  %v1866_v26 = vsel %vm1850_vm5, %v1849_v60, %v5392_v43  ;;  %v5827_v36 = vunpack.i.h.bf16 %v7605_v2  ;;  %v2304_v57 = vld [vmem:[#allocation3 + $0x18] ss:$2 sm:$0xff] }
 0x20c   :  { %v5820_v28 = vpop.permute.xlu1 %5819  ;;  %2226 = vst.msk [vmem:[#allocation3 + $0x31] sm:$0xff] %vm14_vm0, %v2210_v19  ;;  %v2013_v30 = vsel %vm2002_vm13, %v1996_v50, %v5806_v20  ;;  %v2014_v27 = vsel %vm2002_vm13, %v1997_v10, %v5807_v21  ;;  %v1881_v19 = vsel %vm199_vm4, %v1865_v37, %v5431_v23  ;;  %v1882_v50 = vsel %vm199_vm4, %v1866_v26, %v5432_v44 }
 0x20d   :  { %v5822_v33 = vunpack.i.h.bf16 %v5820_v28  ;;  %v5821_v18 = vunpack.i.l.bf16 %v5820_v28  ;;  %v2030_v49 = vsel %vm2019_vm14, %v2013_v30, %v5811_v61  ;;  %v2031_v35 = vsel %vm2019_vm14, %v2014_v27, %v5812_v17 }
 0x20e   :  { %v1898_v10 = vsel %vm1883_vm6, %v1881_v19, %v5471_v1  ;;  %v1899_v28 = vsel %vm1883_vm6, %v1882_v50, %v5472_v11 }
 0x20f   :  { %v1915_v15 = vsel %vm1900_vm7, %v1898_v10, %v5826_v31  ;;  %v1916_v2 = vsel %vm1900_vm7, %v1899_v28, %v5827_v36  ;;  %v2352_v10 = vld [vmem:[#allocation3 + $0x1b] ss:$2 sm:$0xff] }
 0x210   :  { %v5815_v48 = vpop.permute.xlu0 %5814 }
 0x211   :  { %v5817_v55 = vunpack.i.h.bf16 %v5815_v48  ;;  %v5816_v0 = vunpack.i.l.bf16 %v5815_v48 }
 0x213   :  { %v2047_v40 = vsel %vm2036_vm15, %v2030_v49, %v5816_v0  ;;  %v2048_v22 = vsel %vm2036_vm15, %v2031_v35, %v5817_v55  ;;  %v2291_v3 = vld [vmem:[#allocation3 + $0x33] ss:$2 sm:$0xff]  ;;  %v2275_v29 = vld [vmem:[#allocation3 + $0x32] ss:$2 sm:$0xff] }
 0x214   :  { %v2259_v47 = vld [vmem:[#allocation3 + $0x31] ss:$2 sm:$0xff]  ;;  %v2064_v14 = vsel %vm2053_vm1, %v2047_v40, %v5821_v18  ;;  %v2065_v56 = vsel %vm2053_vm1, %v2048_v22, %v5822_v33  ;;  %v5835_v54 = vpop.permute.xlu1 %5834  ;;  %v5883_v53 = vpack.i.bf16 %v2291_v3, %v2289_v59  ;;  %v5878_v9 = vpack.i.bf16 %v2275_v29, %v2273_v5 }
 0x215   :  { %v5873_v38 = vpack.i.bf16 %v2259_v47, %v2257_v62  ;;  %v2075_v7 = vpack.c.bf16 %v2065_v56, %v2064_v14  ;;  %v2158_v25 = vpop.f32.mrf.mxu0  ;;  %v5836_v63 = vunpack.i.l.bf16 %v5835_v54  ;;  %v5837_v17 = vunpack.i.h.bf16 %v5835_v54  ;;  %v2336_v62 = vld [vmem:[#allocation3 + $0x1a] ss:$2 sm:$0xff]  ;;  %v2320_v49 = vld [vmem:[#allocation3 + $0x19] ss:$2 sm:$0xff]  ;;  %v5870_v14 = vpop.permute.xlu2 %5869 }
 0x216   :  { %v2159_v51 = vadd.f32 %v7568_v41, %v2158_v25  ;;  %5884 = vrot.lane.b32.xlu2 %v5883_v53, %s6386_s18  ;;  %5879 = vrot.lane.b32.xlu1 %v5878_v9, %s6385_s17  ;;  %v5857_v3 = vunpack.i.h.bf16 %v5855_v45  ;;  %v5856_v29 = vunpack.i.l.bf16 %v5855_v45  ;;  %v5872_v39 = vunpack.i.h.bf16 %v5870_v14  ;;  %v2384_v37 = vld [vmem:[#allocation3 + $0x31] ss:$2 sm:$0xff] }
 0x217   :  { %5874 = vrot.lane.b32.xlu0 %v5873_v38, %s6384_s16  ;;  %2177 = vmatmul.bf16.gmra.mxu0 %v2075_v7  ;;  %v5871_v1 = vunpack.i.l.bf16 %v5870_v14 }
 0x218   :  { %v5830_v12 = vpop.permute.xlu0 %5829  ;;  %v2195_v4 = vmul.f32 0.2, %v2159_v51 }
 0x219   :  { %v5832_v21 = vunpack.i.h.bf16 %v5830_v12  ;;  %v5831_v20 = vunpack.i.l.bf16 %v5830_v12  ;;  %v2368_v12 = vld [vmem:[#allocation3 + $0x30] ss:$2 sm:$0xff] }
 0x21a   :  { %v2211_v52 = vmax.f32 %v2159_v51, %v2195_v4 }
 0x21b   :  { %v1932_v16 = vsel %vm1917_vm8, %v1915_v15, %v5831_v20  ;;  %v1933_v13 = vsel %vm1917_vm8, %v1916_v2, %v5832_v21 }
 0x21c   :  { %v5850_v61 = vpop.permute.xlu1 %5849  ;;  %2227 = vst.msk [vmem:[#allocation3 + $0x49] sm:$0xff] %vm14_vm0, %v2211_v52  ;;  %v1949_v27 = vsel %vm1934_vm9, %v1932_v16, %v5836_v63  ;;  %v1950_v33 = vsel %vm1934_vm9, %v1933_v13, %v5837_v17 }
 0x21d   :  { %v2160_v30 = vpop.f32.mrf.mxu0  ;;  %v1966_v24 = vsel %vm1951_vm10, %v1949_v27, %v5841_v46  ;;  %v1967_v34 = vsel %vm1951_vm10, %v1950_v33, %v5842_v8  ;;  %v5852_v59 = vunpack.i.h.bf16 %v5850_v61  ;;  %v5851_v5 = vunpack.i.l.bf16 %v5850_v61  ;;  %v2416_v46 = vld [vmem:[#allocation3 + $0x33] ss:$2 sm:$0xff]  ;;  %v2400_v27 = vld [vmem:[#allocation3 + $0x32] ss:$2 sm:$0xff] }
 0x21e   :  { %v2161_v48 = vadd.f32 %v7568_v41, %v2160_v30 }
 0x220   :  { %v5845_v18 = vpop.permute.xlu0 %5844  ;;  %v2196_v58 = vmul.f32 0.2, %v2161_v48 }
 0x221   :  { %v5847_v55 = vunpack.i.h.bf16 %v5845_v18  ;;  %v5846_v0 = vunpack.i.l.bf16 %v5845_v18 }
 0x222   :  { %v2212_v43 = vmax.f32 %v2161_v48, %v2196_v58 }
 0x223   :  { %v1983_v35 = vsel %vm1968_vm11, %v1966_v24, %v5846_v0  ;;  %v1984_v42 = vsel %vm1968_vm11, %v1967_v34, %v5847_v55  ;;  %v2338_v32 = vld [vmem:[#allocation3 + $0x4a] ss:$2 sm:$0xff]  ;;  %v2322_v60 = vld [vmem:[#allocation3 + $0x49] ss:$2 sm:$0xff] }
 0x224   :  { %v2306_v40 = vld [vmem:[#allocation3 + $0x48] ss:$2 sm:$0xff]  ;;  %2228 = vst.msk [vmem:[#allocation3 + $0x61] sm:$0xff] %vm14_vm0, %v2212_v43  ;;  %v5898_v22 = vpack.i.bf16 %v2338_v32, %v2336_v62  ;;  %v5893_v6 = vpack.i.bf16 %v2322_v60, %v2320_v49  ;;  %v5865_v23 = vpop.permute.xlu1 %5864  ;;  %v2000_v56 = vsel %vm1985_vm12, %v1983_v35, %v5851_v5  ;;  %v2001_v54 = vsel %vm1985_vm12, %v1984_v42, %v5852_v59  ;;  %v2354_v26 = vld [vmem:[#allocation3 + $0x4b] ss:$2 sm:$0xff] }
 0x225   :  { %v5888_v47 = vpack.i.bf16 %v2306_v40, %v2304_v57  ;;  %v5867_v9 = vunpack.i.h.bf16 %v5865_v23  ;;  %v5866_v38 = vunpack.i.l.bf16 %v5865_v23  ;;  %v2017_v25 = vsel %vm2002_vm13, %v2000_v56, %v5856_v29  ;;  %v2432_v55 = vld [vmem:[#allocation3 + $0x48] ss:$2 sm:$0xff]  ;;  %v2448_v24 = vld [vmem:[#allocation3 + $0x49] ss:$2 sm:$0xff] }
 0x226   :  { %5899 = vrot.lane.b32.xlu2 %v5898_v22, %s6389_s11  ;;  %5894 = vrot.lane.b32.xlu1 %v5893_v6, %s6388_s10  ;;  %v2018_v11 = vsel %vm2002_vm13, %v2001_v54, %v5857_v3  ;;  %v5903_v63 = vpack.i.bf16 %v2354_v26, %v2352_v10  ;;  %v2464_v0 = vld [vmem:[#allocation3 + $0x4a] ss:$2 sm:$0xff]  ;;  %v2480_v42 = vld [vmem:[#allocation3 + $0x4b] ss:$2 sm:$0xff] }
 0x227   :  { %5889 = vrot.lane.b32.xlu0 %v5888_v47, %s6387_s27 }
 0x228   :  { %v5860_v53 = vpop.permute.xlu0 %5859 }
 0x229   :  { %v5862_v7 = vunpack.i.h.bf16 %v5860_v53  ;;  %v5861_v44 = vunpack.i.l.bf16 %v5860_v53 }
 0x22b   :  { %v2034_v31 = vsel %vm2019_vm14, %v2017_v25, %v5861_v44  ;;  %v2035_v51 = vsel %vm2019_vm14, %v2018_v11, %v5862_v7  ;;  %v2386_v36 = vld [vmem:[#allocation3 + $0x61] ss:$2 sm:$0xff]  ;;  %v2370_v19 = vld [vmem:[#allocation3 + $0x60] ss:$2 sm:$0xff] }
 0x22c   :  { %v2051_v4 = vsel %vm2036_vm15, %v2034_v31, %v5866_v38  ;;  %v2052_v21 = vsel %vm2036_vm15, %v2035_v51, %v5867_v9  ;;  %v5913_v20 = vpack.i.bf16 %v2386_v36, %v2384_v37  ;;  %v5908_v50 = vpack.i.bf16 %v2370_v19, %v2368_v12  ;;  %v2418_v61 = vld [vmem:[#allocation3 + $0x63] ss:$2 sm:$0xff]  ;;  %v2402_v13 = vld [vmem:[#allocation3 + $0x62] ss:$2 sm:$0xff] }
 0x22d   :  { %v2068_v28 = vsel %vm2053_vm1, %v2051_v4, %v5871_v1  ;;  %v2069_v15 = vsel %vm2053_vm1, %v2052_v21, %v5872_v39  ;;  %v2163_v52 = vpop.f32.mrf.mxu0  ;;  %v5923_v30 = vpack.i.bf16 %v2418_v61, %v2416_v46  ;;  %v5918_v48 = vpack.i.bf16 %v2402_v13, %v2400_v27  ;;  %v2277_v32 = vld [vmem:[#allocation3 + $0x62] ss:$2 sm:$0xff]  ;;  %v2261_v40 = vld [vmem:[#allocation3 + $0x61] ss:$2 sm:$0xff] }
 0x22e   :  { %v2077_v2 = vpack.c.bf16 %v2069_v15, %v2068_v28  ;;  %v2164_v16 = vadd.f32 %v7568_v41, %v2163_v52  ;;  %5914 = vrot.lane.b32.xlu2 %v5913_v20, %s6391_s13  ;;  %5909 = vrot.lane.b32.xlu1 %v5908_v50, %s6390_s12  ;;  %v2293_v54 = vld [vmem:[#allocation3 + $0x63] ss:$2 sm:$0xff] }
 0x22f   :  { %5904 = vrot.lane.b32.xlu0 %v5903_v63, %s6392_s14 }
 0x230   :  { %2187 = vmatmul.bf16.gmra.mxu3 %v2077_v2  ;;  %v2197_v17 = vmul.f32 0.2, %v2164_v16 }
 0x232   :  { %v2213_v45 = vmax.f32 %v2164_v16, %v2197_v17  ;;  %v2438_v17 = vld [vmem:[#allocation3 + $0xd8] ss:$2 sm:$0xff] }
 0x234   :  { %2229 = vst.msk [vmem:[#allocation3 + $0x79] sm:$0xff] %vm14_vm0, %v2213_v45 }
 0x235   :  { %v2165_v8 = vpop.f32.mrf.mxu0 }
 0x236   :  { %v2166_v33 = vadd.f32 %v7568_v41, %v2165_v8  ;;  %5924 = vrot.lane.b32.xlu1 %v5923_v30, %s6393_s15 }
 0x237   :  { %5919 = vrot.lane.b32.xlu0 %v5918_v48, %s6395_s20 }
 0x238   :  { %v2198_v18 = vmul.f32 0.2, %v2166_v33 }
 0x23a   :  { %v2214_v58 = vmax.f32 %v2166_v33, %v2198_v18 }
 0x23b   :  { %v2434_v34 = vld [vmem:[#allocation3 + $0x78] ss:$2 sm:$0xff]  ;;  %v2450_v59 = vld [vmem:[#allocation3 + $0x79] ss:$2 sm:$0xff] }
 0x23c   :  { %v2466_v43 = vld [vmem:[#allocation3 + $0x7a] ss:$2 sm:$0xff]  ;;  %2230 = vst.msk [vmem:[#allocation3 + $0x91] sm:$0xff] %vm14_vm0, %v2214_v58  ;;  %v5928_v5 = vpack.i.bf16 %v2434_v34, %v2432_v55  ;;  %v5933_v49 = vpack.i.bf16 %v2450_v59, %v2448_v24  ;;  %v2482_v35 = vld [vmem:[#allocation3 + $0x7b] ss:$2 sm:$0xff] }
 0x23d   :  { %v5938_v62 = vpack.i.bf16 %v2466_v43, %v2464_v0  ;;  %v5943_v6 = vpack.i.bf16 %v2482_v35, %v2480_v42  ;;  %v2340_v39 = vld [vmem:[#allocation3 + $0x7a] ss:$2 sm:$0xff]  ;;  %v2324_v1 = vld [vmem:[#allocation3 + $0x79] ss:$2 sm:$0xff] }
 0x23e   :  { %5929 = vrot.lane.b32.xlu2 %v5928_v5, %s6394_s19  ;;  %v2308_v25 = vld [vmem:[#allocation3 + $0x78] ss:$2 sm:$0xff]  ;;  %v2356_v28 = vld [vmem:[#allocation3 + $0x7b] ss:$2 sm:$0xff] }
 0x23f   :  { %5939 = vrot.lane.b32.xlu1 %v5938_v62, %s6396_s21  ;;  %5934 = vrot.lane.b32.xlu0 %v5933_v49, %s6398_s23  ;;  %v2486_v55 = vld [vmem:[#allocation3 + $0xdb] ss:$2 sm:$0xff]  ;;  %v2470_v34 = vld [vmem:[#allocation3 + $0xda] ss:$2 sm:$0xff] }
 0x240   :  { %v2454_v5 = vld [vmem:[#allocation3 + $0xd9] ss:$2 sm:$0xff] }
 0x241   :  { %v2297_v42 = vld [vmem:[#allocation3 + $0xf3] ss:$2 sm:$0xff] }
 0x243   :  { %v2279_v60 = vld [vmem:[#allocation3 + $0x92] ss:$2 sm:$0xff]  ;;  %v2263_v22 = vld [vmem:[#allocation3 + $0x91] ss:$2 sm:$0xff] }
 0x244   :  { %v5953_v57 = vpack.i.bf16 %v2279_v60, %v2277_v32  ;;  %v5948_v23 = vpack.i.bf16 %v2263_v22, %v2261_v40  ;;  %v2295_v14 = vld [vmem:[#allocation3 + $0x93] ss:$2 sm:$0xff]  ;;  %v2372_v21 = vld [vmem:[#allocation3 + $0x90] ss:$2 sm:$0xff] }
 0x245   :  { %v2168_v3 = vpop.f32.mrf.mxu0  ;;  %v5958_v53 = vpack.i.bf16 %v2295_v14, %v2293_v54  ;;  %v2388_v12 = vld [vmem:[#allocation3 + $0x91] ss:$2 sm:$0xff]  ;;  %v2404_v8 = vld [vmem:[#allocation3 + $0x92] ss:$2 sm:$0xff]  ;;  %v5198_v14 = vld [vmem:[%s8334_s1 + $0x68] sm:$0xff] }
 0x246   :  { %v2169_v29 = vadd.f32 %v7568_v41, %v2168_v3  ;;  %5944 = vrot.lane.b32.xlu2 %v5943_v6, %s6397_s22  ;;  %v2420_v46 = vld [vmem:[#allocation3 + $0x93] ss:$2 sm:$0xff]  ;;  %v2281_v32 = vld [vmem:[#allocation3 + $0xf2] ss:$2 sm:$0xff] }
 0x247   :  { %5954 = vrot.lane.b32.xlu1 %v5953_v57, %s6385_s17  ;;  %5949 = vrot.lane.b32.xlu0 %v5948_v23, %s6384_s16  ;;  %v2265_v60 = vld [vmem:[#allocation3 + $0xf1] ss:$2 sm:$0xff] }
 0x248   :  { %v2199_v47 = vmul.f32 0.2, %v2169_v29 }
 0x24a   :  { %v2215_v56 = vmax.f32 %v2169_v29, %v2199_v47  ;;  %v5200_v29 = vld [vmem:[%s8334_s1 + $0x78] sm:$0xff]  ;;  %v5199_v47 = vld [vmem:[%s8334_s1 + $0x70] sm:$0xff] }
 0x24b   :  { %3165 = vmatpush.bf16.msra.mxu1 %v5200_v29 }
 0x24c   :  { %2231 = vst.msk [vmem:[#allocation3 + $0xa9] sm:$0xff] %vm14_vm0, %v2215_v56 }
 0x24d   :  { %v2170_v9 = vpop.f32.mrf.mxu0 }
 0x24e   :  { %v2171_v38 = vadd.f32 %v7568_v41, %v2170_v9  ;;  %5959 = vrot.lane.b32.xlu2 %v5958_v53, %s6386_s18  ;;  %v5197_v53 = vld [vmem:[%s8334_s1 + $0x60] sm:$0xff] }
 0x24f   :  { %3166 = vmatpush.bf16.msra.mxu1 %v5199_v47 }
 0x250   :  { %v2200_v7 = vmul.f32 0.2, %v2171_v38 }
 0x252   :  { %v2216_v44 = vmax.f32 %v2171_v38, %v2200_v7  ;;  %v5196_v38 = vld [vmem:[%s8334_s1 + $0x58] sm:$0xff] }
 0x253   :  { %v2342_v11 = vld [vmem:[#allocation3 + $0xaa] ss:$2 sm:$0xff]  ;;  %v2326_v31 = vld [vmem:[#allocation3 + $0xa9] ss:$2 sm:$0xff]  ;;  %3167 = vmatpush.bf16.msra.mxu1 %v5198_v14 }
 0x254   :  { %v2310_v51 = vld [vmem:[#allocation3 + $0xa8] ss:$2 sm:$0xff]  ;;  %2232 = vst.msk [vmem:[#allocation3 + $0xc1] sm:$0xff] %vm14_vm0, %v2216_v44  ;;  %v5973_v37 = vpack.i.bf16 %v2342_v11, %v2340_v39  ;;  %v5968_v26 = vpack.i.bf16 %v2326_v31, %v2324_v1  ;;  %v2358_v19 = vld [vmem:[#allocation3 + $0xab] ss:$2 sm:$0xff] }
 0x255   :  { %v5963_v36 = vpack.i.bf16 %v2310_v51, %v2308_v25  ;;  %v5978_v52 = vpack.i.bf16 %v2358_v19, %v2356_v28  ;;  %v2436_v16 = vld [vmem:[#allocation3 + $0xa8] ss:$2 sm:$0xff]  ;;  %v2484_v0 = vld [vmem:[#allocation3 + $0xab] ss:$2 sm:$0xff] }
 0x256   :  { %5974 = vrot.lane.b32.xlu2 %v5973_v37, %s6389_s11  ;;  %5969 = vrot.lane.b32.xlu1 %v5968_v26, %s6388_s10  ;;  %v6003_v30 = vpack.i.bf16 %v2438_v17, %v2436_v16  ;;  %v2468_v24 = vld [vmem:[#allocation3 + $0xaa] ss:$2 sm:$0xff]  ;;  %v2452_v59 = vld [vmem:[#allocation3 + $0xa9] ss:$2 sm:$0xff]  ;;  %v6018_v62 = vpack.i.bf16 %v2486_v55, %v2484_v0 }
 0x257   :  { %5964 = vrot.lane.b32.xlu0 %v5963_v36, %s6387_s27  ;;  %v6013_v49 = vpack.i.bf16 %v2470_v34, %v2468_v24  ;;  %v6008_v35 = vpack.i.bf16 %v2454_v5, %v2452_v59  ;;  %3168 = vmatpush.bf16.msra.mxu1 %v5197_v53  ;;  %v5195_v25 = vld [vmem:[%s8334_s1 + $0x50] sm:$0xff]  ;;  %v5194_v26 = vld [vmem:[%s8334_s1 + $0x48] sm:$0xff] }
 0x25b   :  { %v2390_v4 = vld [vmem:[#allocation3 + $0xc1] ss:$2 sm:$0xff]  ;;  %v2374_v20 = vld [vmem:[#allocation3 + $0xc0] ss:$2 sm:$0xff]  ;;  %3169 = vmatpush.bf16.msra.mxu1 %v5196_v38 }
 0x25c   :  { %v5988_v50 = vpack.i.bf16 %v2390_v4, %v2388_v12  ;;  %v5983_v10 = vpack.i.bf16 %v2374_v20, %v2372_v21  ;;  %v2422_v61 = vld [vmem:[#allocation3 + $0xc3] ss:$2 sm:$0xff]  ;;  %v2406_v13 = vld [vmem:[#allocation3 + $0xc2] ss:$2 sm:$0xff] }
 0x25d   :  { %v2173_v15 = vpop.f32.mrf.mxu0  ;;  %v5998_v27 = vpack.i.bf16 %v2422_v61, %v2420_v46  ;;  %v5993_v33 = vpack.i.bf16 %v2406_v13, %v2404_v8  ;;  %v2241_v21 = vld [vmem:[#allocation3] ss:$2 sm:$0xff] }
 0x25e   :  { %v2174_v63 = vadd.f32 %v7568_v41, %v2173_v15  ;;  %5989 = vrot.lane.b32.xlu2 %v5988_v50, %s6391_s13  ;;  %5984 = vrot.lane.b32.xlu1 %v5983_v10, %s6390_s12  ;;  %v5193_v50 = vld [vmem:[%s8334_s1 + $0x40] sm:$0xff]  ;;  %v2243_v15 = vld [vmem:[#allocation3 + $0x30] ss:$2 sm:$0xff] }
 0x25f   :  { %5979 = vrot.lane.b32.xlu0 %v5978_v52, %s6392_s14  ;;  %3170 = vmatpush.bf16.msra.mxu1 %v5195_v25 }
 0x260   :  { %v2201_v2 = vmul.f32 0.2, %v2174_v63 }
 0x262   :  { %v2217_v45 = vmax.f32 %v2174_v63, %v2201_v2 }
 0x263   :  { %3171 = vmatpush.bf16.msra.mxu1 %v5194_v26 }
 0x264   :  { %2233 = vst.msk [vmem:[#allocation3 + $0x109] sm:$0xff] %vm14_vm0, %v2217_v45 }
 0x265   :  { %v2175_v48 = vpop.f32.mrf.mxu0 }
 0x266   :  { %v2176_v18 = vadd.f32 %v7568_v41, %v2175_v48  ;;  %6004 = vrot.lane.b32.xlu2 %v6003_v30, %s6394_s19  ;;  %5999 = vrot.lane.b32.xlu1 %v5998_v27, %s6393_s15 }
 0x267   :  { %5994 = vrot.lane.b32.xlu0 %v5993_v33, %s6395_s20  ;;  %3172 = vmatpush.bf16.msra.mxu1 %v5193_v50 }
 0x268   :  { %v2202_v58 = vmul.f32 0.2, %v2176_v18 }
 0x26a   :  { %v2218_v43 = vmax.f32 %v2176_v18, %v2202_v58 }
 0x26c   :  { %2234 = vst.msk [vmem:[#allocation3 + $0x121] sm:$0xff] %vm14_vm0, %v2218_v43 }
 0x26e   :  { %6019 = vrot.lane.b32.xlu2 %v6018_v62, %s6397_s22  ;;  %6014 = vrot.lane.b32.xlu1 %v6013_v49, %s6396_s21 }
 0x26f   :  { %6009 = vrot.lane.b32.xlu0 %v6008_v35, %s6398_s23 }
 0x270   :  { %v5885_v44 = vpop.permute.xlu2 %5884 }
 0x271   :  { %v5887_v27 = vunpack.i.h.bf16 %v5885_v44  ;;  %v5886_v8 = vunpack.i.l.bf16 %v5885_v44 }
 0x273   :  { %v2299_v40 = vld [vmem:[#allocation3 + $0x123] ss:$2 sm:$0xff]  ;;  %v2283_v22 = vld [vmem:[#allocation3 + $0x122] ss:$2 sm:$0xff] }
 0x274   :  { %v2267_v6 = vld [vmem:[#allocation3 + $0x121] ss:$2 sm:$0xff]  ;;  %v6033_v57 = vpack.i.bf16 %v2299_v40, %v2297_v42  ;;  %v6028_v23 = vpack.i.bf16 %v2283_v22, %v2281_v32  ;;  %v2344_v42 = vld [vmem:[#allocation3 + $0x10a] ss:$2 sm:$0xff] }
 0x275   :  { %v6023_v3 = vpack.i.bf16 %v2267_v6, %v2265_v60  ;;  %v2328_v32 = vld [vmem:[#allocation3 + $0x109] ss:$2 sm:$0xff]  ;;  %v2312_v60 = vld [vmem:[#allocation3 + $0x108] ss:$2 sm:$0xff] }
 0x276   :  { %6034 = vrot.lane.b32.xlu2 %v6033_v57, %s6386_s18  ;;  %6029 = vrot.lane.b32.xlu1 %v6028_v23, %s6385_s17  ;;  %v2392_v26 = vld [vmem:[#allocation3 + $0x121] ss:$2 sm:$0xff]  ;;  %v2376_v50 = vld [vmem:[#allocation3 + $0x120] ss:$2 sm:$0xff] }
 0x277   :  { %6024 = vrot.lane.b32.xlu0 %v6023_v3, %s6384_s16 }
 0x280   :  { %v5900_v36 = vpop.permute.xlu2 %5899 }
 0x281   :  { %v5902_v62 = vunpack.i.h.bf16 %v5900_v36  ;;  %v5901_v47 = vunpack.i.l.bf16 %v5900_v36  ;;  %v2360_v36 = vld [vmem:[#allocation3 + $0x10b] ss:$2 sm:$0xff] }
 0x285   :  { %v2183_v56 = vpop.f32.mrf.mxu3 }
 0x286   :  { %v2184_v54 = vadd.f32 %v7568_v41, %v2183_v56 }
 0x288   :  { %v2205_v9 = vmul.f32 0.2, %v2184_v54  ;;  %v5880_v31 = vpop.permute.xlu1 %5879  ;;  %v5915_v33 = vpop.permute.xlu2 %5914 }
 0x289   :  { %v5875_v51 = vpop.permute.xlu0 %5874  ;;  %v5882_v10 = vunpack.i.h.bf16 %v5880_v31  ;;  %v5881_v28 = vunpack.i.l.bf16 %v5880_v31 }
 0x28a   :  { %v2221_v7 = vmax.f32 %v2184_v54, %v2205_v9  ;;  %v5877_v12 = vunpack.i.h.bf16 %v5875_v51  ;;  %v5876_v19 = vunpack.i.l.bf16 %v5875_v51 }
 0x28c   :  { %2237 = vst.msk [vmem:[#allocation3 + $0x169] sm:$0xff] %vm14_vm0, %v2221_v7  ;;  %v2975_v63 = vsel %vm14_vm0, %v2241_v21, %v5876_v19  ;;  %v2976_v2 = vsel %vm14_vm0, %v2243_v15, %v5877_v12  ;;  %v5917_v12 = vunpack.i.h.bf16 %v5915_v33  ;;  %v5916_v19 = vunpack.i.l.bf16 %v5915_v33 }
 0x28d   :  { %v2185_v39 = vpop.f32.mrf.mxu3  ;;  %v2983_v45 = vsel %vm157_vm3, %v2975_v63, %v5881_v28  ;;  %v2984_v13 = vsel %vm157_vm3, %v2976_v2, %v5882_v10 }
 0x28e   :  { %v2186_v1 = vadd.f32 %v7568_v41, %v2185_v39  ;;  %v2991_v0 = vsel %vm1850_vm5, %v2983_v45, %v5886_v8  ;;  %v2992_v24 = vsel %vm1850_vm5, %v2984_v13, %v5887_v27 }
 0x290   :  { %v2206_v11 = vmul.f32 0.2, %v2186_v1 }
 0x292   :  { %v2222_v37 = vmax.f32 %v2186_v1, %v2206_v11 }
 0x294   :  { %2238 = vst.msk [vmem:[#allocation3 + $0x181] sm:$0xff] %vm14_vm0, %v2222_v37  ;;  %v2178_v4 = vpop.f32.mrf.mxu0 }
 0x295   :  { %v2179_v20 = vadd.f32 %v7568_v41, %v2178_v4 }
 0x297   :  { %v2203_v52 = vmul.f32 0.2, %v2179_v20 }
 0x298   :  { %v5895_v16 = vpop.permute.xlu1 %5894  ;;  %v5930_v53 = vpop.permute.xlu2 %5929 }
 0x299   :  { %v2219_v17 = vmax.f32 %v2179_v20, %v2203_v52  ;;  %v5890_v61 = vpop.permute.xlu0 %5889  ;;  %v5897_v58 = vunpack.i.h.bf16 %v5895_v16  ;;  %v5896_v55 = vunpack.i.l.bf16 %v5895_v16  ;;  %v5932_v33 = vunpack.i.h.bf16 %v5930_v53 }
 0x29a   :  { %v5892_v46 = vunpack.i.h.bf16 %v5890_v61  ;;  %v5891_v30 = vunpack.i.l.bf16 %v5890_v61 }
 0x29b   :  { %2235 = vst.msk [vmem:[#allocation3 + $0x139] sm:$0xff] %vm14_vm0, %v2219_v17 }
 0x29c   :  { %v2180_v48 = vpop.f32.mrf.mxu0  ;;  %v3000_v34 = vsel %vm199_vm4, %v2992_v24, %v5892_v46  ;;  %v2999_v43 = vsel %vm199_vm4, %v2991_v0, %v5891_v30  ;;  %v2442_v24 = vld [vmem:[#allocation3 + $0x168] ss:$2 sm:$0xff] }
 0x29d   :  { %v2181_v18 = vadd.f32 %v7568_v41, %v2180_v48  ;;  %v3008_v40 = vsel %vm1883_vm6, %v3000_v34, %v5897_v58  ;;  %v3007_v22 = vsel %vm1883_vm6, %v2999_v43, %v5896_v55 }
 0x29e   :  { %v3015_v7 = vsel %vm1900_vm7, %v3007_v22, %v5901_v47  ;;  %v3016_v44 = vsel %vm1900_vm7, %v3008_v40, %v5902_v62  ;;  %v2408_v22 = vld [vmem:[#allocation3 + $0x122] ss:$2 sm:$0xff] }
 0x29f   :  { %v2204_v59 = vmul.f32 0.2, %v2181_v18 }
 0x2a0   :  { %v5910_v5 = vpop.permute.xlu1 %5909  ;;  %v5945_v13 = vpop.permute.xlu2 %5944 }
 0x2a1   :  { %v2220_v49 = vmax.f32 %v2181_v18, %v2204_v59  ;;  %v5905_v35 = vpop.permute.xlu0 %5904  ;;  %v5912_v9 = vunpack.i.h.bf16 %v5910_v5  ;;  %v5911_v38 = vunpack.i.l.bf16 %v5910_v5  ;;  %v5931_v18 = vunpack.i.l.bf16 %v5930_v53 }
 0x2a2   :  { %v5907_v6 = vunpack.i.h.bf16 %v5905_v35  ;;  %v5906_v57 = vunpack.i.l.bf16 %v5905_v35  ;;  %v2346_v23 = vld [vmem:[#allocation3 + $0x13a] ss:$2 sm:$0xff]  ;;  %v2330_v3 = vld [vmem:[#allocation3 + $0x139] ss:$2 sm:$0xff]  ;;  %v5947_v43 = vunpack.i.h.bf16 %v5945_v13 }
 0x2a3   :  { %v2314_v29 = vld [vmem:[#allocation3 + $0x138] ss:$2 sm:$0xff]  ;;  %2236 = vst.msk [vmem:[#allocation3 + $0x151] sm:$0xff] %vm14_vm0, %v2220_v49  ;;  %v6048_v14 = vpack.i.bf16 %v2346_v23, %v2344_v42  ;;  %v6043_v56 = vpack.i.bf16 %v2330_v3, %v2328_v32  ;;  %v2362_v11 = vld [vmem:[#allocation3 + $0x13b] ss:$2 sm:$0xff] }
 0x2a4   :  { %v6038_v54 = vpack.i.bf16 %v2314_v29, %v2312_v60  ;;  %v3023_v39 = vsel %vm1917_vm8, %v3015_v7, %v5906_v57  ;;  %v3024_v1 = vsel %vm1917_vm8, %v3016_v44, %v5907_v6  ;;  %v6053_v52 = vpack.i.bf16 %v2362_v11, %v2360_v36  ;;  %v2440_v46 = vld [vmem:[#allocation3 + $0x138] ss:$2 sm:$0xff]  ;;  %v2424_v35 = vld [vmem:[#allocation3 + $0x123] ss:$2 sm:$0xff] }
 0x2a5   :  { %6049 = vrot.lane.b32.xlu2 %v6048_v14, %s6389_s11  ;;  %6044 = vrot.lane.b32.xlu1 %v6043_v56, %s6388_s10  ;;  %v3031_v31 = vsel %vm1934_vm9, %v3023_v39, %v5911_v38  ;;  %v3032_v51 = vsel %vm1934_vm9, %v3024_v1, %v5912_v9  ;;  %v6078_v49 = vpack.i.bf16 %v2442_v24, %v2440_v46  ;;  %v5946_v6 = vunpack.i.l.bf16 %v5945_v13  ;;  %v2488_v38 = vld [vmem:[#allocation3 + $0x13b] ss:$2 sm:$0xff]  ;;  %v2472_v7 = vld [vmem:[#allocation3 + $0x13a] ss:$2 sm:$0xff]  ;;  %v2474_v11 = vld [vmem:[#allocation3 + $0x16a] ss:$2 sm:$0xff] }
 0x2a6   :  { %6039 = vrot.lane.b32.xlu0 %v6038_v54, %s6387_s27  ;;  %v3039_v16 = vsel %vm1951_vm10, %v3031_v31, %v5916_v19  ;;  %v3040_v17 = vsel %vm1951_vm10, %v3032_v51, %v5917_v12  ;;  %v2456_v39 = vld [vmem:[#allocation3 + $0x139] ss:$2 sm:$0xff]  ;;  %v2245_v46 = vld [vmem:[#allocation3 + $0x60] ss:$2 sm:$0xff] }
 0x2a8   :  { %v5925_v25 = vpop.permute.xlu1 %5924  ;;  %v7785_v44 = vpop.permute.xlu2 %5959 }
 0x2a9   :  { %v5920_v37 = vpop.permute.xlu0 %5919  ;;  %v5927_v63 = vunpack.i.h.bf16 %v5925_v25  ;;  %v5926_v2 = vunpack.i.l.bf16 %v5925_v25  ;;  %v2490_v25 = vld [vmem:[#allocation3 + $0x16b] ss:$2 sm:$0xff] }
 0x2aa   :  { %v5922_v4 = vunpack.i.h.bf16 %v5920_v37  ;;  %v5921_v21 = vunpack.i.l.bf16 %v5920_v37  ;;  %v2394_v20 = vld [vmem:[#allocation3 + $0x151] ss:$2 sm:$0xff]  ;;  %v2378_v10 = vld [vmem:[#allocation3 + $0x150] ss:$2 sm:$0xff]  ;;  %v6093_v51 = vpack.i.bf16 %v2490_v25, %v2488_v38  ;;  %v6088_v37 = vpack.i.bf16 %v2474_v11, %v2472_v7 }
 0x2ab   :  { %v6063_v28 = vpack.i.bf16 %v2394_v20, %v2392_v26  ;;  %v6058_v15 = vpack.i.bf16 %v2378_v10, %v2376_v50  ;;  %v2426_v48 = vld [vmem:[#allocation3 + $0x153] ss:$2 sm:$0xff]  ;;  %v2410_v34 = vld [vmem:[#allocation3 + $0x152] ss:$2 sm:$0xff] }
 0x2ac   :  { %v3047_v61 = vsel %vm1968_vm11, %v3039_v16, %v5921_v21  ;;  %v3048_v45 = vsel %vm1968_vm11, %v3040_v17, %v5922_v4  ;;  %v6073_v40 = vpack.i.bf16 %v2426_v48, %v2424_v35  ;;  %v6068_v3 = vpack.i.bf16 %v2410_v34, %v2408_v22  ;;  %v2458_v26 = vld [vmem:[#allocation3 + $0x169] ss:$2 sm:$0xff]  ;;  %v2285_v50 = vld [vmem:[#allocation3 + $0x152] ss:$2 sm:$0xff] }
 0x2ad   :  { %6064 = vrot.lane.b32.xlu2 %v6063_v28, %s6391_s13  ;;  %6059 = vrot.lane.b32.xlu1 %v6058_v15, %s6390_s12  ;;  %v3055_v30 = vsel %vm1985_vm12, %v3047_v61, %v5926_v2  ;;  %v3056_v27 = vsel %vm1985_vm12, %v3048_v45, %v5927_v63  ;;  %v6083_v36 = vpack.i.bf16 %v2458_v26, %v2456_v39  ;;  %v2301_v20 = vld [vmem:[#allocation3 + $0x153] ss:$2 sm:$0xff]  ;;  %v2287_v28 = vld [vmem:[#allocation3 + $0x182] ss:$2 sm:$0xff] }
 0x2ae   :  { %6054 = vrot.lane.b32.xlu0 %v6053_v52, %s6392_s14  ;;  %v3063_v42 = vsel %vm2002_vm13, %v3055_v30, %v5931_v18  ;;  %v3064_v32 = vsel %vm2002_vm13, %v3056_v27, %v5932_v33  ;;  %v2269_v10 = vld [vmem:[#allocation3 + $0x151] ss:$2 sm:$0xff]  ;;  %v6103_v16 = vpack.i.bf16 %v2287_v28, %v2285_v50  ;;  %v2271_v17 = vld [vmem:[#allocation3 + $0x181] ss:$2 sm:$0xff]  ;;  %v2247_v30 = vld [vmem:[#allocation3 + $0x90] ss:$2 sm:$0xff] }
 0x2af   :  { %v6098_v61 = vpack.i.bf16 %v2271_v17, %v2269_v10  ;;  %v2348_v34 = vld [vmem:[#allocation3 + $0x16a] ss:$2 sm:$0xff]  ;;  %v2396_v39 = vld [vmem:[#allocation3 + $0x181] ss:$2 sm:$0xff] }
 0x2b0   :  { %v7793_v15 = vpop.permute.xlu2 %5974  ;;  %v2316_v35 = vld [vmem:[#allocation3 + $0x168] ss:$2 sm:$0xff] }
 0x2b1   :  { %v5940_v8 = vpop.permute.xlu1 %5939  ;;  %v5935_v0 = vpop.permute.xlu0 %5934  ;;  %v5977_v25 = vunpack.i.h.bf16 %v7793_v15  ;;  %v5976_v11 = vunpack.i.l.bf16 %v7793_v15  ;;  %v2446_v10 = vld [vmem:[#allocation3 + $0x1c8] ss:$2 sm:$0xff] }
 0x2b2   :  { %v5942_v58 = vunpack.i.h.bf16 %v5940_v8  ;;  %v5941_v55 = vunpack.i.l.bf16 %v5940_v8  ;;  %v5937_v59 = vunpack.i.h.bf16 %v5935_v0  ;;  %v5936_v5 = vunpack.i.l.bf16 %v5935_v0 }
 0x2b3   :  { %v2188_v62 = vpop.f32.mrf.mxu3 }
 0x2b4   :  { %v2189_v60 = vadd.f32 %v7568_v41, %v2188_v62  ;;  %v3071_v57 = vsel %vm2019_vm14, %v3063_v42, %v5936_v5  ;;  %v3072_v23 = vsel %vm2019_vm14, %v3064_v32, %v5937_v59  ;;  %v5962_v42 = vunpack.i.h.bf16 %v7785_v44 }
 0x2b5   :  { %6079 = vrot.lane.b32.xlu2 %v6078_v49, %s6394_s19  ;;  %6074 = vrot.lane.b32.xlu1 %v6073_v40, %s6393_s15  ;;  %v3079_v47 = vsel %vm2036_vm15, %v3071_v57, %v5941_v55  ;;  %v3080_v14 = vsel %vm2036_vm15, %v3072_v23, %v5942_v58  ;;  %v5961_v32 = vunpack.i.l.bf16 %v7785_v44 }
 0x2b6   :  { %v2207_v29 = vmul.f32 0.2, %v2189_v60  ;;  %6069 = vrot.lane.b32.xlu0 %v6068_v3, %s6395_s20  ;;  %v3087_v56 = vsel %vm2053_vm1, %v3079_v47, %v5946_v6  ;;  %v3088_v54 = vsel %vm2053_vm1, %v3080_v14, %v5947_v43  ;;  %v2332_v43 = vld [vmem:[#allocation3 + $0x169] ss:$2 sm:$0xff] }
 0x2b7   :  { %v3095_v9 = vpack.c.bf16 %v3088_v54, %v3087_v56 }
 0x2b8   :  { %v2223_v53 = vmax.f32 %v2189_v60, %v2207_v29  ;;  %v5990_v40 = vpop.permute.xlu2 %5989 }
 0x2b9   :  { %3173 = vmatmul.bf16.vlgmr.msra.gmra.mxu1 %v3095_v9  ;;  %v5955_v4 = vpop.permute.xlu1 %5954  ;;  %v5950_v21 = vpop.permute.xlu0 %5949  ;;  %v5992_v17 = vunpack.i.h.bf16 %v5990_v40 }
 0x2ba   :  { %2239 = vst.msk [vmem:[#allocation3 + $0x199] sm:$0xff] %vm14_vm0, %v2223_v53  ;;  %v5952_v52 = vunpack.i.h.bf16 %v5950_v21  ;;  %v5951_v63 = vunpack.i.l.bf16 %v5950_v21  ;;  %v5957_v45 = vunpack.i.h.bf16 %v5955_v4  ;;  %v5956_v13 = vunpack.i.l.bf16 %v5955_v4 }
 0x2bb   :  { %v2190_v1 = vpop.f32.mrf.mxu3 }
 0x2bc   :  { %v2191_v31 = vadd.f32 %v7568_v41, %v2190_v1  ;;  %v2303_v41 = vld [vmem:[#allocation3 + $0x183] ss:$2 sm:$0xff]  ;;  %v2978_v27 = vsel %vm14_vm0, %v2247_v30, %v5952_v52  ;;  %v2977_v8 = vsel %vm14_vm0, %v2245_v46, %v5951_v63  ;;  %v2380_v1 = vld [vmem:[#allocation3 + $0x180] ss:$2 sm:$0xff] }
 0x2bd   :  { %6094 = vrot.lane.b32.xlu2 %v6093_v51, %s6397_s22  ;;  %6089 = vrot.lane.b32.xlu1 %v6088_v37, %s6396_s21  ;;  %v6108_v2 = vpack.i.bf16 %v2303_v41, %v2301_v20  ;;  %v2986_v0 = vsel %vm157_vm3, %v2978_v27, %v5957_v45  ;;  %v2985_v24 = vsel %vm157_vm3, %v2977_v8, %v5956_v13  ;;  %v2364_v37 = vld [vmem:[#allocation3 + $0x16b] ss:$2 sm:$0xff]  ;;  %v2412_v30 = vld [vmem:[#allocation3 + $0x182] ss:$2 sm:$0xff] }
 0x2be   :  { %v2208_v12 = vmul.f32 0.2, %v2191_v31  ;;  %6084 = vrot.lane.b32.xlu0 %v6083_v36, %s6398_s23  ;;  %v2993_v57 = vsel %vm1850_vm5, %v2985_v24, %v5961_v32  ;;  %v2994_v23 = vsel %vm1850_vm5, %v2986_v0, %v5962_v42  ;;  %v2428_v46 = vld [vmem:[#allocation3 + $0x183] ss:$2 sm:$0xff] }
 0x2bf   :  { %v2462_v32 = vld [vmem:[#allocation3 + $0x1c9] ss:$2 sm:$0xff] }
 0x2c0   :  { %v2224_v19 = vmax.f32 %v2191_v31, %v2208_v12  ;;  %v6005_v50 = vpop.permute.xlu2 %6004 }
 0x2c1   :  { %v2350_v33 = vld [vmem:[#allocation3 + $0x19a] ss:$2 sm:$0xff]  ;;  %v2334_v18 = vld [vmem:[#allocation3 + $0x199] ss:$2 sm:$0xff] }
 0x2c2   :  { %2240 = vst.msk [vmem:[#allocation3 + $0x1b1] sm:$0xff] %vm14_vm0, %v2224_v19  ;;  %v2318_v55 = vld [vmem:[#allocation3 + $0x198] ss:$2 sm:$0xff]  ;;  %v6123_v62 = vpack.i.bf16 %v2350_v33, %v2348_v34  ;;  %v6118_v49 = vpack.i.bf16 %v2334_v18, %v2332_v43  ;;  %v2366_v53 = vld [vmem:[#allocation3 + $0x19b] ss:$2 sm:$0xff] }
 0x2c3   :  { %v6113_v60 = vpack.i.bf16 %v2318_v55, %v2316_v35  ;;  %v6128_v26 = vpack.i.bf16 %v2366_v53, %v2364_v37  ;;  %v2444_v28 = vld [vmem:[#allocation3 + $0x198] ss:$2 sm:$0xff]  ;;  %v2492_v34 = vld [vmem:[#allocation3 + $0x19b] ss:$2 sm:$0xff]  ;;  %v2494_v43 = vld [vmem:[#allocation3 + $0x1cb] ss:$2 sm:$0xff] }
 0x2c4   :  { %v6153_v27 = vpack.i.bf16 %v2446_v10, %v2444_v28  ;;  %v2476_v35 = vld [vmem:[#allocation3 + $0x19a] ss:$2 sm:$0xff]  ;;  %v2460_v42 = vld [vmem:[#allocation3 + $0x199] ss:$2 sm:$0xff] }
 0x2c5   :  { %6109 = vrot.lane.b32.xlu2 %v6108_v2, %s6386_s18  ;;  %6104 = vrot.lane.b32.xlu1 %v6103_v16, %s6385_s17  ;;  %v6158_v53 = vpack.i.bf16 %v2462_v32, %v2460_v42  ;;  %v2251_v10 = vld [vmem:[#allocation3 + $0x120] ss:$2 sm:$0xff] }
 0x2c6   :  { %6099 = vrot.lane.b32.xlu0 %v6098_v61, %s6384_s16  ;;  %v5991_v61 = vunpack.i.l.bf16 %v5990_v40  ;;  %v6006_v40 = vunpack.i.l.bf16 %v6005_v50 }
 0x2c8   :  { %v5970_v48 = vpop.permute.xlu1 %5969 }
 0x2c9   :  { %v5965_v58 = vpop.permute.xlu0 %5964  ;;  %v5972_v22 = vunpack.i.h.bf16 %v5970_v48  ;;  %v5971_v6 = vunpack.i.l.bf16 %v5970_v48  ;;  %v2398_v14 = vld [vmem:[#allocation3 + $0x1b1] ss:$2 sm:$0xff]  ;;  %v2382_v56 = vld [vmem:[#allocation3 + $0x1b0] ss:$2 sm:$0xff] }
 0x2ca   :  { %v5967_v59 = vunpack.i.h.bf16 %v5965_v58  ;;  %v5966_v5 = vunpack.i.l.bf16 %v5965_v58  ;;  %v6138_v31 = vpack.i.bf16 %v2398_v14, %v2396_v39  ;;  %v6133_v51 = vpack.i.bf16 %v2382_v56, %v2380_v1  ;;  %v2430_v15 = vld [vmem:[#allocation3 + $0x1b3] ss:$2 sm:$0xff]  ;;  %v2414_v52 = vld [vmem:[#allocation3 + $0x1b2] ss:$2 sm:$0xff] }
 0x2cb   :  { %v6148_v8 = vpack.i.bf16 %v2430_v15, %v2428_v46  ;;  %v6143_v48 = vpack.i.bf16 %v2414_v52, %v2412_v30 }
 0x2cc   :  { %v3001_v3 = vsel %vm199_vm4, %v2993_v57, %v5966_v5  ;;  %v3002_v29 = vsel %vm199_vm4, %v2994_v23, %v5967_v59  ;;  %v2478_v59 = vld [vmem:[#allocation3 + $0x1ca] ss:$2 sm:$0xff] }
 0x2cd   :  { %6124 = vrot.lane.b32.xlu2 %v6123_v62, %s6389_s11  ;;  %6119 = vrot.lane.b32.xlu1 %v6118_v49, %s6388_s10  ;;  %v3009_v9 = vsel %vm1883_vm6, %v3001_v3, %v5971_v6  ;;  %v3010_v38 = vsel %vm1883_vm6, %v3002_v29, %v5972_v22  ;;  %v6020_v22 = vpop.permute.xlu2 %6019 }
 0x2ce   :  { %6114 = vrot.lane.b32.xlu0 %v6113_v60, %s6387_s27  ;;  %v3017_v19 = vsel %vm1900_vm7, %v3009_v9, %v5976_v11  ;;  %v3018_v4 = vsel %vm1900_vm7, %v3010_v38, %v5977_v25  ;;  %v6007_v60 = vunpack.i.h.bf16 %v6005_v50  ;;  %v6022_v9 = vunpack.i.h.bf16 %v6020_v22 }
 0x2cf   :  { %v6021_v38 = vunpack.i.l.bf16 %v6020_v22 }
 0x2d0   :  { %v5985_v47 = vpop.permute.xlu1 %5984 }
 0x2d1   :  { %v5980_v54 = vpop.permute.xlu0 %5979  ;;  %v5987_v36 = vunpack.i.h.bf16 %v5985_v47  ;;  %v5986_v12 = vunpack.i.l.bf16 %v5985_v47  ;;  %v6168_v47 = vpack.i.bf16 %v2494_v43, %v2492_v34 }
 0x2d2   :  { %v5982_v7 = vunpack.i.h.bf16 %v5980_v54  ;;  %v5981_v44 = vunpack.i.l.bf16 %v5980_v54  ;;  %v6163_v54 = vpack.i.bf16 %v2478_v59, %v2476_v35 }
 0x2d4   :  { %v3025_v21 = vsel %vm1917_vm8, %v3017_v19, %v5981_v44  ;;  %v3026_v20 = vsel %vm1917_vm8, %v3018_v4, %v5982_v7 }
 0x2d5   :  { %6139 = vrot.lane.b32.xlu2 %v6138_v31, %s6391_s13  ;;  %6134 = vrot.lane.b32.xlu1 %v6133_v51, %s6390_s12  ;;  %v3033_v63 = vsel %vm1934_vm9, %v3025_v21, %v5986_v12  ;;  %v3034_v2 = vsel %vm1934_vm9, %v3026_v20, %v5987_v36  ;;  %v6035_v51 = vpop.permute.xlu2 %6034  ;;  %v2249_v21 = vld [vmem:[#allocation3 + $0xf0] ss:$2 sm:$0xff] }
 0x2d6   :  { %6129 = vrot.lane.b32.xlu0 %v6128_v26, %s6392_s14  ;;  %v3041_v58 = vsel %vm1951_vm10, %v3033_v63, %v5991_v61  ;;  %v3042_v55 = vsel %vm1951_vm10, %v3034_v2, %v5992_v17  ;;  %v6037_v61 = vunpack.i.h.bf16 %v6035_v51 }
 0x2d8   :  { %v6000_v41 = vpop.permute.xlu1 %5999 }
 0x2d9   :  { %v5995_v16 = vpop.permute.xlu0 %5994  ;;  %v6002_v33 = vunpack.i.h.bf16 %v6000_v41  ;;  %v6001_v18 = vunpack.i.l.bf16 %v6000_v41 }
 0x2da   :  { %v5997_v45 = vunpack.i.h.bf16 %v5995_v16  ;;  %v5996_v13 = vunpack.i.l.bf16 %v5995_v16 }
 0x2dc   :  { %v3049_v0 = vsel %vm1968_vm11, %v3041_v58, %v5996_v13  ;;  %v3050_v24 = vsel %vm1968_vm11, %v3042_v55, %v5997_v45  ;;  %v6036_v45 = vunpack.i.l.bf16 %v6035_v51 }
 0x2dd   :  { %6154 = vrot.lane.b32.xlu2 %v6153_v27, %s6394_s19  ;;  %6149 = vrot.lane.b32.xlu1 %v6148_v8, %s6393_s15  ;;  %v3057_v5 = vsel %vm1985_vm12, %v3049_v0, %v6001_v18  ;;  %v3058_v62 = vsel %vm1985_vm12, %v3050_v24, %v6002_v33 }
 0x2de   :  { %6144 = vrot.lane.b32.xlu0 %v6143_v48, %s6395_s20  ;;  %v3065_v14 = vsel %vm2002_vm13, %v3057_v5, %v6006_v40  ;;  %v3066_v56 = vsel %vm2002_vm13, %v3058_v62, %v6007_v60 }
 0x2e0   :  { %v6015_v49 = vpop.permute.xlu1 %6014 }
 0x2e1   :  { %v6017_v6 = vunpack.i.h.bf16 %v6015_v49  ;;  %v6016_v57 = vunpack.i.l.bf16 %v6015_v49  ;;  %v6010_v23 = vpop.permute.xlu0 %6009 }
 0x2e2   :  { %v6012_v3 = vunpack.i.h.bf16 %v6010_v23  ;;  %v6011_v29 = vunpack.i.l.bf16 %v6010_v23 }
 0x2e4   :  { %v3073_v7 = vsel %vm2019_vm14, %v3065_v14, %v6011_v29  ;;  %v3074_v44 = vsel %vm2019_vm14, %v3066_v56, %v6012_v3 }
 0x2e5   :  { %6169 = vrot.lane.b32.xlu2 %v6168_v47, %s6397_s22  ;;  %6164 = vrot.lane.b32.xlu1 %v6163_v54, %s6396_s21  ;;  %v3081_v39 = vsel %vm2036_vm15, %v3073_v7, %v6016_v57  ;;  %v3082_v1 = vsel %vm2036_vm15, %v3074_v44, %v6017_v6 }
 0x2e6   :  { %6159 = vrot.lane.b32.xlu0 %v6158_v53, %s6398_s23  ;;  %v3089_v25 = vsel %vm2053_vm1, %v3081_v39, %v6021_v38  ;;  %v3090_v11 = vsel %vm2053_vm1, %v3082_v1, %v6022_v9 }
 0x2e7   :  { %v3096_v31 = vpack.c.bf16 %v3090_v11, %v3089_v25 }
 0x2e8   :  { %v6030_v26 = vpop.permute.xlu1 %6029 }
 0x2e9   :  { %3178 = vmatmul.bf16.gmra.mxu1 %v3096_v31  ;;  %v6025_v36 = vpop.permute.xlu0 %6024  ;;  %v6032_v20 = vunpack.i.h.bf16 %v6030_v26  ;;  %v6031_v50 = vunpack.i.l.bf16 %v6030_v26 }
 0x2ea   :  { %v6027_v19 = vunpack.i.h.bf16 %v6025_v36  ;;  %v6026_v4 = vunpack.i.l.bf16 %v6025_v36 }
 0x2ec   :  { %v2980_v41 = vsel %vm14_vm0, %v2251_v10, %v6027_v19  ;;  %v2979_v28 = vsel %vm14_vm0, %v2249_v21, %v6026_v4 }
 0x2ed   :  { %v2988_v63 = vsel %vm157_vm3, %v2980_v41, %v6032_v20  ;;  %v2987_v2 = vsel %vm157_vm3, %v2979_v28, %v6031_v50 }
 0x2ee   :  { %v2995_v27 = vsel %vm1850_vm5, %v2987_v2, %v6036_v45  ;;  %v2996_v8 = vsel %vm1850_vm5, %v2988_v63, %v6037_v61 }
 0x2ff   :  { %v6050_v37 = vpop.permute.xlu2 %6049 }
 0x300   :  { %v6052_v43 = vunpack.i.h.bf16 %v6050_v37  ;;  %v6051_v59 = vunpack.i.l.bf16 %v6050_v37 }
 0x307   :  { %v6065_v12 = vpop.permute.xlu2 %6064 }
 0x308   :  { %v6067_v23 = vunpack.i.h.bf16 %v6065_v12  ;;  %v6066_v3 = vunpack.i.l.bf16 %v6065_v12 }
 0x30f   :  { %v6080_v13 = vpop.permute.xlu2 %6079 }
 0x310   :  { %v6082_v1 = vunpack.i.h.bf16 %v6080_v13  ;;  %v6081_v25 = vunpack.i.l.bf16 %v6080_v13 }
 0x317   :  { %v6045_v15 = vpop.permute.xlu1 %6044  ;;  %v6095_v60 = vpop.permute.xlu2 %6094 }
 0x318   :  { %v6040_v52 = vpop.permute.xlu0 %6039  ;;  %v6047_v46 = vunpack.i.h.bf16 %v6045_v15  ;;  %v6046_v30 = vunpack.i.l.bf16 %v6045_v15  ;;  %v6097_v4 = vunpack.i.h.bf16 %v6095_v60  ;;  %v6096_v21 = vunpack.i.l.bf16 %v6095_v60 }
 0x319   :  { %v6042_v16 = vunpack.i.h.bf16 %v6040_v52  ;;  %v6041_v17 = vunpack.i.l.bf16 %v6040_v52 }
 0x31b   :  { %v3003_v48 = vsel %vm199_vm4, %v2995_v27, %v6041_v17  ;;  %v3004_v33 = vsel %vm199_vm4, %v2996_v8, %v6042_v16 }
 0x31c   :  { %v3011_v55 = vsel %vm1883_vm6, %v3003_v48, %v6046_v30  ;;  %v3012_v0 = vsel %vm1883_vm6, %v3004_v33, %v6047_v46  ;;  %v2253_v46 = vld [vmem:[#allocation3 + $0x150] ss:$2 sm:$0xff]  ;;  %v2255_v30 = vld [vmem:[#allocation3 + $0x180] ss:$2 sm:$0xff] }
 0x31d   :  { %v3019_v49 = vsel %vm1900_vm7, %v3011_v55, %v6051_v59  ;;  %v3020_v35 = vsel %vm1900_vm7, %v3012_v0, %v6052_v43 }
 0x31f   :  { %v6060_v18 = vpop.permute.xlu1 %6059  ;;  %v6110_v11 = vpop.permute.xlu2 %6109 }
 0x320   :  { %v6055_v58 = vpop.permute.xlu0 %6054  ;;  %v6062_v5 = vunpack.i.h.bf16 %v6060_v18  ;;  %v6061_v62 = vunpack.i.l.bf16 %v6060_v18 }
 0x321   :  { %v6057_v24 = vunpack.i.h.bf16 %v6055_v58  ;;  %v6056_v34 = vunpack.i.l.bf16 %v6055_v58 }
 0x323   :  { %v3027_v42 = vsel %vm1917_vm8, %v3019_v49, %v6056_v34  ;;  %v3028_v32 = vsel %vm1917_vm8, %v3020_v35, %v6057_v24  ;;  %v6112_v24 = vunpack.i.h.bf16 %v6110_v11  ;;  %v6111_v34 = vunpack.i.l.bf16 %v6110_v11 }
 0x324   :  { %v3035_v22 = vsel %vm1934_vm9, %v3027_v42, %v6061_v62  ;;  %v3036_v6 = vsel %vm1934_vm9, %v3028_v32, %v6062_v5 }
 0x325   :  { %v3043_v54 = vsel %vm1951_vm10, %v3035_v22, %v6066_v3  ;;  %v3044_v53 = vsel %vm1951_vm10, %v3036_v6, %v6067_v23 }
 0x327   :  { %v6075_v40 = vpop.permute.xlu1 %6074  ;;  %v6125_v16 = vpop.permute.xlu2 %6124 }
 0x328   :  { %v6070_v57 = vpop.permute.xlu0 %6069  ;;  %v6077_v14 = vunpack.i.h.bf16 %v6075_v40  ;;  %v6076_v56 = vunpack.i.l.bf16 %v6075_v40  ;;  %v6127_v23 = vunpack.i.h.bf16 %v6125_v16  ;;  %v6126_v3 = vunpack.i.l.bf16 %v6125_v16 }
 0x329   :  { %v6072_v29 = vunpack.i.h.bf16 %v6070_v57  ;;  %v6071_v47 = vunpack.i.l.bf16 %v6070_v57 }
 0x32b   :  { %v3051_v9 = vsel %vm1968_vm11, %v3043_v54, %v6071_v47  ;;  %v3052_v38 = vsel %vm1968_vm11, %v3044_v53, %v6072_v29 }
 0x32c   :  { %v3059_v7 = vsel %vm1985_vm12, %v3051_v9, %v6076_v56  ;;  %v3060_v44 = vsel %vm1985_vm12, %v3052_v38, %v6077_v14 }
 0x32d   :  { %v3067_v12 = vsel %vm2002_vm13, %v3059_v7, %v6081_v25  ;;  %v3068_v19 = vsel %vm2002_vm13, %v3060_v44, %v6082_v1 }
 0x32f   :  { %v6090_v39 = vpop.permute.xlu1 %6089  ;;  %v6140_v43 = vpop.permute.xlu2 %6139 }
 0x330   :  { %v6092_v31 = vunpack.i.h.bf16 %v6090_v39  ;;  %v6091_v51 = vunpack.i.l.bf16 %v6090_v39  ;;  %v6085_v37 = vpop.permute.xlu0 %6084  ;;  %v6142_v1 = vunpack.i.h.bf16 %v6140_v43  ;;  %v6141_v25 = vunpack.i.l.bf16 %v6140_v43 }
 0x331   :  { %v6087_v26 = vunpack.i.h.bf16 %v6085_v37  ;;  %v6086_v36 = vunpack.i.l.bf16 %v6085_v37 }
 0x333   :  { %v3075_v20 = vsel %vm2019_vm14, %v3067_v12, %v6086_v36  ;;  %v3076_v50 = vsel %vm2019_vm14, %v3068_v19, %v6087_v26 }
 0x334   :  { %v3083_v10 = vsel %vm2036_vm15, %v3075_v20, %v6091_v51  ;;  %v3084_v41 = vsel %vm2036_vm15, %v3076_v50, %v6092_v31 }
 0x335   :  { %v3091_v28 = vsel %vm2053_vm1, %v3083_v10, %v6096_v21  ;;  %v3092_v15 = vsel %vm2053_vm1, %v3084_v41, %v6097_v4 }
 0x336   :  { %v3097_v52 = vpack.c.bf16 %v3092_v15, %v3091_v28 }
 0x337   :  { %v6105_v63 = vpop.permute.xlu1 %6104  ;;  %v6155_v9 = vpop.permute.xlu2 %6154 }
 0x338   :  { %v6100_v2 = vpop.permute.xlu0 %6099  ;;  %3183 = vmatmul.bf16.gmra.mxu1 %v3097_v52  ;;  %v6107_v45 = vunpack.i.h.bf16 %v6105_v63  ;;  %v6106_v13 = vunpack.i.l.bf16 %v6105_v63  ;;  %v6157_v50 = vunpack.i.h.bf16 %v6155_v9  ;;  %v6156_v10 = vunpack.i.l.bf16 %v6155_v9 }
 0x339   :  { %v6102_v17 = vunpack.i.h.bf16 %v6100_v2  ;;  %v6101_v61 = vunpack.i.l.bf16 %v6100_v2 }
 0x33b   :  { %v2982_v27 = vsel %vm14_vm0, %v2255_v30, %v6102_v17  ;;  %v2981_v8 = vsel %vm14_vm0, %v2253_v46, %v6101_v61 }
 0x33c   :  { %v2990_v18 = vsel %vm157_vm3, %v2982_v27, %v6107_v45  ;;  %v2989_v58 = vsel %vm157_vm3, %v2981_v8, %v6106_v13 }
 0x33d   :  { %v2997_v62 = vsel %vm1850_vm5, %v2989_v58, %v6111_v34  ;;  %v2998_v49 = vsel %vm1850_vm5, %v2990_v18, %v6112_v24  ;;  %v3174_v18 = vpop.f32.mrf.mxu1  ;;  %v3194_v24 = vlaneseq }
 0x33f   :  { %v6120_v48 = vpop.permute.xlu1 %6119  ;;  %v6170_v41 = vpop.permute.xlu2 %6169  ;;  %v3195_v34 = vshrl.u32 %v3194_v24, 7 }
 0x340   :  { %v6115_v33 = vpop.permute.xlu0 %6114  ;;  %v6122_v59 = vunpack.i.h.bf16 %v6120_v48  ;;  %v6121_v5 = vunpack.i.l.bf16 %v6120_v48  ;;  %v6172_v61 = vunpack.i.h.bf16 %v6170_v41  ;;  %v6171_v45 = vunpack.i.l.bf16 %v6170_v41 }
 0x341   :  { %v6117_v55 = vunpack.i.h.bf16 %v6115_v33  ;;  %v6116_v0 = vunpack.i.l.bf16 %v6115_v33  ;;  %v3196_v43 = vadd.s32 8, %v3195_v34 }
 0x343   :  { %v3005_v35 = vsel %vm199_vm4, %v2997_v62, %v6116_v0  ;;  %v3006_v42 = vsel %vm199_vm4, %v2998_v49, %v6117_v55  ;;  %v7906_v62 = vand.u32 7, %v3196_v43  ;;  %v7908_v49 = vadd.s32 24, %v3195_v34 }
 0x344   :  { %v3013_v40 = vsel %vm1883_vm6, %v3005_v35, %v6121_v5  ;;  %v3014_v22 = vsel %vm1883_vm6, %v3006_v42, %v6122_v59  ;;  %v7904_v5 = vadd.s32 16, %v3195_v34  ;;  %v7910_v35 = vand.u32 7, %v3195_v34 }
 0x345   :  { %v3021_v14 = vsel %vm1900_vm7, %v3013_v40, %v6126_v3  ;;  %v3022_v56 = vsel %vm1900_vm7, %v3014_v22, %v6127_v23  ;;  %v3176_v58 = vpop.f32.mrf.mxu1  ;;  %vm3300_vm0 = vcmp.lt.s32.totalorder %v7906_v62, 4  ;;  %v3228_v40 = vand.u32 7, %v7908_v49 }
 0x346   :  { %v3221_v42 = vand.u32 7, %v7904_v5  ;;  %v3200_v22 = vadd.s32 40, %v3195_v34  ;;  %vm3299_vm2 = vcmp.lt.s32.totalorder %v7910_v35, 4  ;;  %v8363_v23 = vmov 0.0  }
 0x347   :  { %v6135_v32 = vpop.permute.xlu1 %6134  ;;  %v4980_v3 = vsel %vm3300_vm0, 1.0, %v8363_v23  ;;  %vm3302_vm6 = vcmp.lt.s32.totalorder %v3228_v40, 4  ;;  %vm183_vm0 = vcmask 126976  }
 0x348   :  { %v6130_v60 = vpop.permute.xlu0 %6129  ;;  %v6137_v29 = vunpack.i.h.bf16 %v6135_v32  ;;  %v6136_v47 = vunpack.i.l.bf16 %v6135_v32  ;;  %v3199_v32 = vadd.s32 32, %v3195_v34  ;;  %vm3301_vm5 = vcmp.lt.s32.totalorder %v3221_v42, 4  ;;  %186 = vst.msk [vmem:[#allocation4 + $0x3d] sm:$0x1f] %vm183_vm0, %v8363_v23 }
 0x349   :  { %v6132_v6 = vunpack.i.h.bf16 %v6130_v60  ;;  %v6131_v57 = vunpack.i.l.bf16 %v6130_v60  ;;  %v6374_v60 = vld [vmem:[%s8335_s2 + $0x3] ss:$0 sm:$0xff]  ;;  %184 = vst.msk [vmem:[#allocation4 + $0x25] sm:$0x1f] %vm183_vm0, %v8363_v23 }
 0x34a   :  { %188 = vst.msk [vmem:[#allocation4 + $0x55] sm:$0x1f] %vm183_vm0, %v8363_v23 }
 0x34b   :  { %v3029_v54 = vsel %vm1917_vm8, %v3021_v14, %v6131_v57  ;;  %v3030_v53 = vsel %vm1917_vm8, %v3022_v56, %v6132_v6  ;;  %v3177_v6 = vadd.f32 %v6374_v60, %v3176_v58  ;;  %v3175_v14 = vadd.f32 %v6374_v60, %v3174_v18  ;;  %190 = vst.msk [vmem:[#allocation4 + $0x6d] sm:$0x1f] %vm183_vm0, %v8363_v23 }
 0x34c   :  { %v3037_v7 = vsel %vm1934_vm9, %v3029_v54, %v6136_v47  ;;  %v3038_v44 = vsel %vm1934_vm9, %v3030_v53, %v6137_v29  ;;  %v3235_v29 = vand.u32 7, %v3199_v32  ;;  %v3201_v47 = vadd.s32 48, %v3195_v34  ;;  %192 = vst.msk [vmem:[#allocation4 + $0xb5] sm:$0x1f] %vm183_vm0, %v8363_v23 }
 0x34d   :  { %v3045_v26 = vsel %vm1951_vm10, %v3037_v7, %v6141_v25  ;;  %v3046_v36 = vsel %vm1951_vm10, %v3038_v44, %v6142_v1  ;;  %v4979_v56 = vsel %vm3299_vm2, 1.0, %v8363_v23  ;;  %v3242_v53 = vand.u32 7, %v3200_v22  ;;  %194 = vst.msk [vmem:[#allocation4 + $0xcd] sm:$0x1f] %vm183_vm0, %v8363_v23 }
 0x34e   :  { %v3326_v9 = vmul.f32 %v4980_v3, %v3177_v6  ;;  %vm3303_vm8 = vcmp.lt.s32.totalorder %v3235_v29, 4  ;;  %v3249_v44 = vand.u32 7, %v3201_v47  ;;  %v3325_v1 = vmul.f32 %v4979_v56, %v3175_v14  ;;  %196 = vst.msk [vmem:[#allocation4 + $0xe5] sm:$0x1f] %vm183_vm0, %v8363_v23 }
 0x34f   :  { %v6150_v38 = vpop.permute.xlu1 %6149  ;;  %v4982_v25 = vsel %vm3302_vm6, 1.0, %v8363_v23  ;;  %vm3304_vm10 = vcmp.lt.s32.totalorder %v3242_v53, 4  ;;  %198 = vst.msk [vmem:[#allocation4 + $0xfd] sm:$0x1f] %vm183_vm0, %v8363_v23 }
 0x350   :  { %v6145_v39 = vpop.permute.xlu0 %6144  ;;  %v6152_v51 = vunpack.i.h.bf16 %v6150_v38  ;;  %v6151_v37 = vunpack.i.l.bf16 %v6150_v38  ;;  %v4981_v38 = vsel %vm3301_vm5, 1.0, %v8363_v23  ;;  %vm173_vm5 = vcmask 122880  }
 0x351   :  { %v6147_v11 = vunpack.i.h.bf16 %v6145_v39  ;;  %v6146_v31 = vunpack.i.l.bf16 %v6145_v39  ;;  %v3202_v39 = vadd.s32 56, %v3195_v34  ;;  %174 = vst.msk [vmem:[#allocation4 + $0x18] sm:$0x1] %vm173_vm5, %v8363_v23 }
 0x352   :  { %176 = vst.msk [vmem:[#allocation4 + $0x48] sm:$0x1] %vm173_vm5, %v8363_v23 }
 0x353   :  { %v3053_v12 = vsel %vm1968_vm11, %v3045_v26, %v6146_v31  ;;  %v3054_v19 = vsel %vm1968_vm11, %v3046_v36, %v6147_v11  ;;  %175 = vst.msk [vmem:[#allocation4 + $0x30] sm:$0x1] %vm173_vm5, %v8363_v23 }
 0x354   :  { %v3061_v4 = vsel %vm1985_vm12, %v3053_v12, %v6151_v37  ;;  %v3062_v21 = vsel %vm1985_vm12, %v3054_v19, %v6152_v51  ;;  %v3333_v51 = vadd.f32 %v3326_v9, %v3325_v1  ;;  %v4983_v37 = vsel %vm3303_vm8, 1.0, %v8363_v23  ;;  %177 = vst.msk [vmem:[#allocation4 + $0x60] sm:$0x1] %vm173_vm5, %v8363_v23 }
 0x355   :  { %v3069_v16 = vsel %vm2002_vm13, %v3061_v4, %v6156_v10  ;;  %v3070_v17 = vsel %vm2002_vm13, %v3062_v21, %v6157_v50  ;;  %vm3305_vm12 = vcmp.lt.s32.totalorder %v3249_v44, 4  ;;  %v3256_v19 = vand.u32 7, %v3202_v39  ;;  %178 = vst.msk [vmem:[#allocation4 + $0xa8] sm:$0x1] %vm173_vm5, %v8363_v23 }
 0x356   :  { %v4984_v4 = vsel %vm3304_vm10, 1.0, %v8363_v23  ;;  %v4985_v10 = vsel %vm3305_vm12, 1.0, %v8363_v23  ;;  %vm3431_vm10 = vcmask 125952   ;;  %179 = vst.msk [vmem:[#allocation4 + $0xc0] sm:$0x1] %vm173_vm5, %v8363_v23  ;;  %vm201_vm12 = vcmask 256000  }
 0x357   :  { %v6165_v20 = vpop.permute.xlu1 %6164  ;;  %180 = vst.msk [vmem:[#allocation4 + $0xd8] sm:$0x1] %vm173_vm5, %v8363_v23 }
 0x358   :  { %v6167_v28 = vunpack.i.h.bf16 %v6165_v20  ;;  %v6166_v15 = vunpack.i.l.bf16 %v6165_v20  ;;  %v6160_v52 = vpop.permute.xlu0 %6159  ;;  %181 = vst.msk [vmem:[#allocation4 + $0xf0] sm:$0x1] %vm173_vm5, %v8363_v23  ;;  %vm4098_vm5 = vcmask 254976  }
 0x359   :  { %v6162_v63 = vunpack.i.h.bf16 %v6160_v52  ;;  %v6161_v2 = vunpack.i.l.bf16 %v6160_v52  ;;  %202 = vst.msk [vmem:[#allocation5 + $0x8] sm:$0x7] %vm201_vm12, %v8363_v23 }
 0x35a   :  { %204 = vst.msk [vmem:[#allocation5 + $0x48] sm:$0x7] %vm201_vm12, %v8363_v23 }
 0x35b   :  { %v3077_v13 = vsel %vm2019_vm14, %v3069_v16, %v6161_v2  ;;  %v3078_v46 = vsel %vm2019_vm14, %v3070_v17, %v6162_v63  ;;  %vm3306_vm14 = vcmp.lt.s32.totalorder %v3256_v19, 4  ;;  %207 = vst.msk [vmem:[#allocation5 + $0x38] sm:$0x7] %vm201_vm12, %v8363_v23 }
 0x35c   :  { %v3085_v30 = vsel %vm2036_vm15, %v3077_v13, %v6166_v15  ;;  %v3086_v27 = vsel %vm2036_vm15, %v3078_v46, %v6167_v28  ;;  %v4986_v2 = vsel %vm3306_vm14, 1.0, %v8363_v23  ;;  %209 = vst.msk [vmem:[#allocation5 + $0x78] sm:$0x7] %vm201_vm12, %v8363_v23  ;;  %vm211_vm14 = vcmask 253952  }
 0x35d   :  { %v3093_v8 = vsel %vm2053_vm1, %v3085_v30, %v6171_v45  ;;  %v3094_v48 = vsel %vm2053_vm1, %v3086_v27, %v6172_v61  ;;  %vm160_vm1 = vcmask 123904   ;;  %212 = vst.msk [vmem:[#allocation5 + $0x10] sm:$0x1] %vm211_vm14, %v8363_v23 }
 0x35e   :  { %v3098_v33 = vpack.c.bf16 %v3094_v48, %v3093_v8  ;;  %161 = vst.msk [vmem:[#allocation4 + $0x10] sm:$0x3] %vm160_vm1, %v8363_v23 }
 0x35f   :  { %164 = vst.msk [vmem:[#allocation4 + $0xa0] sm:$0x3] %vm160_vm1, %v8363_v23 }
 0x360   :  { %3188 = vmatmul.bf16.gmra.mxu1 %v3098_v33  ;;  %168 = vst.msk [vmem:[#allocation4 + $0x88] sm:$0x3] %vm160_vm1, %v8363_v23 }
 0x361   :  { %171 = vst.msk [vmem:[#allocation4 + $0x118] sm:$0x3] %vm160_vm1, %v8363_v23 }
 0x362   :  { %214 = vst.msk [vmem:[#allocation5 + $0x50] sm:$0x1] %vm211_vm14, %v8363_v23 }
 0x363   :  { %213 = vst.msk [vmem:[#allocation5 + $0x20] sm:$0x1] %vm211_vm14, %v8363_v23 }
 0x364   :  { %215 = vst.msk [vmem:[#allocation5 + $0x60] sm:$0x1] %vm211_vm14, %v8363_v23 }
 0x366   :  { %v3179_v55 = vpop.f32.mrf.mxu1 }
 0x367   :  { %v3180_v54 = vadd.f32 %v6374_v60, %v3179_v55 }
 0x369   :  { %v3327_v11 = vmul.f32 %v4981_v38, %v3180_v54 }
 0x36b   :  { %v3334_v21 = vadd.f32 %v3333_v51, %v3327_v11 }
 0x36e   :  { %v3181_v0 = vpop.f32.mrf.mxu1 }
 0x36f   :  { %v3182_v7 = vadd.f32 %v6374_v60, %v3181_v0 }
 0x371   :  { %v3328_v36 = vmul.f32 %v4982_v25, %v3182_v7 }
 0x373   :  { %v3335_v41 = vadd.f32 %v3334_v21, %v3328_v36 }
 0x3b5   :  { %v3184_v59 = vpop.f32.mrf.mxu1 }
 0x3b6   :  { %v3185_v31 = vadd.f32 %v6374_v60, %v3184_v59 }
 0x3b8   :  { %v3329_v20 = vmul.f32 %v4983_v37, %v3185_v31 }
 0x3ba   :  { %v3336_v15 = vadd.f32 %v3335_v41, %v3329_v20 }
 0x3bd   :  { %v3186_v57 = vpop.f32.mrf.mxu1 }
 0x3be   :  { %v3187_v12 = vadd.f32 %v6374_v60, %v3186_v57 }
 0x3c0   :  { %v3330_v28 = vmul.f32 %v4984_v4, %v3187_v12 }
 0x3c2   :  { %v3337_v16 = vadd.f32 %v3336_v15, %v3330_v28 }
 0x3dd   :  { %v3189_v26 = vpop.f32.mrf.mxu1 }
 0x3de   :  { %v3190_v50 = vadd.f32 %v6374_v60, %v3189_v26 }
 0x3e0   :  { %v3331_v52 = vmul.f32 %v4985_v10, %v3190_v50 }
 0x3e2   :  { %v3338_v61 = vadd.f32 %v3337_v16, %v3331_v52 }
 0x3e5   :  { %v3191_v63 = vpop.f32.mrf.mxu1 }
 0x3e6   :  { %v3192_v17 = vadd.f32 %v6374_v60, %v3191_v63 }
 0x3e8   :  { %v3332_v45 = vmul.f32 %v4986_v2, %v3192_v17 }
 0x3ea   :  { %v3339_v13 = vadd.f32 %v3338_v61, %v3332_v45 }
 0x3ec   :  { %v3340_v46 = vrot.slane %v3339_v13, 4 }
 0x3ee   :  { %v3341_v30 = vadd.f32 %v3340_v46, %v3339_v13  ;;  %v6375_v13 = vld [vmem:[%s8335_s2 + $0x5] ss:$0 sm:$0xff] }
 0x3f0   :  { %v3342_v27 = vrot.slane %v3341_v30, 2 }
 0x3f2   :  { %v3343_v8 = vadd.f32 %v3342_v27, %v3341_v30 }
 0x3f4   :  { %v3344_v48 = vrot.slane %v3343_v8, 1 }
 0x3f6   :  { %v3345_v33 = vadd.f32 %v3344_v48, %v3343_v8 }
 0x3f8   :  { %v3346_v18 = vmul.f32 0.03125, %v3345_v33 }
 0x3fa   :  { %v7931_v58 = vsub.f32 %v3175_v14, %v3346_v18  ;;  %v7933_v55 = vsub.f32 %v3177_v6, %v3346_v18  ;;  %v7935_v0 = vsub.f32 %v3180_v54, %v3346_v18  ;;  %v7937_v24 = vsub.f32 %v3182_v7, %v3346_v18 }
 0x3fb   :  { %v7939_v34 = vsub.f32 %v3185_v31, %v3346_v18  ;;  %v7944_v60 = vsub.f32 %v3187_v12, %v3346_v18  ;;  %v7947_v6 = vsub.f32 %v3190_v50, %v3346_v18  ;;  %v7950_v53 = vsub.f32 %v3192_v17, %v3346_v18 }
 0x3fc   :  { %v3355_v43 = vmul.f32 %v4979_v56, %v7931_v58  ;;  %v3356_v59 = vmul.f32 %v4980_v3, %v7933_v55  ;;  %v3357_v32 = vmul.f32 %v4981_v38, %v7935_v0  ;;  %v3358_v22 = vmul.f32 %v4982_v25, %v7937_v24 }
 0x3fd   :  { %v3359_v47 = vmul.f32 %v4983_v37, %v7939_v34  ;;  %v3360_v56 = vmul.f32 %v4984_v4, %v7944_v60  ;;  %v3361_v38 = vmul.f32 %v4985_v10, %v7947_v6  ;;  %v3362_v39 = vmul.f32 %v4986_v2, %v7950_v53  ;;  %v3323_v2 = vld [vmem:[%s8335_s2 + $0x4] sm:$0x1] }
 0x3fe   :  { %v3363_v57 = vmul.f32 %v3355_v43, %v3355_v43  ;;  %v3364_v29 = vmul.f32 %v3356_v59, %v3356_v59  ;;  %v3365_v14 = vmul.f32 %v3357_v32, %v3357_v32  ;;  %v3366_v9 = vmul.f32 %v3358_v22, %v3358_v22 }
 0x3ff   :  { %v3367_v7 = vmul.f32 %v3359_v47, %v3359_v47  ;;  %v3368_v1 = vmul.f32 %v3360_v56, %v3360_v56  ;;  %v3369_v11 = vmul.f32 %v3361_v38, %v3361_v38  ;;  %v3370_v51 = vmul.f32 %v3362_v39, %v3362_v39 }
 0x400   :  { %v3371_v54 = vadd.f32 %v3364_v29, %v3363_v57 }
 0x402   :  { %v3372_v3 = vadd.f32 %v3371_v54, %v3365_v14 }
 0x404   :  { %v3373_v44 = vadd.f32 %v3372_v3, %v3366_v9 }
 0x406   :  { %v3374_v25 = vadd.f32 %v3373_v44, %v3367_v7 }
 0x408   :  { %v3375_v31 = vadd.f32 %v3374_v25, %v3368_v1  ;;  %v3448_v25 = vld [vmem:[#allocation4 + $0x1] ss:$2 sm:$0xff] }
 0x40a   :  { %v3376_v37 = vadd.f32 %v3375_v31, %v3369_v11  ;;  %v3464_v11 = vld [vmem:[#allocation4 + $0x3] ss:$2 sm:$0xff]  ;;  %v3456_v31 = vld [vmem:[#allocation4 + $0x2] ss:$2 sm:$0xff] }
 0x40c   :  { %v3377_v26 = vadd.f32 %v3376_v37, %v3370_v51 }
 0x40e   :  { %v3378_v36 = vrot.slane %v3377_v26, 4 }
 0x410   :  { %v3379_v12 = vadd.f32 %v3378_v36, %v3377_v26 }
 0x412   :  { %v3380_v19 = vrot.slane %v3379_v12, 2 }
 0x414   :  { %v3381_v21 = vadd.f32 %v3380_v19, %v3379_v12 }
 0x416   :  { %v3382_v4 = vrot.slane %v3381_v21, 1 }
 0x418   :  { %v3383_v20 = vadd.f32 %v3382_v4, %v3381_v21 }
 0x41a   :  { %v3384_v50 = vmul.f32 0.03125, %v3383_v20 }
 0x41c   :  { %v3385_v41 = vadd.f32 1e-05, %v3384_v50 }
 0x41e   :  { %6379 = vrsqrt.f32 %v3385_v41  ;;  %vm3392_vm6 = vweird.f32 %v3385_v41 }
 0x424   :  { %v6380_v10 = vpop.eup %6379 }
 0x425   :  { %v3387_v28 = vmul.f32 %v6380_v10, %v3385_v41  ;;  %vm3393_vm2 = vweird.f32 %v6380_v10 }
 0x426   :  { %vm3394_vm8 = vmor %vm3392_vm6, %vm3393_vm2 }
 0x427   :  { %v3388_v15 = vmul.f32 %v6380_v10, %v3387_v28 }
 0x429   :  { %v3389_v52 = vmul.f32 0.5, %v3388_v15 }
 0x42b   :  { %v3390_v63 = vsub.f32 1.5, %v3389_v52 }
 0x42d   :  { %v3391_v16 = vmul.f32 %v6380_v10, %v3390_v63 }
 0x42f   :  { %v3395_v17 = vsel %vm3394_vm8, %v6380_v10, %v3391_v16 }
 0x430   :  { %v3396_v61 = vmul.f32 %v3395_v17, %v3323_v2 }
 0x432   :  { %v3397_v45 = vperm.slane %v3396_v61, 0 }
 0x434   :  { %v3398_v46 = vmul.f32 %v3397_v45, %v7931_v58  ;;  %v3399_v30 = vmul.f32 %v3397_v45, %v7933_v55  ;;  %v3400_v27 = vmul.f32 %v3397_v45, %v7935_v0  ;;  %v3401_v8 = vmul.f32 %v3397_v45, %v7937_v24 }
 0x435   :  { %v3402_v48 = vmul.f32 %v3397_v45, %v7939_v34  ;;  %v3403_v33 = vmul.f32 %v3397_v45, %v7944_v60  ;;  %v3404_v18 = vmul.f32 %v3397_v45, %v7947_v6  ;;  %v3405_v43 = vmul.f32 %v3397_v45, %v7950_v53 }
 0x436   :  { %v3407_v58 = vadd.f32 %v6375_v13, %v3398_v46  ;;  %v3408_v55 = vadd.f32 %v6375_v13, %v3399_v30  ;;  %v3409_v59 = vadd.f32 %v6375_v13, %v3400_v27  ;;  %v3410_v0 = vadd.f32 %v6375_v13, %v3401_v8  ;;  %v3545_v27 = vld [vmem:[#allocation4 + $0x79] ss:$2 sm:$0xff] }
 0x437   :  { %v3411_v24 = vadd.f32 %v6375_v13, %v3402_v48  ;;  %v3412_v32 = vadd.f32 %v6375_v13, %v3403_v33  ;;  %v3413_v22 = vadd.f32 %v6375_v13, %v3404_v18  ;;  %v3414_v34 = vadd.f32 %v6375_v13, %v3405_v43  ;;  %v3537_v43 = vld [vmem:[#allocation4 + $0x78] ss:$2 sm:$0xff] }
 0x438   :  { %v3415_v57 = vmul.f32 0.2, %v3407_v58  ;;  %v3416_v60 = vmul.f32 0.2, %v3408_v55  ;;  %v3417_v29 = vmul.f32 0.2, %v3409_v59 }
 0x439   :  { %v3418_v6 = vmul.f32 0.2, %v3410_v0  ;;  %v3419_v47 = vmul.f32 0.2, %v3411_v24  ;;  %v3420_v14 = vmul.f32 0.2, %v3412_v32 }
 0x43a   :  { %v3421_v54 = vmul.f32 0.2, %v3413_v22  ;;  %v3423_v53 = vmax.f32 %v3407_v58, %v3415_v57  ;;  %v3424_v56 = vmax.f32 %v3408_v55, %v3416_v60  ;;  %v3422_v9 = vmul.f32 0.2, %v3414_v34  ;;  %v3553_v57 = vld [vmem:[#allocation4 + $0x7a] ss:$2 sm:$0xff] }
 0x43b   :  { %v3425_v3 = vmax.f32 %v3409_v59, %v3417_v29  ;;  %v3426_v38 = vmax.f32 %v3410_v0, %v3418_v6  ;;  %v3427_v7 = vmax.f32 %v3411_v24, %v3419_v47  ;;  %v3428_v44 = vmax.f32 %v3412_v32, %v3420_v14  ;;  %v3452_v0 = vld [vmem:[#allocation4 + $0x91] ss:$2 sm:$0xff] }
 0x43c   :  { %3432 = vst.msk [vmem:[#allocation4 + $0x19] sm:$0xf] %vm3431_vm10, %v3423_v53  ;;  %v3429_v39 = vmax.f32 %v3413_v22, %v3421_v54  ;;  %v3430_v1 = vmax.f32 %v3414_v34, %v3422_v9  ;;  %v3561_v22 = vld [vmem:[#allocation4 + $0x7b] ss:$2 sm:$0xff] }
 0x43d   :  { %3433 = vst.msk [vmem:[#allocation4 + $0x31] sm:$0xf] %vm3431_vm10, %v3424_v56  ;;  %v3468_v47 = vld [vmem:[#allocation4 + $0x93] ss:$2 sm:$0xff]  ;;  %v3460_v56 = vld [vmem:[#allocation4 + $0x92] ss:$2 sm:$0xff] }
 0x43e   :  { %3434 = vst.msk [vmem:[#allocation4 + $0x49] sm:$0xf] %vm3431_vm10, %v3425_v3 }
 0x43f   :  { %3435 = vst.msk [vmem:[#allocation4 + $0x61] sm:$0xf] %vm3431_vm10, %v3426_v38 }
 0x440   :  { %3436 = vst.msk [vmem:[#allocation4 + $0xa9] sm:$0xf] %vm3431_vm10, %v3427_v7 }
 0x441   :  { %3437 = vst.msk [vmem:[#allocation4 + $0xc1] sm:$0xf] %vm3431_vm10, %v3428_v44 }
 0x442   :  { %3438 = vst.msk [vmem:[#allocation4 + $0xd9] sm:$0xf] %vm3431_vm10, %v3429_v39 }
 0x443   :  { %3439 = vst.msk [vmem:[#allocation4 + $0xf1] sm:$0xf] %vm3431_vm10, %v3430_v1  ;;  %v3471_v21 = vld [vmem:[#allocation4 + $0x18] ss:$2 sm:$0xff]  ;;  %v3479_v61 = vld [vmem:[#allocation4 + $0x19] ss:$2 sm:$0xff] }
 0x444   :  { %v3466_v51 = vld [vmem:[#allocation4 + $0x33] ss:$2 sm:$0xff]  ;;  %v3458_v37 = vld [vmem:[#allocation4 + $0x32] ss:$2 sm:$0xff] }
 0x445   :  { %v3450_v26 = vld [vmem:[#allocation4 + $0x31] ss:$2 sm:$0xff]  ;;  %v6183_v36 = vpack.i.bf16 %v3466_v51, %v3464_v11  ;;  %v6178_v12 = vpack.i.bf16 %v3458_v37, %v3456_v31  ;;  %v3519_v4 = vld [vmem:[#allocation4 + $0x32] ss:$2 sm:$0xff] }
 0x446   :  { %v6173_v19 = vpack.i.bf16 %v3450_v26, %v3448_v25  ;;  %v3521_v20 = vld [vmem:[#allocation4 + $0x62] ss:$2 sm:$0xff]  ;;  %v3511_v41 = vld [vmem:[#allocation4 + $0x31] ss:$2 sm:$0xff]  ;;  %v3513_v10 = vld [vmem:[#allocation4 + $0x61] ss:$2 sm:$0xff] }
 0x447   :  { %6184 = vrot.lane.b32.xlu2 %v6183_v36, %s6389_s11  ;;  %6179 = vrot.lane.b32.xlu1 %v6178_v12, %s6387_s27  ;;  %v3473_v50 = vld [vmem:[#allocation4 + $0x48] ss:$2 sm:$0xff]  ;;  %v6198_v28 = vpack.i.bf16 %v3521_v20, %v3519_v4  ;;  %v6188_v52 = vpack.i.bf16 %v3513_v10, %v3511_v41  ;;  %v3527_v16 = vld [vmem:[#allocation4 + $0x33] ss:$2 sm:$0xff]  ;;  %v3529_v17 = vld [vmem:[#allocation4 + $0x63] ss:$2 sm:$0xff] }
 0x448   :  { %6174 = vrot.lane.b32.xlu0 %v6173_v19, %s6385_s17  ;;  %v6193_v15 = vpack.i.bf16 %v3473_v50, %v3471_v21  ;;  %v3487_v63 = vld [vmem:[#allocation4 + $0x1a] ss:$2 sm:$0xff]  ;;  %v3489_v2 = vld [vmem:[#allocation4 + $0x4a] ss:$2 sm:$0xff]  ;;  %v3481_v45 = vld [vmem:[#allocation4 + $0x49] ss:$2 sm:$0xff]  ;;  %v6208_v46 = vpack.i.bf16 %v3529_v17, %v3527_v16 }
 0x449   :  { %v6213_v13 = vpack.i.bf16 %v3489_v2, %v3487_v63  ;;  %v6203_v30 = vpack.i.bf16 %v3481_v45, %v3479_v61  ;;  %v3543_v8 = vld [vmem:[#allocation4 + $0x49] ss:$2 sm:$0xff]  ;;  %v3535_v18 = vld [vmem:[#allocation4 + $0x48] ss:$2 sm:$0xff]  ;;  %v3485_v39 = vld [vmem:[#allocation4 + $0xd9] ss:$2 sm:$0xff] }
 0x44a   :  { %v3495_v48 = vld [vmem:[#allocation4 + $0x1b] ss:$2 sm:$0xff]  ;;  %v3497_v33 = vld [vmem:[#allocation4 + $0x4b] ss:$2 sm:$0xff]  ;;  %v6228_v58 = vpack.i.bf16 %v3545_v27, %v3543_v8  ;;  %v6218_v59 = vpack.i.bf16 %v3537_v43, %v3535_v18  ;;  %v3551_v34 = vld [vmem:[#allocation4 + $0x4a] ss:$2 sm:$0xff] }
 0x44b   :  { %v6223_v55 = vpack.i.bf16 %v3497_v33, %v3495_v48  ;;  %v3454_v24 = vld [vmem:[#allocation4 + $0xc1] ss:$2 sm:$0xff]  ;;  %v6233_v6 = vpack.i.bf16 %v3553_v57, %v3551_v34  ;;  %v3517_v54 = vld [vmem:[#allocation4 + $0xf1] ss:$2 sm:$0xff]  ;;  %v3462_v9 = vld [vmem:[#allocation4 + $0xc2] ss:$2 sm:$0xff] }
 0x44c   :  { %v3559_v32 = vld [vmem:[#allocation4 + $0x4b] ss:$2 sm:$0xff]  ;;  %v6243_v60 = vpack.i.bf16 %v3454_v24, %v3452_v0  ;;  %v6248_v7 = vpack.i.bf16 %v3462_v9, %v3460_v56  ;;  %v3523_v1 = vld [vmem:[#allocation4 + $0xc2] ss:$2 sm:$0xff]  ;;  %v3525_v25 = vld [vmem:[#allocation4 + $0xf2] ss:$2 sm:$0xff] }
 0x44d   :  { %v6238_v29 = vpack.i.bf16 %v3561_v22, %v3559_v32  ;;  %v3515_v14 = vld [vmem:[#allocation4 + $0xc1] ss:$2 sm:$0xff]  ;;  %v3475_v11 = vld [vmem:[#allocation4 + $0xa8] ss:$2 sm:$0xff]  ;;  %v3477_v31 = vld [vmem:[#allocation4 + $0xd8] ss:$2 sm:$0xff]  ;;  %v6268_v37 = vpack.i.bf16 %v3525_v25, %v3523_v1 }
 0x44e   :  { %v3470_v53 = vld [vmem:[#allocation4 + $0xc3] ss:$2 sm:$0xff]  ;;  %v6258_v3 = vpack.i.bf16 %v3517_v54, %v3515_v14  ;;  %v6263_v26 = vpack.i.bf16 %v3477_v31, %v3475_v11  ;;  %v3541_v36 = vld [vmem:[#allocation4 + $0x108] ss:$2 sm:$0xff]  ;;  %v3539_v12 = vld [vmem:[#allocation4 + $0xd8] ss:$2 sm:$0xff] }
 0x44f   :  { %6199 = vrot.lane.b32.xlu2 %v6198_v28, %s6387_s27  ;;  %6194 = vrot.lane.b32.xlu1 %v6193_v15, %s6390_s12  ;;  %v6253_v38 = vpack.i.bf16 %v3470_v53, %v3468_v47  ;;  %v3483_v44 = vld [vmem:[#allocation4 + $0xa9] ss:$2 sm:$0xff]  ;;  %v3491_v19 = vld [vmem:[#allocation4 + $0xaa] ss:$2 sm:$0xff]  ;;  %v3493_v21 = vld [vmem:[#allocation4 + $0xda] ss:$2 sm:$0xff]  ;;  %v6288_v50 = vpack.i.bf16 %v3541_v36, %v3539_v12 }
 0x450   :  { %6189 = vrot.lane.b32.xlu0 %v6188_v52, %s6385_s17  ;;  %v6273_v51 = vpack.i.bf16 %v3485_v39, %v3483_v44  ;;  %v3531_v4 = vld [vmem:[#allocation4 + $0xc3] ss:$2 sm:$0xff]  ;;  %v3533_v20 = vld [vmem:[#allocation4 + $0xf3] ss:$2 sm:$0xff]  ;;  %v6283_v41 = vpack.i.bf16 %v3493_v21, %v3491_v19  ;;  %v3557_v28 = vld [vmem:[#allocation4 + $0x10a] ss:$2 sm:$0xff] }
 0x451   :  { %v6278_v10 = vpack.i.bf16 %v3533_v20, %v3531_v4  ;;  %v3555_v15 = vld [vmem:[#allocation4 + $0xda] ss:$2 sm:$0xff]  ;;  %v3547_v52 = vld [vmem:[#allocation4 + $0xd9] ss:$2 sm:$0xff]  ;;  %v3549_v63 = vld [vmem:[#allocation4 + $0x109] ss:$2 sm:$0xff] }
 0x452   :  { %v3499_v2 = vld [vmem:[#allocation4 + $0xab] ss:$2 sm:$0xff]  ;;  %v3501_v16 = vld [vmem:[#allocation4 + $0xdb] ss:$2 sm:$0xff]  ;;  %v6303_v17 = vpack.i.bf16 %v3557_v28, %v3555_v15  ;;  %v6298_v61 = vpack.i.bf16 %v3549_v63, %v3547_v52  ;;  %v3442_v39 = vld [vmem:[#allocation4 + $0x30] ss:$2 sm:$0xff] }
 0x453   :  { %v6293_v45 = vpack.i.bf16 %v3501_v16, %v3499_v2  ;;  %v5208_v27 = vld [vmem:[%s8334_s1 + $0xb8] sm:$0xff]  ;;  %v5207_v8 = vld [vmem:[%s8334_s1 + $0xb0] sm:$0xff]  ;;  %v5206_v33 = vld [vmem:[%s8334_s1 + $0xa8] sm:$0xff] }
 0x454   :  { %3980 = vmatpush.bf16.msra.mxu2 %v5208_v27  ;;  %v5216_v48 = vld [vmem:[%s8334_s1 + $0xf8] sm:$0xff]  ;;  %v5205_v18 = vld [vmem:[%s8334_s1 + $0xa0] sm:$0xff]  ;;  %v5215_v43 = vld [vmem:[%s8334_s1 + $0xf0] sm:$0xff] }
 0x455   :  { %3999 = vmatpush.bf16.msrb.mxu3 %v5216_v48  ;;  %v5213_v0 = vld [vmem:[%s8334_s1 + $0xe0] sm:$0xff]  ;;  %v5212_v32 = vld [vmem:[%s8334_s1 + $0xd8] sm:$0xff]  ;;  %v5202_v22 = vld [vmem:[%s8334_s1 + $0x88] sm:$0xff] }
 0x456   :  { %v5201_v34 = vld [vmem:[%s8334_s1 + $0x80] sm:$0xff]  ;;  %v5211_v57 = vld [vmem:[%s8334_s1 + $0xd0] sm:$0xff] }
 0x457   :  { %6214 = vrot.lane.b32.xlu2 %v6213_v13, %s6394_s19  ;;  %6209 = vrot.lane.b32.xlu1 %v6208_v46, %s6389_s11  ;;  %v3563_v13 = vld [vmem:[#allocation4 + $0xdb] ss:$2 sm:$0xff]  ;;  %v3565_v46 = vld [vmem:[#allocation4 + $0x10b] ss:$2 sm:$0xff] }
 0x458   :  { %6204 = vrot.lane.b32.xlu0 %v6203_v30, %s6395_s20  ;;  %v6308_v30 = vpack.i.bf16 %v3565_v46, %v3563_v13  ;;  %3981 = vmatpush.bf16.msra.mxu2 %v5207_v8  ;;  %v5209_v14 = vld [vmem:[%s8334_s1 + $0xc0] sm:$0xff]  ;;  %v3503_v13 = vld [vmem:[#allocation4 + $0x30] ss:$2 sm:$0xff] }
 0x459   :  { %4000 = vmatpush.bf16.msrb.mxu3 %v5215_v43  ;;  %v3505_v46 = vld [vmem:[#allocation4 + $0x60] ss:$2 sm:$0xff] }
 0x45c   :  { %3982 = vmatpush.bf16.msra.mxu2 %v5206_v33 }
 0x45f   :  { %6229 = vrot.lane.b32.xlu2 %v6228_v58, %s6395_s20  ;;  %6224 = vrot.lane.b32.xlu1 %v6223_v55, %s6396_s21  ;;  %v5214_v58 = vld [vmem:[%s8334_s1 + $0xe8] sm:$0xff]  ;;  %v5204_v55 = vld [vmem:[%s8334_s1 + $0x98] sm:$0xff] }
 0x460   :  { %6219 = vrot.lane.b32.xlu0 %v6218_v59, %s6390_s12  ;;  %3983 = vmatpush.bf16.msra.mxu2 %v5205_v18  ;;  %v5203_v59 = vld [vmem:[%s8334_s1 + $0x90] sm:$0xff] }
 0x461   :  { %4001 = vmatpush.bf16.msrb.mxu3 %v5214_v58 }
 0x464   :  { %3984 = vmatpush.bf16.msra.mxu2 %v5204_v55 }
 0x465   :  { %4002 = vmatpush.bf16.msrb.mxu3 %v5213_v0 }
 0x467   :  { %6244 = vrot.lane.b32.xlu2 %v6243_v60, %s6385_s17  ;;  %6239 = vrot.lane.b32.xlu1 %v6238_v29, %s6396_s21  ;;  %v5210_v60 = vld [vmem:[%s8334_s1 + $0xc8] sm:$0xff] }
 0x468   :  { %6234 = vrot.lane.b32.xlu0 %v6233_v6, %s6394_s19  ;;  %3985 = vmatpush.bf16.msra.mxu2 %v5203_v59 }
 0x469   :  { %4003 = vmatpush.bf16.msrb.mxu3 %v5212_v32 }
 0x46c   :  { %3986 = vmatpush.bf16.msra.mxu2 %v5202_v22 }
 0x46d   :  { %4004 = vmatpush.bf16.msrb.mxu3 %v5211_v57 }
 0x46f   :  { %6259 = vrot.lane.b32.xlu2 %v6258_v3, %s6385_s17  ;;  %6254 = vrot.lane.b32.xlu1 %v6253_v38, %s6389_s11  ;;  %v3440_v38 = vld [vmem:[#allocation4] ss:$2 sm:$0xff] }
 0x470   :  { %6249 = vrot.lane.b32.xlu0 %v6248_v7, %s6387_s27  ;;  %3987 = vmatpush.bf16.msra.mxu2 %v5201_v34 }
 0x471   :  { %4005 = vmatpush.bf16.msrb.mxu3 %v5210_v60 }
 0x475   :  { %4006 = vmatpush.bf16.msrb.mxu3 %v5209_v14 }
 0x477   :  { %6274 = vrot.lane.b32.xlu2 %v6273_v51, %s6395_s20  ;;  %6269 = vrot.lane.b32.xlu1 %v6268_v37, %s6387_s27 }
 0x478   :  { %6264 = vrot.lane.b32.xlu0 %v6263_v26, %s6390_s12 }
 0x47f   :  { %6289 = vrot.lane.b32.xlu2 %v6288_v50, %s6390_s12  ;;  %6284 = vrot.lane.b32.xlu1 %v6283_v41, %s6394_s19 }
 0x480   :  { %6279 = vrot.lane.b32.xlu0 %v6278_v10, %s6389_s11 }
 0x487   :  { %6304 = vrot.lane.b32.xlu2 %v6303_v17, %s6394_s19  ;;  %6299 = vrot.lane.b32.xlu1 %v6298_v61, %s6395_s20 }
 0x488   :  { %6294 = vrot.lane.b32.xlu0 %v6293_v45, %s6396_s21 }
 0x490   :  { %6309 = vrot.lane.b32.xlu0 %v6308_v30, %s6396_s21 }
 0x4a1   :  { %v6185_v24 = vpop.permute.xlu2 %6184 }
 0x4a2   :  { %v6187_v12 = vunpack.i.h.bf16 %v6185_v24  ;;  %v6186_v19 = vunpack.i.l.bf16 %v6185_v24 }
 0x4a9   :  { %v6200_v29 = vpop.permute.xlu2 %6199 }
 0x4aa   :  { %v6202_v45 = vunpack.i.h.bf16 %v6200_v29  ;;  %v6201_v24 = vunpack.i.l.bf16 %v6200_v29 }
 0x4b1   :  { %v6215_v56 = vpop.permute.xlu2 %6214 }
 0x4b2   :  { %v6217_v16 = vunpack.i.h.bf16 %v6215_v56  ;;  %v6216_v17 = vunpack.i.l.bf16 %v6215_v56 }
 0x4b9   :  { %v6180_v6 = vpop.permute.xlu1 %6179  ;;  %v6230_v20 = vpop.permute.xlu2 %6229 }
 0x4ba   :  { %v6175_v47 = vpop.permute.xlu0 %6174  ;;  %v6182_v7 = vunpack.i.h.bf16 %v6180_v6  ;;  %v6181_v44 = vunpack.i.l.bf16 %v6180_v6  ;;  %v6231_v29 = vunpack.i.l.bf16 %v6230_v20 }
 0x4bb   :  { %v6177_v9 = vunpack.i.h.bf16 %v6175_v47  ;;  %v6176_v3 = vunpack.i.l.bf16 %v6175_v47 }
 0x4bd   :  { %v3790_v1 = vsel %vm157_vm3, %v3440_v38, %v6176_v3  ;;  %v3791_v25 = vsel %vm157_vm3, %v3442_v39, %v6177_v9  ;;  %v6232_v9 = vunpack.i.h.bf16 %v6230_v20 }
 0x4be   :  { %v3794_v51 = vsel %vm199_vm4, %v3790_v1, %v6181_v44  ;;  %v3795_v37 = vsel %vm199_vm4, %v3791_v25, %v6182_v7 }
 0x4bf   :  { %v3798_v50 = vsel %vm1900_vm7, %v3794_v51, %v6186_v19  ;;  %v3799_v41 = vsel %vm1900_vm7, %v3795_v37, %v6187_v12 }
 0x4c1   :  { %v6195_v54 = vpop.permute.xlu1 %6194  ;;  %v6245_v57 = vpop.permute.xlu2 %6244 }
 0x4c2   :  { %v6190_v53 = vpop.permute.xlu0 %6189  ;;  %v6197_v26 = vunpack.i.h.bf16 %v6195_v54  ;;  %v6196_v36 = vunpack.i.l.bf16 %v6195_v54 }
 0x4c3   :  { %v6192_v10 = vunpack.i.h.bf16 %v6190_v53  ;;  %v6191_v28 = vunpack.i.l.bf16 %v6190_v53 }
 0x4c4   :  { %v3803_v15 = vsel %vm1934_vm9, %v3799_v41, %v6197_v26  ;;  %v3802_v52 = vsel %vm1934_vm9, %v3798_v50, %v6196_v36  ;;  %v6247_v50 = vunpack.i.h.bf16 %v6245_v57  ;;  %v6246_v41 = vunpack.i.l.bf16 %v6245_v57 }
 0x4c5   :  { %v3819_v48 = vsel %vm157_vm3, %v3505_v46, %v6192_v10  ;;  %v3818_v33 = vsel %vm157_vm3, %v3503_v13, %v6191_v28  ;;  %v3444_v10 = vld [vmem:[#allocation4 + $0x90] ss:$2 sm:$0xff] }
 0x4c6   :  { %v3822_v60 = vsel %vm199_vm4, %v3818_v33, %v6201_v24  ;;  %v3823_v6 = vsel %vm199_vm4, %v3819_v48, %v6202_v45  ;;  %v3507_v24 = vld [vmem:[#allocation4 + $0xc0] ss:$2 sm:$0xff] }
 0x4c9   :  { %v6210_v11 = vpop.permute.xlu1 %6209  ;;  %v6260_v36 = vpop.permute.xlu2 %6259 }
 0x4ca   :  { %v6205_v31 = vpop.permute.xlu0 %6204  ;;  %v6212_v58 = vunpack.i.h.bf16 %v6210_v11  ;;  %v6211_v55 = vunpack.i.l.bf16 %v6210_v11  ;;  %v6261_v48 = vunpack.i.l.bf16 %v6260_v36 }
 0x4cb   :  { %v6207_v21 = vunpack.i.h.bf16 %v6205_v31  ;;  %v6206_v4 = vunpack.i.l.bf16 %v6205_v31 }
 0x4cc   :  { %v3827_v47 = vsel %vm1900_vm7, %v3823_v6, %v6212_v58  ;;  %v3826_v14 = vsel %vm1900_vm7, %v3822_v60, %v6211_v55 }
 0x4cd   :  { %v3806_v63 = vsel %vm1968_vm11, %v3802_v52, %v6206_v4  ;;  %v3807_v2 = vsel %vm1968_vm11, %v3803_v15, %v6207_v21  ;;  %v3446_v52 = vld [vmem:[#allocation4 + $0xc0] ss:$2 sm:$0xff] }
 0x4ce   :  { %v3810_v18 = vsel %vm2002_vm13, %v3806_v63, %v6216_v17  ;;  %v3811_v43 = vsel %vm2002_vm13, %v3807_v2, %v6217_v16  ;;  %v3793_v2 = vsel %vm157_vm3, %v3446_v52, %v6247_v50  ;;  %v3792_v16 = vsel %vm157_vm3, %v3444_v10, %v6246_v41 }
 0x4d1   :  { %v6225_v61 = vpop.permute.xlu1 %6224  ;;  %v6275_v20 = vpop.permute.xlu2 %6274 }
 0x4d2   :  { %v6220_v30 = vpop.permute.xlu0 %6219  ;;  %v6227_v27 = vunpack.i.h.bf16 %v6225_v61  ;;  %v6226_v8 = vunpack.i.l.bf16 %v6225_v61 }
 0x4d3   :  { %v6222_v32 = vunpack.i.h.bf16 %v6220_v30  ;;  %v6221_v22 = vunpack.i.l.bf16 %v6220_v30 }
 0x4d4   :  { %v3814_v59 = vsel %vm2036_vm15, %v3810_v18, %v6226_v8  ;;  %v3815_v0 = vsel %vm2036_vm15, %v3811_v43, %v6227_v27  ;;  %v6262_v8 = vunpack.i.h.bf16 %v6260_v36 }
 0x4d5   :  { %v3846_v34 = vpack.c.bf16 %v3815_v0, %v3814_v59  ;;  %v3830_v54 = vsel %vm1934_vm9, %v3826_v14, %v6221_v22  ;;  %v3831_v53 = vsel %vm1934_vm9, %v3827_v47, %v6222_v32  ;;  %v3509_v32 = vld [vmem:[#allocation4 + $0xf0] ss:$2 sm:$0xff]  ;;  %v3820_v47 = vsel %vm157_vm3, %v3507_v24, %v6261_v48  ;;  %v6376_v48 = vld [vmem:[%s8335_s2 + $0x6] ss:$0 sm:$0xff] }
 0x4d6   :  { %v3834_v1 = vsel %vm1968_vm11, %v3830_v54, %v6231_v29  ;;  %v3835_v25 = vsel %vm1968_vm11, %v3831_v53, %v6232_v9  ;;  %v3821_v6 = vsel %vm157_vm3, %v3509_v32, %v6262_v8  ;;  %v6277_v14 = vunpack.i.h.bf16 %v6275_v20 }
 0x4d7   :  { %3988 = vmatmul.bf16.vlgmr.msra.gmra.mxu2 %v3846_v34  ;;  %v6276_v54 = vunpack.i.l.bf16 %v6275_v20  ;;  %vm4019_vm3 = vcmp.lt.s32.totalorder %v7906_v62, 2 }
 0x4d9   :  { %v6240_v56 = vpop.permute.xlu1 %6239  ;;  %v6290_v33 = vpop.permute.xlu2 %6289 }
 0x4da   :  { %v6235_v3 = vpop.permute.xlu0 %6234  ;;  %v6242_v38 = vunpack.i.h.bf16 %v6240_v56  ;;  %v6241_v7 = vunpack.i.l.bf16 %v6240_v56  ;;  %v6292_v36 = vunpack.i.h.bf16 %v6290_v33 }
 0x4db   :  { %v6237_v44 = vunpack.i.h.bf16 %v6235_v3  ;;  %v6236_v39 = vunpack.i.l.bf16 %v6235_v3 }
 0x4dd   :  { %v3838_v11 = vsel %vm2002_vm13, %v3834_v1, %v6236_v39  ;;  %v3839_v31 = vsel %vm2002_vm13, %v3835_v25, %v6237_v44 }
 0x4de   :  { %v3842_v51 = vsel %vm2036_vm15, %v3838_v11, %v6241_v7  ;;  %v3843_v37 = vsel %vm2036_vm15, %v3839_v31, %v6242_v38 }
 0x4df   :  { %v3847_v26 = vpack.c.bf16 %v3843_v37, %v3842_v51 }
 0x4e1   :  { %4007 = vmatmul.bf16.vlgmr.msrb.gmra.mxu3 %v3847_v26  ;;  %v6255_v12 = vpop.permute.xlu1 %6254 }
 0x4e2   :  { %v6250_v19 = vpop.permute.xlu0 %6249  ;;  %v6257_v17 = vunpack.i.h.bf16 %v6255_v12  ;;  %v6256_v61 = vunpack.i.l.bf16 %v6255_v12  ;;  %v6291_v12 = vunpack.i.l.bf16 %v6290_v33 }
 0x4e3   :  { %v6252_v28 = vunpack.i.h.bf16 %v6250_v19  ;;  %v6251_v15 = vunpack.i.l.bf16 %v6250_v19 }
 0x4e5   :  { %v3797_v13 = vsel %vm199_vm4, %v3793_v2, %v6252_v28  ;;  %v3796_v46 = vsel %vm199_vm4, %v3792_v16, %v6251_v15 }
 0x4e6   :  { %v3801_v18 = vsel %vm1900_vm7, %v3797_v13, %v6257_v17  ;;  %v3800_v43 = vsel %vm1900_vm7, %v3796_v46, %v6256_v61 }
 0x4e9   :  { %v6270_v21 = vpop.permute.xlu1 %6269 }
 0x4ea   :  { %v6265_v4 = vpop.permute.xlu0 %6264  ;;  %v6272_v58 = vunpack.i.h.bf16 %v6270_v21  ;;  %v6271_v55 = vunpack.i.l.bf16 %v6270_v21  ;;  %v6305_v21 = vpop.permute.xlu2 %6304 }
 0x4eb   :  { %v6267_v30 = vunpack.i.h.bf16 %v6265_v4  ;;  %v6266_v27 = vunpack.i.l.bf16 %v6265_v4  ;;  %v6307_v10 = vunpack.i.h.bf16 %v6305_v21  ;;  %v6306_v28 = vunpack.i.l.bf16 %v6305_v21 }
 0x4ec   :  { %v3825_v53 = vsel %vm199_vm4, %v3821_v6, %v6272_v58  ;;  %v3824_v56 = vsel %vm199_vm4, %v3820_v47, %v6271_v55 }
 0x4ed   :  { %v3804_v59 = vsel %vm1934_vm9, %v3800_v43, %v6266_v27  ;;  %v3805_v0 = vsel %vm1934_vm9, %v3801_v18, %v6267_v30 }
 0x4ee   :  { %v3808_v7 = vsel %vm1968_vm11, %v3804_v59, %v6276_v54  ;;  %v3809_v44 = vsel %vm1968_vm11, %v3805_v0, %v6277_v14  ;;  %v5052_v59 = vsel %vm4019_vm3, 1.0, %v8363_v23 }
 0x4f1   :  { %v6285_v63 = vpop.permute.xlu1 %6284 }
 0x4f2   :  { %v6280_v45 = vpop.permute.xlu0 %6279  ;;  %v6287_v57 = vunpack.i.h.bf16 %v6285_v63  ;;  %v6286_v60 = vunpack.i.l.bf16 %v6285_v63 }
 0x4f3   :  { %v6282_v22 = vunpack.i.h.bf16 %v6280_v45  ;;  %v6281_v34 = vunpack.i.l.bf16 %v6280_v45 }
 0x4f4   :  { %v3812_v25 = vsel %vm2002_vm13, %v3808_v7, %v6286_v60  ;;  %v3813_v11 = vsel %vm2002_vm13, %v3809_v44, %v6287_v57 }
 0x4f5   :  { %v3828_v39 = vsel %vm1900_vm7, %v3824_v56, %v6281_v34  ;;  %v3829_v1 = vsel %vm1900_vm7, %v3825_v53, %v6282_v22  ;;  %vm4018_vm7 = vcmp.lt.s32.totalorder %v7910_v35, 2 }
 0x4f6   :  { %v3832_v4 = vsel %vm1934_vm9, %v3828_v39, %v6291_v12  ;;  %v3833_v20 = vsel %vm1934_vm9, %v3829_v1, %v6292_v36  ;;  %v5051_v32 = vsel %vm4018_vm7, 1.0, %v8363_v23 }
 0x4f9   :  { %v6300_v29 = vpop.permute.xlu1 %6299 }
 0x4fa   :  { %v6295_v9 = vpop.permute.xlu0 %6294  ;;  %v6302_v31 = vunpack.i.h.bf16 %v6300_v29  ;;  %v6301_v51 = vunpack.i.l.bf16 %v6300_v29 }
 0x4fb   :  { %v6297_v3 = vunpack.i.h.bf16 %v6295_v9  ;;  %v6296_v38 = vunpack.i.l.bf16 %v6295_v9 }
 0x4fc   :  { %v3836_v50 = vsel %vm1968_vm11, %v3832_v4, %v6301_v51  ;;  %v3837_v41 = vsel %vm1968_vm11, %v3833_v20, %v6302_v31  ;;  %vm4020_vm11 = vcmp.lt.s32.totalorder %v3221_v42, 2 }
 0x4fd   :  { %v3816_v37 = vsel %vm2036_vm15, %v3812_v25, %v6296_v38  ;;  %v3817_v26 = vsel %vm2036_vm15, %v3813_v11, %v6297_v3  ;;  %v3840_v2 = vsel %vm2002_vm13, %v3836_v50, %v6306_v28  ;;  %v3841_v16 = vsel %vm2002_vm13, %v3837_v41, %v6307_v10  ;;  %v4105_v28 = vld [vmem:[#allocation5 + $0x1] sm:$0xff] }
 0x4fe   :  { %v3848_v19 = vpack.c.bf16 %v3817_v26, %v3816_v37  ;;  %v5053_v34 = vsel %vm4020_vm11, 1.0, %v8363_v23 }
 0x500   :  { %3993 = vmatmul.bf16.gmra.mxu2 %v3848_v19 }
 0x502   :  { %v6310_v15 = vpop.permute.xlu0 %6309 }
 0x503   :  { %v6312_v52 = vunpack.i.h.bf16 %v6310_v15  ;;  %v6311_v63 = vunpack.i.l.bf16 %v6310_v15 }
 0x505   :  { %v3844_v17 = vsel %vm2036_vm15, %v3840_v2, %v6311_v63  ;;  %v3845_v61 = vsel %vm2036_vm15, %v3841_v16, %v6312_v52  ;;  %vm4021_vm15 = vcmp.lt.s32.totalorder %v3228_v40, 2  ;;  %v4106_v52 = vld [vmem:[#allocation5 + $0x41] sm:$0xff] }
 0x506   :  { %v3849_v45 = vpack.c.bf16 %v3845_v61, %v3844_v17  ;;  %v5054_v5 = vsel %vm4021_vm15, 1.0, %v8363_v23  ;;  %v6313_v63 = vpack.i.bf16 %v4106_v52, %v4105_v28  ;;  %v4109_v2 = vld [vmem:[#allocation5 + $0x3] sm:$0xff]  ;;  %v5220_v52 = vld [vmem:[%s8334_s1 + $0x118] sm:$0xff] }
 0x507   :  { %v4110_v16 = vld [vmem:[#allocation5 + $0x43] sm:$0xff] }
 0x508   :  { %4012 = vmatmul.bf16.gmra.mxu3 %v3849_v45  ;;  %v6323_v61 = vpack.i.bf16 %v4110_v16, %v4109_v2  ;;  %6314 = vrot.lane.b32.xlu1 %v6313_v63, %s6387_s27  ;;  %v5221_v28 = vld [vmem:[%s8334_s1 + $0x120] sm:$0xff]  ;;  %v5219_v63 = vld [vmem:[%s8334_s1 + $0x110] sm:$0xff] }
 0x50a   :  { %6324 = vrot.lane.b32.xlu0 %v6323_v61, %s6394_s19 }
 0x55a   :  { %v3989_v13 = vpop.f32.mrf.mxu2 }
 0x55b   :  { %v3990_v43 = vadd.f32 %v6376_v48, %v3989_v13 }
 0x562   :  { %v3991_v30 = vpop.f32.mrf.mxu2 }
 0x563   :  { %v3992_v33 = vadd.f32 %v6376_v48, %v3991_v30  ;;  %v4117_v30 = vld [vmem:[#allocation5 + $0x13] sm:$0xff] }
 0x564   :  { %v4008_v46 = vpop.f32.mrf.mxu3 }
 0x565   :  { %v4009_v0 = vadd.f32 %v4008_v46, %v3990_v43  ;;  %v4130_v43 = vld [vmem:[#allocation5 + $0x31] sm:$0xff] }
 0x567   :  { %v4032_v60 = vmul.f32 %v5051_v32, %v4009_v0 }
 0x56c   :  { %v4010_v27 = vpop.f32.mrf.mxu3 }
 0x56d   :  { %v4011_v58 = vadd.f32 %v4010_v27, %v3992_v33  ;;  %v4118_v27 = vld [vmem:[#allocation5 + $0x53] sm:$0xff]  ;;  %v4107_v33 = vld [vmem:[#allocation5 + $0x2] sm:$0xff] }
 0x56f   :  { %v4033_v57 = vmul.f32 %v5052_v59, %v4011_v58 }
 0x571   :  { %v4036_v42 = vadd.f32 %v4033_v57, %v4032_v60 }
 0x583   :  { %v3994_v8 = vpop.f32.mrf.mxu2 }
 0x584   :  { %v3995_v55 = vadd.f32 %v6376_v48, %v3994_v8 }
 0x58b   :  { %v4013_v18 = vpop.f32.mrf.mxu3  ;;  %v3996_v22 = vpop.f32.mrf.mxu2 }
 0x58c   :  { %v4014_v24 = vadd.f32 %v4013_v18, %v3995_v55  ;;  %v3997_v6 = vadd.f32 %v6376_v48, %v3996_v22  ;;  %v6328_v48 = vpack.i.bf16 %v4118_v27, %v4117_v30  ;;  %v4108_v18 = vld [vmem:[#allocation5 + $0x42] sm:$0xff]  ;;  %v4131_v55 = vld [vmem:[#allocation5 + $0x71] sm:$0xff] }
 0x58d   :  { %v4132_v22 = vld [vmem:[#allocation5 + $0x32] sm:$0xff]  ;;  %v5217_v27 = vld [vmem:[%s8334_s1 + $0x100] sm:$0xff] }
 0x58e   :  { %v4034_v47 = vmul.f32 %v5053_v34, %v4014_v24  ;;  %6329 = vrot.lane.b32.xlu0 %v6328_v48, %s6394_s19 }
 0x590   :  { %v4037_v53 = vadd.f32 %v4036_v42, %v4034_v47  ;;  %v4030_v42 = vld [vmem:[%s8335_s2 + $0x7] sm:$0x1] }
 0x593   :  { %v4015_v14 = vpop.f32.mrf.mxu3 }
 0x594   :  { %v4016_v54 = vadd.f32 %v4015_v14, %v3997_v6 }
 0x596   :  { %v4035_v56 = vmul.f32 %v5054_v5, %v4016_v54 }
 0x598   :  { %v4038_v9 = vadd.f32 %v4037_v53, %v4035_v56 }
 0x59a   :  { %v4039_v29 = vrot.slane %v4038_v9, 4 }
 0x59c   :  { %v4040_v3 = vadd.f32 %v4039_v29, %v4038_v9  ;;  %v4126_v9 = vld [vmem:[#allocation5 + $0x23] sm:$0xff] }
 0x59d   :  { %v4127_v29 = vld [vmem:[#allocation5 + $0x63] sm:$0xff] }
 0x59e   :  { %v4041_v38 = vrot.slane %v4040_v3, 2 }
 0x5a0   :  { %v4042_v7 = vadd.f32 %v4041_v38, %v4040_v3  ;;  %v5224_v3 = vld [vmem:[%s8334_s1 + $0x138] sm:$0xff]  ;;  %v6368_v38 = vpack.i.bf16 %v4127_v29, %v4126_v9 }
 0x5a1   :  { %4518 = vmatpush.bf16.msrb.mxu2 %v5224_v3  ;;  %v6325_v3 = vpop.permute.xlu0 %6324 }
 0x5a2   :  { %v4043_v44 = vrot.slane %v4042_v7, 1 }
 0x5a4   :  { %v4044_v39 = vadd.f32 %v4043_v44, %v4042_v7  ;;  %v6377_v44 = vld [vmem:[%s8335_s2 + $0x8] ss:$0 sm:$0xff] }
 0x5a6   :  { %v4045_v1 = vmul.f32 0.125, %v4044_v39  ;;  %v5223_v39 = vld [vmem:[%s8334_s1 + $0x130] sm:$0xff] }
 0x5a7   :  { %4519 = vmatpush.bf16.msrb.mxu2 %v5223_v39 }
 0x5a8   :  { %v8158_v49 = vsub.f32 %v4009_v0, %v4045_v1  ;;  %v8160_v40 = vsub.f32 %v4011_v58, %v4045_v1  ;;  %v8162_v25 = vsub.f32 %v4014_v24, %v4045_v1  ;;  %v8164_v11 = vsub.f32 %v4016_v54, %v4045_v1  ;;  %v4135_v0 = vld [vmem:[#allocation5 + $0x73] sm:$0xff] }
 0x5a9   :  { %v6318_v58 = vpack.i.bf16 %v4108_v18, %v4107_v33  ;;  %v6333_v24 = vpack.i.bf16 %v4131_v55, %v4130_v43  ;;  %v5240_v1 = vld [vmem:[%s8334_s1 + $0x1b8] sm:$0xff]  ;;  %v5238_v55 = vld [vmem:[%s8334_s1 + $0x1a8] sm:$0xff] }
 0x5aa   :  { %v4050_v31 = vmul.f32 %v5051_v32, %v8158_v49  ;;  %v4051_v51 = vmul.f32 %v5052_v59, %v8160_v40  ;;  %v4052_v37 = vmul.f32 %v5053_v34, %v8162_v25  ;;  %v4053_v26 = vmul.f32 %v5054_v5, %v8164_v11  ;;  %v4134_v59 = vld [vmem:[#allocation5 + $0x33] sm:$0xff]  ;;  %4546 = vmatpush.bf16.msrb.mxu1 %v5240_v1 }
 0x5ab   :  { %6319 = vrot.lane.b32.xlu2 %v6318_v58, %s6390_s12  ;;  %v6343_v32 = vpack.i.bf16 %v4135_v0, %v4134_v59  ;;  %6334 = vrot.lane.b32.xlu1 %v6333_v24, %s6387_s27  ;;  %v4133_v34 = vld [vmem:[#allocation5 + $0x72] sm:$0xff]  ;;  %v5246_v0 = vld [vmem:[%s8334_s1 + $0x1e8] sm:$0xff]  ;;  %v5245_v24 = vld [vmem:[%s8334_s1 + $0x1e0] sm:$0xff] }
 0x5ac   :  { %v4054_v36 = vmul.f32 %v4050_v31, %v4050_v31  ;;  %v4055_v12 = vmul.f32 %v4051_v51, %v4051_v51  ;;  %v4056_v19 = vmul.f32 %v4052_v37, %v4052_v37  ;;  %v4057_v4 = vmul.f32 %v4053_v26, %v4053_v26  ;;  %v5248_v58 = vld [vmem:[%s8334_s1 + $0x1f8] sm:$0xff]  ;;  %v5247_v59 = vld [vmem:[%s8334_s1 + $0x1f0] sm:$0xff] }
 0x5ad   :  { %6344 = vrot.lane.b32.xlu0 %v6343_v32, %s6394_s19  ;;  %v6338_v6 = vpack.i.bf16 %v4133_v34, %v4132_v22  ;;  %v5232_v32 = vld [vmem:[%s8334_s1 + $0x178] sm:$0xff]  ;;  %v5237_v22 = vld [vmem:[%s8334_s1 + $0x1a0] sm:$0xff] }
 0x5ae   :  { %v4058_v21 = vadd.f32 %v4055_v12, %v4054_v36  ;;  %v5239_v36 = vld [vmem:[%s8334_s1 + $0x1b0] sm:$0xff]  ;;  %4532 = vmatpush.bf16.msra.mxu3 %v5232_v32  ;;  %v5244_v34 = vld [vmem:[%s8334_s1 + $0x1d8] sm:$0xff] }
 0x5af   :  { %4547 = vmatpush.bf16.msrb.mxu1 %v5239_v36 }
 0x5b0   :  { %v4059_v20 = vadd.f32 %v4058_v21, %v4056_v19 }
 0x5b2   :  { %v4060_v50 = vadd.f32 %v4059_v20, %v4057_v4 }
 0x5b3   :  { %6339 = vrot.lane.b32.xlu2 %v6338_v6, %s6390_s12  ;;  %4548 = vmatpush.bf16.msrb.mxu1 %v5238_v55  ;;  %v5243_v6 = vld [vmem:[%s8334_s1 + $0x1d0] sm:$0xff] }
 0x5b4   :  { %v4061_v41 = vrot.slane %v4060_v50, 4 }
 0x5b5   :  { %6369 = vrot.lane.b32.xlu0 %v6368_v38, %s6394_s19  ;;  %v6327_v38 = vunpack.i.h.bf16 %v6325_v3 }
 0x5b6   :  { %v4062_v10 = vadd.f32 %v4061_v41, %v4060_v50 }
 0x5b7   :  { %4549 = vmatpush.bf16.msrb.mxu1 %v5237_v22 }
 0x5b8   :  { %v4063_v15 = vrot.slane %v4062_v10, 2 }
 0x5ba   :  { %v4064_v17 = vadd.f32 %v4063_v15, %v4062_v10 }
 0x5bc   :  { %v4065_v45 = vrot.slane %v4064_v17, 1 }
 0x5be   :  { %v4066_v13 = vadd.f32 %v4065_v45, %v4064_v17 }
 0x5c0   :  { %v4067_v46 = vmul.f32 0.125, %v4066_v13 }
 0x5c2   :  { %v4068_v8 = vadd.f32 1e-05, %v4067_v46  ;;  %v5218_v46 = vld [vmem:[%s8334_s1 + $0x108] sm:$0xff] }
 0x5c4   :  { %6381 = vrsqrt.f32 %v4068_v8  ;;  %vm4075_vm0 = vweird.f32 %v4068_v8 }
 0x5ca   :  { %v6382_v57 = vpop.eup %6381 }
 0x5cb   :  { %v4070_v60 = vmul.f32 %v6382_v57, %v4068_v8  ;;  %vm4076_vm1 = vweird.f32 %v6382_v57 }
 0x5cc   :  { %vm4077_vm2 = vmor %vm4075_vm0, %vm4076_vm1 }
 0x5cd   :  { %v4071_v47 = vmul.f32 %v6382_v57, %v4070_v60  ;;  %v5236_v60 = vld [vmem:[%s8334_s1 + $0x198] sm:$0xff] }
 0x5ce   :  { %4550 = vmatpush.bf16.msrb.mxu1 %v5236_v60 }
 0x5cf   :  { %v4072_v14 = vmul.f32 0.5, %v4071_v47  ;;  %v5230_v47 = vld [vmem:[%s8334_s1 + $0x168] sm:$0xff] }
 0x5d1   :  { %v4073_v5 = vsub.f32 1.5, %v4072_v14 }
 0x5d3   :  { %v4074_v54 = vmul.f32 %v6382_v57, %v4073_v5 }
 0x5d5   :  { %v4078_v53 = vsel %vm4077_vm2, %v6382_v57, %v4074_v54  ;;  %v5231_v57 = vld [vmem:[%s8334_s1 + $0x170] sm:$0xff]  ;;  %v4103_v54 = vld [vmem:[#allocation5] sm:$0xff] }
 0x5d6   :  { %v4079_v56 = vmul.f32 %v4078_v53, %v4030_v42  ;;  %4533 = vmatpush.bf16.msra.mxu3 %v5231_v57  ;;  %v4104_v53 = vld [vmem:[#allocation5 + $0x40] sm:$0xff] }
 0x5d8   :  { %v4080_v7 = vperm.slane %v4079_v56, 0  ;;  %v6315_v56 = vpop.permute.xlu1 %6314 }
 0x5d9   :  { %v6317_v9 = vunpack.i.h.bf16 %v6315_v56  ;;  %v6316_v29 = vunpack.i.l.bf16 %v6315_v56 }
 0x5da   :  { %v4081_v31 = vmul.f32 %v4080_v7, %v8158_v49  ;;  %v4082_v51 = vmul.f32 %v4080_v7, %v8160_v40  ;;  %v4083_v37 = vmul.f32 %v4080_v7, %v8162_v25  ;;  %v4084_v26 = vmul.f32 %v4080_v7, %v8164_v11  ;;  %v5222_v49 = vld [vmem:[%s8334_s1 + $0x128] sm:$0xff]  ;;  %4534 = vmatpush.bf16.msra.mxu3 %v5230_v47 }
 0x5db   :  { %4520 = vmatpush.bf16.msrb.mxu2 %v5222_v49  ;;  %v6326_v7 = vunpack.i.l.bf16 %v6325_v3  ;;  %v4232_v39 = vsel %vm199_vm4, %v4103_v54, %v6316_v29  ;;  %v5234_v49 = vld [vmem:[%s8334_s1 + $0x188] sm:$0xff] }
 0x5dc   :  { %v4086_v12 = vadd.f32 %v6377_v44, %v4081_v31  ;;  %v4087_v19 = vadd.f32 %v6377_v44, %v4082_v51  ;;  %v4088_v21 = vadd.f32 %v6377_v44, %v4083_v37  ;;  %v4089_v4 = vadd.f32 %v6377_v44, %v4084_v26  ;;  %v5242_v51 = vld [vmem:[%s8334_s1 + $0x1c8] sm:$0xff]  ;;  %v5229_v37 = vld [vmem:[%s8334_s1 + $0x160] sm:$0xff] }
 0x5dd   :  { %v4233_v44 = vsel %vm199_vm4, %v4104_v53, %v6317_v9 }
 0x5de   :  { %v4090_v20 = vmul.f32 0.2, %v4086_v12  ;;  %v4091_v40 = vmul.f32 0.2, %v4087_v19  ;;  %v4092_v50 = vmul.f32 0.2, %v4088_v21  ;;  %4535 = vmatpush.bf16.msra.mxu3 %v5229_v37 }
 0x5df   :  { %v4093_v25 = vmul.f32 0.2, %v4089_v4  ;;  %4521 = vmatpush.bf16.msrb.mxu2 %v5221_v28 }
 0x5e0   :  { %v4094_v11 = vmax.f32 %v4086_v12, %v4090_v20  ;;  %v4095_v41 = vmax.f32 %v4087_v19, %v4091_v40  ;;  %v4096_v10 = vmax.f32 %v4088_v21, %v4092_v50  ;;  %v5235_v12 = vld [vmem:[%s8334_s1 + $0x190] sm:$0xff]  ;;  %v5241_v21 = vld [vmem:[%s8334_s1 + $0x1c0] sm:$0xff] }
 0x5e1   :  { %v4097_v15 = vmax.f32 %v4089_v4, %v4093_v25  ;;  %v5228_v4 = vld [vmem:[%s8334_s1 + $0x158] sm:$0xff]  ;;  %4551 = vmatpush.bf16.msrb.mxu1 %v5235_v12  ;;  %v5227_v40 = vld [vmem:[%s8334_s1 + $0x150] sm:$0xff] }
 0x5e2   :  { %4099 = vst.msk [vmem:[#allocation5 + $0x11] sm:$0x3] %vm4098_vm5, %v4094_v11  ;;  %4536 = vmatpush.bf16.msra.mxu3 %v5228_v4 }
 0x5e3   :  { %4100 = vst.msk [vmem:[#allocation5 + $0x21] sm:$0x3] %vm4098_vm5, %v4095_v41  ;;  %4522 = vmatpush.bf16.msrb.mxu2 %v5220_v52  ;;  %v4128_v41 = vld [vmem:[#allocation5 + $0x30] sm:$0xff] }
 0x5e4   :  { %4101 = vst.msk [vmem:[#allocation5 + $0x51] sm:$0x3] %vm4098_vm5, %v4096_v10  ;;  %v4129_v10 = vld [vmem:[#allocation5 + $0x70] sm:$0xff] }
 0x5e5   :  { %4102 = vst.msk [vmem:[#allocation5 + $0x61] sm:$0x3] %vm4098_vm5, %v4097_v15  ;;  %4552 = vmatpush.bf16.msrb.mxu1 %v5234_v49  ;;  %v5226_v15 = vld [vmem:[%s8334_s1 + $0x148] sm:$0xff] }
 0x5e6   :  { %4537 = vmatpush.bf16.msra.mxu3 %v5227_v40  ;;  %v6378_v49 = vld [vmem:[%s8335_s2 + $0x9] ss:$0 sm:$0xff] }
 0x5e7   :  { %4523 = vmatpush.bf16.msrb.mxu2 %v5219_v63 }
 0x5e9   :  { %v4115_v2 = vld [vmem:[#allocation5 + $0x12] sm:$0xff] }
 0x5ea   :  { %v4113_v16 = vld [vmem:[#allocation5 + $0x11] sm:$0xff]  ;;  %v4124_v30 = vld [vmem:[#allocation5 + $0x22] sm:$0xff]  ;;  %4538 = vmatpush.bf16.msra.mxu3 %v5226_v15 }
 0x5eb   :  { %v4116_v17 = vld [vmem:[#allocation5 + $0x52] sm:$0xff]  ;;  %4524 = vmatpush.bf16.msrb.mxu2 %v5218_v46  ;;  %v4122_v48 = vld [vmem:[#allocation5 + $0x21] sm:$0xff] }
 0x5ec   :  { %v4114_v61 = vld [vmem:[#allocation5 + $0x51] sm:$0xff]  ;;  %v6353_v45 = vpack.i.bf16 %v4116_v17, %v4115_v2  ;;  %v4125_v8 = vld [vmem:[#allocation5 + $0x62] sm:$0xff] }
 0x5ed   :  { %v6348_v13 = vpack.i.bf16 %v4114_v61, %v4113_v16  ;;  %v4123_v33 = vld [vmem:[#allocation5 + $0x61] sm:$0xff]  ;;  %v6363_v18 = vpack.i.bf16 %v4125_v8, %v4124_v30  ;;  %v4111_v32 = vld [vmem:[#allocation5 + $0x10] sm:$0xff] }
 0x5ee   :  { %6354 = vrot.lane.b32.xlu2 %v6353_v45, %s6390_s12  ;;  %v6358_v43 = vpack.i.bf16 %v4123_v33, %v4122_v48  ;;  %v5225_v48 = vld [vmem:[%s8334_s1 + $0x140] sm:$0xff] }
 0x5ef   :  { %6349 = vrot.lane.b32.xlu1 %v6348_v13, %s6387_s27  ;;  %4525 = vmatpush.bf16.msrb.mxu2 %v5217_v27  ;;  %v5233_v33 = vld [vmem:[%s8334_s1 + $0x180] sm:$0xff] }
 0x5f0   :  { %4539 = vmatpush.bf16.msra.mxu3 %v5225_v48  ;;  %4553 = vmatpush.bf16.msrb.mxu1 %v5233_v33 }
 0x5f3   :  { %4560 = vmatpush.bf16.msra.mxu2 %v5248_v58 }
 0x5f6   :  { %6364 = vrot.lane.b32.xlu2 %v6363_v18, %s6390_s12 }
 0x5f7   :  { %6359 = vrot.lane.b32.xlu1 %v6358_v43, %s6387_s27  ;;  %4561 = vmatpush.bf16.msra.mxu2 %v5247_v59 }
 0x5fb   :  { %4562 = vmatpush.bf16.msra.mxu2 %v5246_v0 }
 0x5ff   :  { %4563 = vmatpush.bf16.msra.mxu2 %v5245_v24  ;;  %v4112_v24 = vld [vmem:[#allocation5 + $0x50] sm:$0xff] }
 0x600   :  { %v6330_v20 = vpop.permute.xlu0 %6329 }
 0x601   :  { %v6332_v22 = vunpack.i.h.bf16 %v6330_v20 }
 0x603   :  { %4564 = vmatpush.bf16.msra.mxu2 %v5244_v34  ;;  %v6331_v34 = vunpack.i.l.bf16 %v6330_v20 }
 0x605   :  { %v6320_v14 = vpop.permute.xlu2 %6319 }
 0x606   :  { %v6322_v5 = vunpack.i.h.bf16 %v6320_v14  ;;  %v6321_v42 = vunpack.i.l.bf16 %v6320_v14 }
 0x607   :  { %4565 = vmatpush.bf16.msra.mxu2 %v5243_v6 }
 0x608   :  { %v4234_v1 = vsel %vm1934_vm9, %v4232_v39, %v6321_v42  ;;  %v4235_v31 = vsel %vm1934_vm9, %v4233_v44, %v6322_v5  ;;  %v4120_v39 = vld [vmem:[#allocation5 + $0x20] sm:$0xff] }
 0x609   :  { %v4236_v26 = vsel %vm2002_vm13, %v4234_v1, %v6326_v7  ;;  %v4237_v36 = vsel %vm2002_vm13, %v4235_v31, %v6327_v38  ;;  %v4121_v1 = vld [vmem:[#allocation5 + $0x60] sm:$0xff] }
 0x60a   :  { %v4256_v19 = vpack.c.bf16 %v4237_v36, %v4236_v26 }
 0x60b   :  { %4566 = vmatpush.bf16.msra.mxu2 %v5242_v51 }
 0x60c   :  { %4526 = vmatmul.bf16.vlgmr.msrb.gmra.mxu2 %v4256_v19 }
 0x60d   :  { %v6340_v50 = vpop.permute.xlu2 %6339 }
 0x60e   :  { %v6342_v25 = vunpack.i.h.bf16 %v6340_v50  ;;  %v6341_v11 = vunpack.i.l.bf16 %v6340_v50 }
 0x60f   :  { %4567 = vmatpush.bf16.msra.mxu2 %v5241_v21 }
 0x61d   :  { %v6335_v28 = vpop.permute.xlu1 %6334 }
 0x61e   :  { %v6337_v52 = vunpack.i.h.bf16 %v6335_v28  ;;  %v6336_v63 = vunpack.i.l.bf16 %v6335_v28 }
 0x61f   :  { %v6345_v17 = vpop.permute.xlu0 %6344 }
 0x620   :  { %v4251_v2 = vsel %vm199_vm4, %v4129_v10, %v6337_v52  ;;  %v4250_v16 = vsel %vm199_vm4, %v4128_v41, %v6336_v63  ;;  %v6347_v61 = vunpack.i.h.bf16 %v6345_v17  ;;  %v6346_v45 = vunpack.i.l.bf16 %v6345_v17 }
 0x621   :  { %v4252_v13 = vsel %vm1934_vm9, %v4250_v16, %v6341_v11  ;;  %v4253_v46 = vsel %vm1934_vm9, %v4251_v2, %v6342_v25 }
 0x622   :  { %v4254_v30 = vsel %vm2002_vm13, %v4252_v13, %v6346_v45  ;;  %v4255_v27 = vsel %vm2002_vm13, %v4253_v46, %v6347_v61 }
 0x623   :  { %v4259_v8 = vpack.c.bf16 %v4255_v27, %v4254_v30 }
 0x625   :  { %4568 = vmatmul.bf16.vlgmr.msra.gmra.mxu2 %v4259_v8 }
 0x627   :  { %v6370_v54 = vpop.permute.xlu0 %6369 }
 0x628   :  { %v6372_v3 = vunpack.i.h.bf16 %v6370_v54  ;;  %v6371_v38 = vunpack.i.l.bf16 %v6370_v54 }
 0x648   :  { %v6355_v18 = vpop.permute.xlu2 %6354 }
 0x649   :  { %v6357_v59 = vunpack.i.h.bf16 %v6355_v18  ;;  %v6356_v0 = vunpack.i.l.bf16 %v6355_v18 }
 0x650   :  { %v6365_v53 = vpop.permute.xlu2 %6364 }
 0x651   :  { %v6367_v7 = vunpack.i.h.bf16 %v6365_v53  ;;  %v6366_v44 = vunpack.i.l.bf16 %v6365_v53 }
 0x661   :  { %v6350_v43 = vpop.permute.xlu1 %6349 }
 0x662   :  { %v6352_v58 = vunpack.i.h.bf16 %v6350_v43  ;;  %v6351_v55 = vunpack.i.l.bf16 %v6350_v43 }
 0x664   :  { %v4239_v57 = vsel %vm199_vm4, %v4112_v24, %v6352_v58  ;;  %v4238_v60 = vsel %vm199_vm4, %v4111_v32, %v6351_v55 }
 0x665   :  { %v4241_v6 = vsel %vm1934_vm9, %v4239_v57, %v6357_v59  ;;  %v4240_v47 = vsel %vm1934_vm9, %v4238_v60, %v6356_v0 }
 0x666   :  { %v4242_v14 = vsel %vm2002_vm13, %v4240_v47, %v6331_v34  ;;  %v4243_v5 = vsel %vm2002_vm13, %v4241_v6, %v6332_v22 }
 0x667   :  { %v4257_v42 = vpack.c.bf16 %v4243_v5, %v4242_v14 }
 0x669   :  { %v6360_v56 = vpop.permute.xlu1 %6359  ;;  %4540 = vmatmul.bf16.vlgmr.msra.gmra.mxu3 %v4257_v42 }
 0x66a   :  { %v6362_v9 = vunpack.i.h.bf16 %v6360_v56  ;;  %v6361_v29 = vunpack.i.l.bf16 %v6360_v56 }
 0x66c   :  { %v4245_v31 = vsel %vm199_vm4, %v4121_v1, %v6362_v9  ;;  %v4244_v51 = vsel %vm199_vm4, %v4120_v39, %v6361_v29  ;;  %vm4574_vm4 = vcmp.lt.s32.totalorder %v7910_v35, 1 }
 0x66d   :  { %v4246_v37 = vsel %vm1934_vm9, %v4244_v51, %v6366_v44  ;;  %v4247_v26 = vsel %vm1934_vm9, %v4245_v31, %v6367_v7  ;;  %v5183_v10 = vsel %vm4574_vm4, 1.0, %v8363_v23  ;;  %vm4575_vm9 = vcmp.lt.s32.totalorder %v7906_v62, 1 }
 0x66e   :  { %v4248_v36 = vsel %vm2002_vm13, %v4246_v37, %v6371_v38  ;;  %v4249_v12 = vsel %vm2002_vm13, %v4247_v26, %v6372_v3  ;;  %v5184_v35 = vsel %vm4575_vm9, 1.0, %v8363_v23 }
 0x66f   :  { %v4258_v19 = vpack.c.bf16 %v4249_v12, %v4248_v36 }
 0x671   :  { %4554 = vmatmul.bf16.vlgmr.msrb.gmra.mxu1 %v4258_v19 }
 0x68f   :  { %v4527_v21 = vpop.f32.mrf.mxu2 }
 0x690   :  { %v4528_v20 = vadd.f32 %v6378_v49, %v4527_v21 }
 0x697   :  { %v4529_v4 = vpop.f32.mrf.mxu2 }
 0x698   :  { %v4530_v15 = vadd.f32 %v6378_v49, %v4529_v4 }
 0x6a8   :  { %v4569_v25 = vpop.f32.mrf.mxu2 }
 0x6b0   :  { %v4571_v61 = vpop.f32.mrf.mxu2 }
 0x6ec   :  { %v4541_v40 = vpop.f32.mrf.mxu3 }
 0x6ed   :  { %v4542_v50 = vadd.f32 %v4541_v40, %v4528_v20 }
 0x6ee   :  { %v4555_v11 = vpop.f32.mrf.mxu1 }
 0x6ef   :  { %v4556_v41 = vadd.f32 %v4555_v11, %v4542_v50 }
 0x6f1   :  { %v4570_v28 = vadd.f32 %v4569_v25, %v4556_v41 }
 0x6f3   :  { %v4580_v52 = vmul.f32 %v5183_v10, %v4570_v28 }
 0x6f4   :  { %v4543_v63 = vpop.f32.mrf.mxu3 }
 0x6f5   :  { %4582 = vst [vmem:[%s8336_s3] sm:$0xff] %v4580_v52  ;;  %v4544_v2 = vadd.f32 %v4543_v63, %v4530_v15 }
 0x6f6   :  { %v4557_v16 = vpop.f32.mrf.mxu1 }
 0x6f7   :  { %v4558_v17 = vadd.f32 %v4557_v16, %v4544_v2 }
 0x6f9   :  { %v4572_v45 = vadd.f32 %v4571_v61, %v4558_v17 }
 0x6fb   :  { %v4581_v13 = vmul.f32 %v5184_v35, %v4572_v45 }
 0x6fd   :  { %4583 = vst [vmem:[%s8336_s3 + $0x8] sm:$0xff] %v4581_v13 }

</bundles_post_ra>
